<compile_context>
chip_gen: v5e
topology: v5e:2x2
jax: 0.10.0
libtpu: 0.0.40
codegen_flags: <defaults>
</compile_context>

<pallas_src>
import numpy as np
import jax
import jax.numpy as jnp
from jax import lax
from jax.experimental import pallas as pl
from jax.experimental.pallas import tpu as pltpu

# ---------------- synthetic hyper-parameters (small) ----------------
N_FINGER = 64     # n_finger_feature
N_SEQ    = 48     # n_seq_feature
N_HIDDEN = 32     # n_hidden
N_DRUG   = 16     # drug nodes in DDI graph
N_PROT   = 16     # protein nodes in PPI graph
BATCH    = 8      # number of (drug, protein) query pairs
EPS      = 1e-5   # BatchNorm1d eps

H        = N_HIDDEN
H2       = 2 * N_HIDDEN        # block-diag hidden width: [drug lanes | prot lanes]
NT       = N_DRUG + N_PROT     # stacked node count
FEAT_PAD = 128                 # padded block-diag input-feature width (64 + 48 -> 128)
OUT_PAD  = 128                 # lane-dense padded width for the (B, 1) head output
PBUF_LANES = 128

# ---------------- packed-parameter row layout (static) ----------------
_LAYOUT = [
    ("W_EMB",  FEAT_PAD),   # (128, 64)  block-diag embedding weight
    ("W_POOL", H2),         # (64, 64)   block-diag SAGE fc_pool
    ("W_SELF", H2),         # (64, 64)
    ("W_NEIGH", H2),        # (64, 64)
    ("W1",     6 * H),      # (192, 64)  row-permuted connected_layer1 weight
    ("W2",     2 * H),      # (64, 32)
    ("W3",     H),          # (32, 64)
    ("W4",     64),         # (64, 128)  zero-padded output layer
    ("B_EMB",  NT),         # (32, 64)   per-row block biases (keep blocks exact)
    ("B_POOL", NT),
    ("B_SAGE", NT),
    ("B1", 1), ("G1", 1), ("BE1", 1),
    ("B2", 1), ("G2", 1), ("BE2", 1),
    ("B3", 1), ("G3", 1), ("BE3", 1),
    ("B4", 1),
]
_OFF = {}
_r = 0
for _name, _rows in _LAYOUT:
    _OFF[_name] = _r
    _r += _rows
PBUF_ROWS = _r + (-_r) % 8     # sublane-align the packed buffer


def _spec(shape):
    zeros = tuple(0 for _ in shape)
    return pl.BlockSpec(shape, lambda i, _z=zeros: _z)


# ---------------- single fused kernel: whole My_Net forward ----------------
def _fused_kernel(feat_ref, adjT_ref, sel_ref, pbuf_ref, o_ref):
    f32, bf16 = jnp.float32, jnp.bfloat16

    def wslab(name, rows, cols):             # weight slab, pre-cast to bf16 (MXU operand)
        r0 = _OFF[name]
        return pbuf_ref[pl.ds(r0, rows), pl.ds(0, cols)].astype(bf16)

    def bslab(name, rows, cols):             # bias / BN slab, stays f32 (VPU math)
        r0 = _OFF[name]
        return pbuf_ref[pl.ds(r0, rows), pl.ds(0, cols)]

    def mm(a, w_bf):                         # bf16 MXU operands, f32 accumulation
        return jnp.dot(a.astype(bf16), w_bf, preferred_element_type=f32)

    def relu(x):
        return jnp.maximum(x, 0.0)

    # ---- static slices of the packed parameter buffer ----
    w_emb = wslab("W_EMB", FEAT_PAD, H2)
    w_p   = wslab("W_POOL", H2, H2)
    w_s   = wslab("W_SELF", H2, H2)
    w_n   = wslab("W_NEIGH", H2, H2)
    r1 = _OFF["W1"]                           # W1 split into its three 64-row blocks
    w1a = pbuf_ref[pl.ds(r1, H2), pl.ds(0, H2)].astype(bf16)
    w1b = pbuf_ref[pl.ds(r1 + H2, H2), pl.ds(0, H2)].astype(bf16)
    w1c = pbuf_ref[pl.ds(r1 + 2 * H2, H2), pl.ds(0, H2)].astype(bf16)
    w2 = wslab("W2", 2 * H, H)
    w3 = wslab("W3", H, 64)
    w4 = wslab("W4", 64, OUT_PAD)

    b_emb = bslab("B_EMB", NT, H2)
    b_p   = bslab("B_POOL", NT, H2)
    b_s   = bslab("B_SAGE", NT, H2)
    b1, g1, be1 = bslab("B1", 1, 2 * H), bslab("G1", 1, 2 * H), bslab("BE1", 1, 2 * H)
    b2, g2, be2 = bslab("B2", 1, H),     bslab("G2", 1, H),     bslab("BE2", 1, H)
    b3, g3, be3 = bslab("B3", 1, 64),    bslab("G3", 1, 64),    bslab("BE3", 1, 64)
    b4 = bslab("B4", 1, OUT_PAD)

    # ---- Dr_P_Embedding: one block-diag matmul (drugs + proteins together) ----
    h0 = relu(mm(feat_ref[...], w_emb) + b_emb)            # (NT, H2), exact block structure

    adjT = adjT_ref[...]                                    # (NT, NT), adjT[j, i] = adj[i, j]

    # ---- All_Graph_Net: shared block-diag SAGE, one call per hop ----
    def sage(h):
        hb = h.astype(bf16)
        # DGL SAGEConv('pool'):  pool = relu(fc_pool(h)) >= 0
        pool = relu(jnp.dot(hb, w_p, preferred_element_type=f32) + b_p)      # (NT, H2)
        # neigh[i] = max over in-neighbours j of pool[j]  (0 if no neighbours)
        masked = jnp.where(adjT[:, :, None] > 0.0, pool[:, None, :], 0.0)    # (NT, NT, H2)
        neigh = jnp.max(masked, axis=0)                                       # (NT, H2)
        y = (jnp.dot(hb, w_s, preferred_element_type=f32)
             + jnp.dot(neigh.astype(bf16), w_n, preferred_element_type=f32)
             + b_s)
        return relu(y)                                                        # activation=F.relu

    h1 = sage(h0)
    h2 = sage(h1)

    # ---- gather + concat + connected_layer1 (pre-BN), 4 MXU ops total ----
    # torch: cat(dr0,dr1,dr2,p0,p1,p2) @ W1
    #      == sel_both @ (h0 @ W1a + h1 @ W1b + h2 @ W1c)   (W1 rows permuted at init)
    node_proj = (jnp.dot(h0.astype(bf16), w1a, preferred_element_type=f32)
                 + jnp.dot(h1.astype(bf16), w1b, preferred_element_type=f32)
                 + jnp.dot(h2.astype(bf16), w1c, preferred_element_type=f32))  # (NT, 2H)
    y1 = mm(sel_ref[...], node_proj.astype(bf16)) + b1                          # (B, 2H)

    def bn_relu(y, gamma, beta):
        # BatchNorm1d, training mode (batch stats, biased variance) + ReLU — all f32 on VPU
        mu = jnp.mean(y, axis=0, keepdims=True)
        var = jnp.mean(jnp.square(y - mu), axis=0, keepdims=True)
        return relu((y - mu) * lax.rsqrt(var + EPS) * gamma + beta)

    a1 = bn_relu(y1, g1, be1)
    a2 = bn_relu(mm(a1, w2) + b2, g2, be2)
    a3 = bn_relu(mm(a2, w3) + b3, g3, be3)
    logits = mm(a3, w4) + b4                                # (B, OUT_PAD); real logit in col 0
    e = jnp.exp(-logits)                                    # EUP
    o_ref[...] = pl.reciprocal(1.0 + e, approx=False)       # sigmoid, exact (stays in [0, 1])


# ---------------- parameter initialisation + packing (deterministic, synthetic) ----------------
def _dense(key, fi, fo, scale=0.1):
    kw, kb = jax.random.split(key)
    return (scale * jax.random.normal(kw, (fi, fo), jnp.float32),
            scale * jax.random.normal(kb, (1, fo), jnp.float32))


def _block_diag(a, b):
    ra, ca = a.shape
    rb, cb = b.shape
    top = jnp.concatenate([a, jnp.zeros((ra, cb), jnp.float32)], axis=1)
    bot = jnp.concatenate([jnp.zeros((rb, ca), jnp.float32), b], axis=1)
    return jnp.concatenate([top, bot], axis=0)


def _row_block_bias(b_dr, b_p):
    # (NT, 2H): drug rows get [b_dr, 0], protein rows get [0, b_p] -> block structure stays exact
    top = jnp.concatenate([jnp.tile(b_dr, (N_DRUG, 1)), jnp.zeros((N_DRUG, H), jnp.float32)], axis=1)
    bot = jnp.concatenate([jnp.zeros((N_PROT, H), jnp.float32), jnp.tile(b_p, (N_PROT, 1))], axis=1)
    return jnp.concatenate([top, bot], axis=0)


def _pad_cols(a, width=PBUF_LANES):
    return jnp.pad(a, ((0, 0), (0, width - a.shape[1])))


def init_params(key):
    ks = jax.random.split(key, 11)
    emb_dr_w, emb_dr_b = _dense(ks[0], N_FINGER, H)
    emb_p_w,  emb_p_b  = _dense(ks[1], N_SEQ, H)

    def sage_p(k):
        kk = jax.random.split(k, 3)
        wp, bp = _dense(kk[0], H, H)
        ws, _ = _dense(kk[1], H, H)
        wn, bb = _dense(kk[2], H, H)
        return wp, bp, ws, wn, bb

    d_wp, d_bp, d_ws, d_wn, d_b = sage_p(ks[2])      # DDI_Net (shared across both hops)
    p_wp, p_bp, p_ws, p_wn, p_b = sage_p(ks[3])      # PPI_Net (shared across both hops)

    w1, b1 = _dense(ks[4], 6 * H, 2 * H)
    w2, b2 = _dense(ks[5], 2 * H, H)
    w3, b3 = _dense(ks[6], H, 64)
    w4, b4 = _dense(ks[7], 64, 1)

    def bn_p(k, fo):
        kg, kb = jax.random.split(k)
        return (1.0 + 0.01 * jax.random.normal(kg, (1, fo), jnp.float32),
                0.01 * jax.random.normal(kb, (1, fo), jnp.float32))

    g1, be1 = bn_p(ks[8], 2 * H)
    g2, be2 = bn_p(ks[9], H)
    g3, be3 = bn_p(ks[10], 64)

    # --- block-diagonal fusion of DDI / PPI + embedding ---
    w_emb_blk = _block_diag(emb_dr_w, emb_p_w)                              # (112, 64)
    w_emb_blk = jnp.pad(w_emb_blk, ((0, FEAT_PAD - w_emb_blk.shape[0]), (0, 0)))
    b_emb_blk = _row_block_bias(emb_dr_b, emb_p_b)

    wp_blk = _block_diag(d_wp, p_wp)
    ws_blk = _block_diag(d_ws, p_ws)
    wn_blk = _block_diag(d_wn, p_wn)
    bp_blk = _row_block_bias(d_bp, p_bp)
    bs_blk = _row_block_bias(d_b, p_b)

    # torch row order of W1 is [dr0, dr1, dr2, p0, p1, p2]; the kernel's gathered
    # lane order is [dr0, p0, dr1, p1, dr2, p2] — permute W1 rows once at init.
    order = [0, 3, 1, 4, 2, 5]
    idx = np.concatenate([np.arange(H) + t * H for t in order])
    w1_perm = w1[idx, :]

    w4_pad = jnp.pad(w4, ((0, 0), (0, OUT_PAD - 1)))
    b4_pad = jnp.pad(b4, ((0, 0), (0, OUT_PAD - 1)))

    pieces = {
        "W_EMB": w_emb_blk, "W_POOL": wp_blk, "W_SELF": ws_blk, "W_NEIGH": wn_blk,
        "W1": w1_perm, "W2": w2, "W3": w3, "W4": w4_pad,
        "B_EMB": b_emb_blk, "B_POOL": bp_blk, "B_SAGE": bs_blk,
        "B1": b1, "G1": g1, "BE1": be1,
        "B2": b2, "G2": g2, "BE2": be2,
        "B3": b3, "G3": g3, "BE3": be3,
        "B4": b4_pad,
    }
    for name, nrows in _LAYOUT:
        assert pieces[name].shape[0] == nrows, (name, pieces[name].shape, nrows)

    pbuf = jnp.concatenate([_pad_cols(pieces[name]) for name, _ in _LAYOUT], axis=0)
    pbuf = jnp.pad(pbuf, ((0, PBUF_ROWS - pbuf.shape[0]), (0, 0)))          # (784, 128)
    return {"pbuf": pbuf}


# ---------------- My_Net forward: one fused pallas_call, 4 inputs ----------------
def my_net_forward(params, x_dr, x_p, finger_feats, seq_feats, ddi_adj, ppi_adj):
    b = x_dr.shape[0]

    # plain-JAX layout glue (block-diag stacking + combined one-hot gather matrix)
    feat_blk = jnp.zeros((NT, FEAT_PAD), jnp.float32)
    feat_blk = feat_blk.at[:N_DRUG, :N_FINGER].set(finger_feats)
    feat_blk = feat_blk.at[N_DRUG:, N_FINGER:N_FINGER + N_SEQ].set(seq_feats)

    adj_blk = jnp.zeros((NT, NT), jnp.float32)
    adj_blk = adj_blk.at[:N_DRUG, :N_DRUG].set(ddi_adj)
    adj_blk = adj_blk.at[N_DRUG:, N_DRUG:].set(ppi_adj)
    adjT_blk = adj_blk.T                                   # source-major for the masked max

    # one (B, NT) selector with two ones per row: drug node + protein node.
    # Exact gather because drug/protein rows never overlap and off-block lanes are 0.
    sel = (jax.nn.one_hot(x_dr[:, 0], NT, dtype=jnp.float32)
           + jax.nn.one_hot(x_p[:, 0] + N_DRUG, NT, dtype=jnp.float32))

    args = (feat_blk, adjT_blk, sel, params["pbuf"])
    out_pad = pl.pallas_call(
        _fused_kernel,
        grid=(1,),
        in_specs=[_spec(a.shape) for a in args],
        out_specs=_spec((b, OUT_PAD)),
        out_shape=jax.ShapeDtypeStruct((b, OUT_PAD), jnp.float32),
        compiler_params=pltpu.CompilerParams(dimension_semantics=("arbitrary",)),
    )(*args)
    return out_pad[:, :1]                                  # (B, 1)


if __name__ == "__main__":
    key = jax.random.PRNGKey(0)
    kp, kf, ks, ka, kb, kx, ky = jax.random.split(key, 7)

    params = init_params(kp)

    finger_feats = jax.random.normal(kf, (N_DRUG, N_FINGER), jnp.float32)
    seq_feats = jax.random.normal(ks, (N_PROT, N_SEQ), jnp.float32)
    ddi_adj = jax.random.bernoulli(ka, 0.3, (N_DRUG, N_DRUG)).astype(jnp.float32)
    ppi_adj = jax.random.bernoulli(kb, 0.3, (N_PROT, N_PROT)).astype(jnp.float32)
    x_dr = jax.random.randint(kx, (BATCH, 1), 0, N_DRUG, jnp.int32)
    x_p = jax.random.randint(ky, (BATCH, 1), 0, N_PROT, jnp.int32)

    fwd = jax.jit(my_net_forward)
    out = fwd(params, x_dr, x_p, finger_feats, seq_feats, ddi_adj, ppi_adj)
    out = jax.block_until_ready(out)
    assert out.shape == (BATCH, 1)
    assert bool(jnp.all(jnp.isfinite(out)))
    assert bool(jnp.all((out >= 0.0) & (out <= 1.0)))
    print("KERNEL_OK")
</pallas_src>

<mosaic_0001>
module attributes {stable_mosaic.version = 11 : i64} {
  func.func @_fused_kernel(%arg0: i32, %arg1: memref<32x128xf32, #tpu.memory_space<vmem>>, %arg2: memref<32x32xf32, #tpu.memory_space<vmem>>, %arg3: memref<8x32xf32, #tpu.memory_space<vmem>>, %arg4: memref<784x128xf32, #tpu.memory_space<vmem>>, %arg5: memref<8x128xf32, #tpu.memory_space<vmem>>) attributes {dimension_semantics = [#tpu.dimension_semantics<arbitrary>], iteration_bounds = array<i64: 1>, scalar_prefetch = 0 : i64, scratch_operands = 0 : i64, tpu.core_type = #tpu.core_type<tc>, window_params = [{pipeline_mode = #tpu.pipeline_mode<synchronous>, transform_indices = @transform_0, window_bounds = array<i64: 32, 128>}, {pipeline_mode = #tpu.pipeline_mode<synchronous>, transform_indices = @transform_1, window_bounds = array<i64: 32, 32>}, {pipeline_mode = #tpu.pipeline_mode<synchronous>, transform_indices = @transform_2, window_bounds = array<i64: 8, 32>}, {pipeline_mode = #tpu.pipeline_mode<synchronous>, transform_indices = @transform_3, window_bounds = array<i64: 784, 128>}, {pipeline_mode = #tpu.pipeline_mode<synchronous>, transform_indices = @transform_4, window_bounds = array<i64: 8, 128>}]} {
    %c0 = arith.constant 0 : index
    %c0_0 = arith.constant 0 : index
    %0 = vector.load %arg4[%c0, %c0_0] : memref<784x128xf32, #tpu.memory_space<vmem>>, vector<128x64xf32>
    %1 = arith.truncf %0 : vector<128x64xf32> to vector<128x64xbf16>
    %c128 = arith.constant 128 : index
    %c0_1 = arith.constant 0 : index
    %2 = vector.load %arg4[%c128, %c0_1] : memref<784x128xf32, #tpu.memory_space<vmem>>, vector<64x64xf32>
    %3 = arith.truncf %2 : vector<64x64xf32> to vector<64x64xbf16>
    %c192 = arith.constant 192 : index
    %c0_2 = arith.constant 0 : index
    %4 = vector.load %arg4[%c192, %c0_2] : memref<784x128xf32, #tpu.memory_space<vmem>>, vector<64x64xf32>
    %5 = arith.truncf %4 : vector<64x64xf32> to vector<64x64xbf16>
    %c256 = arith.constant 256 : index
    %c0_3 = arith.constant 0 : index
    %6 = vector.load %arg4[%c256, %c0_3] : memref<784x128xf32, #tpu.memory_space<vmem>>, vector<64x64xf32>
    %7 = arith.truncf %6 : vector<64x64xf32> to vector<64x64xbf16>
    %c320 = arith.constant 320 : index
    %c0_4 = arith.constant 0 : index
    %8 = vector.load %arg4[%c320, %c0_4] : memref<784x128xf32, #tpu.memory_space<vmem>>, vector<64x64xf32>
    %9 = arith.truncf %8 : vector<64x64xf32> to vector<64x64xbf16>
    %c384 = arith.constant 384 : index
    %c0_5 = arith.constant 0 : index
    %10 = vector.load %arg4[%c384, %c0_5] : memref<784x128xf32, #tpu.memory_space<vmem>>, vector<64x64xf32>
    %11 = arith.truncf %10 : vector<64x64xf32> to vector<64x64xbf16>
    %c448 = arith.constant 448 : index
    %c0_6 = arith.constant 0 : index
    %12 = vector.load %arg4[%c448, %c0_6] : memref<784x128xf32, #tpu.memory_space<vmem>>, vector<64x64xf32>
    %13 = arith.truncf %12 : vector<64x64xf32> to vector<64x64xbf16>
    %c512 = arith.constant 512 : index
    %c0_7 = arith.constant 0 : index
    %14 = vector.load %arg4[%c512, %c0_7] : memref<784x128xf32, #tpu.memory_space<vmem>>, vector<64x32xf32>
    %15 = arith.truncf %14 : vector<64x32xf32> to vector<64x32xbf16>
    %c576 = arith.constant 576 : index
    %c0_8 = arith.constant 0 : index
    %16 = vector.load %arg4[%c576, %c0_8] : memref<784x128xf32, #tpu.memory_space<vmem>>, vector<32x64xf32>
    %17 = arith.truncf %16 : vector<32x64xf32> to vector<32x64xbf16>
    %c608 = arith.constant 608 : index
    %c0_9 = arith.constant 0 : index
    %18 = vector.load %arg4[%c608, %c0_9] : memref<784x128xf32, #tpu.memory_space<vmem>>, vector<64x128xf32>
    %19 = arith.truncf %18 : vector<64x128xf32> to vector<64x128xbf16>
    %c672 = arith.constant 672 : index
    %c0_10 = arith.constant 0 : index
    %20 = vector.load %arg4[%c672, %c0_10] : memref<784x128xf32, #tpu.memory_space<vmem>>, vector<32x64xf32>
    %c704 = arith.constant 704 : index
    %c0_11 = arith.constant 0 : index
    %21 = vector.load %arg4[%c704, %c0_11] : memref<784x128xf32, #tpu.memory_space<vmem>>, vector<32x64xf32>
    %c736 = arith.constant 736 : index
    %c0_12 = arith.constant 0 : index
    %22 = vector.load %arg4[%c736, %c0_12] : memref<784x128xf32, #tpu.memory_space<vmem>>, vector<32x64xf32>
    %c768 = arith.constant 768 : index
    %c0_13 = arith.constant 0 : index
    %23 = vector.load %arg4[%c768, %c0_13] : memref<784x128xf32, #tpu.memory_space<vmem>>, vector<1x64xf32>
    %c769 = arith.constant 769 : index
    %c0_14 = arith.constant 0 : index
    %24 = vector.load %arg4[%c769, %c0_14] : memref<784x128xf32, #tpu.memory_space<vmem>>, vector<1x64xf32>
    %c770 = arith.constant 770 : index
    %c0_15 = arith.constant 0 : index
    %25 = vector.load %arg4[%c770, %c0_15] : memref<784x128xf32, #tpu.memory_space<vmem>>, vector<1x64xf32>
    %c771 = arith.constant 771 : index
    %c0_16 = arith.constant 0 : index
    %26 = vector.load %arg4[%c771, %c0_16] : memref<784x128xf32, #tpu.memory_space<vmem>>, vector<1x32xf32>
    %c772 = arith.constant 772 : index
    %c0_17 = arith.constant 0 : index
    %27 = vector.load %arg4[%c772, %c0_17] : memref<784x128xf32, #tpu.memory_space<vmem>>, vector<1x32xf32>
    %c773 = arith.constant 773 : index
    %c0_18 = arith.constant 0 : index
    %28 = vector.load %arg4[%c773, %c0_18] : memref<784x128xf32, #tpu.memory_space<vmem>>, vector<1x32xf32>
    %c774 = arith.constant 774 : index
    %c0_19 = arith.constant 0 : index
    %29 = vector.load %arg4[%c774, %c0_19] : memref<784x128xf32, #tpu.memory_space<vmem>>, vector<1x64xf32>
    %c775 = arith.constant 775 : index
    %c0_20 = arith.constant 0 : index
    %30 = vector.load %arg4[%c775, %c0_20] : memref<784x128xf32, #tpu.memory_space<vmem>>, vector<1x64xf32>
    %c776 = arith.constant 776 : index
    %c0_21 = arith.constant 0 : index
    %31 = vector.load %arg4[%c776, %c0_21] : memref<784x128xf32, #tpu.memory_space<vmem>>, vector<1x64xf32>
    %c777 = arith.constant 777 : index
    %c0_22 = arith.constant 0 : index
    %32 = vector.load %arg4[%c777, %c0_22] : memref<784x128xf32, #tpu.memory_space<vmem>>, vector<1x128xf32>
    %c0_23 = arith.constant 0 : index
    %c0_24 = arith.constant 0 : index
    %33 = vector.load %arg1[%c0_23, %c0_24] : memref<32x128xf32, #tpu.memory_space<vmem>>, vector<32x128xf32>
    %34 = arith.truncf %33 : vector<32x128xf32> to vector<32x128xbf16>
    %cst = arith.constant dense<0.000000e+00> : vector<32x64xf32>
    %35 = tpu.matmul %34, %1, %cst {dimension_numbers = #tpu.dot_dimension_numbers<[1], [0], [0], [1], [0, 0, 1, 1], [], []>} : vector<32x128xbf16>, vector<128x64xbf16>, vector<32x64xf32> -> vector<32x64xf32>
    %36 = arith.addf %35, %20 : vector<32x64xf32>
    %cst_25 = arith.constant 0.000000e+00 : f32
    %37 = vector.broadcast %cst_25 : f32 to vector<32x64xf32>
    %38 = arith.maximumf %36, %37 : vector<32x64xf32>
    %c0_26 = arith.constant 0 : index
    %c0_27 = arith.constant 0 : index
    %39 = vector.load %arg2[%c0_26, %c0_27] : memref<32x32xf32, #tpu.memory_space<vmem>>, vector<32x32xf32>
    %40 = arith.truncf %38 : vector<32x64xf32> to vector<32x64xbf16>
    %cst_28 = arith.constant dense<0.000000e+00> : vector<32x64xf32>
    %41 = tpu.matmul %40, %3, %cst_28 {dimension_numbers = #tpu.dot_dimension_numbers<[1], [0], [0], [1], [0, 0, 1, 1], [], []>} : vector<32x64xbf16>, vector<64x64xbf16>, vector<32x64xf32> -> vector<32x64xf32>
    %42 = arith.addf %41, %21 : vector<32x64xf32>
    %cst_29 = arith.constant 0.000000e+00 : f32
    %43 = vector.broadcast %cst_29 : f32 to vector<32x64xf32>
    %44 = arith.maximumf %42, %43 : vector<32x64xf32>
    %45 = vector.shape_cast %39 : vector<32x32xf32> to vector<32x32x1xf32>
    %cst_30 = arith.constant 0.000000e+00 : f32
    %46 = vector.broadcast %cst_30 : f32 to vector<32x32x1xf32>
    %47 = arith.cmpf ogt, %45, %46 : vector<32x32x1xf32>
    %48 = vector.shape_cast %44 : vector<32x64xf32> to vector<32x1x64xf32>
    %cst_31 = arith.constant 0.000000e+00 : f32
    %49 = vector.shape_cast %47 : vector<32x32x1xi1> to vector<32x32x1xi1>
    %50 = vector.broadcast %49 : vector<32x32x1xi1> to vector<32x32x64xi1>
    %51 = vector.shape_cast %48 : vector<32x1x64xf32> to vector<32x1x64xf32>
    %52 = vector.broadcast %51 : vector<32x1x64xf32> to vector<32x32x64xf32>
    %53 = vector.broadcast %cst_31 : f32 to vector<32x32x64xf32>
    %54 = arith.select %50, %52, %53 : vector<32x32x64xi1>, vector<32x32x64xf32>
    %cst_32 = arith.constant dense<0xFF800000> : vector<32x64xf32>
    %55 = vector.multi_reduction <maximumf>, %54, %cst_32 [0] : vector<32x32x64xf32> to vector<32x64xf32>
    %cst_33 = arith.constant dense<0.000000e+00> : vector<32x64xf32>
    %56 = tpu.matmul %40, %5, %cst_33 {dimension_numbers = #tpu.dot_dimension_numbers<[1], [0], [0], [1], [0, 0, 1, 1], [], []>} : vector<32x64xbf16>, vector<64x64xbf16>, vector<32x64xf32> -> vector<32x64xf32>
    %57 = arith.truncf %55 : vector<32x64xf32> to vector<32x64xbf16>
    %cst_34 = arith.constant dense<0.000000e+00> : vector<32x64xf32>
    %58 = tpu.matmul %57, %7, %cst_34 {dimension_numbers = #tpu.dot_dimension_numbers<[1], [0], [0], [1], [0, 0, 1, 1], [], []>} : vector<32x64xbf16>, vector<64x64xbf16>, vector<32x64xf32> -> vector<32x64xf32>
    %59 = arith.addf %56, %58 : vector<32x64xf32>
    %60 = arith.addf %59, %22 : vector<32x64xf32>
    %cst_35 = arith.constant 0.000000e+00 : f32
    %61 = vector.broadcast %cst_35 : f32 to vector<32x64xf32>
    %62 = arith.maximumf %60, %61 : vector<32x64xf32>
    %63 = arith.truncf %62 : vector<32x64xf32> to vector<32x64xbf16>
    %cst_36 = arith.constant dense<0.000000e+00> : vector<32x64xf32>
    %64 = tpu.matmul %63, %3, %cst_36 {dimension_numbers = #tpu.dot_dimension_numbers<[1], [0], [0], [1], [0, 0, 1, 1], [], []>} : vector<32x64xbf16>, vector<64x64xbf16>, vector<32x64xf32> -> vector<32x64xf32>
    %65 = arith.addf %64, %21 : vector<32x64xf32>
    %cst_37 = arith.constant 0.000000e+00 : f32
    %66 = vector.broadcast %cst_37 : f32 to vector<32x64xf32>
    %67 = arith.maximumf %65, %66 : vector<32x64xf32>
    %68 = vector.shape_cast %39 : vector<32x32xf32> to vector<32x32x1xf32>
    %cst_38 = arith.constant 0.000000e+00 : f32
    %69 = vector.broadcast %cst_38 : f32 to vector<32x32x1xf32>
    %70 = arith.cmpf ogt, %68, %69 : vector<32x32x1xf32>
    %71 = vector.shape_cast %67 : vector<32x64xf32> to vector<32x1x64xf32>
    %cst_39 = arith.constant 0.000000e+00 : f32
    %72 = vector.shape_cast %70 : vector<32x32x1xi1> to vector<32x32x1xi1>
    %73 = vector.broadcast %72 : vector<32x32x1xi1> to vector<32x32x64xi1>
    %74 = vector.shape_cast %71 : vector<32x1x64xf32> to vector<32x1x64xf32>
    %75 = vector.broadcast %74 : vector<32x1x64xf32> to vector<32x32x64xf32>
    %76 = vector.broadcast %cst_39 : f32 to vector<32x32x64xf32>
    %77 = arith.select %73, %75, %76 : vector<32x32x64xi1>, vector<32x32x64xf32>
    %cst_40 = arith.constant dense<0xFF800000> : vector<32x64xf32>
    %78 = vector.multi_reduction <maximumf>, %77, %cst_40 [0] : vector<32x32x64xf32> to vector<32x64xf32>
    %cst_41 = arith.constant dense<0.000000e+00> : vector<32x64xf32>
    %79 = tpu.matmul %63, %5, %cst_41 {dimension_numbers = #tpu.dot_dimension_numbers<[1], [0], [0], [1], [0, 0, 1, 1], [], []>} : vector<32x64xbf16>, vector<64x64xbf16>, vector<32x64xf32> -> vector<32x64xf32>
    %80 = arith.truncf %78 : vector<32x64xf32> to vector<32x64xbf16>
    %cst_42 = arith.constant dense<0.000000e+00> : vector<32x64xf32>
    %81 = tpu.matmul %80, %7, %cst_42 {dimension_numbers = #tpu.dot_dimension_numbers<[1], [0], [0], [1], [0, 0, 1, 1], [], []>} : vector<32x64xbf16>, vector<64x64xbf16>, vector<32x64xf32> -> vector<32x64xf32>
    %82 = arith.addf %79, %81 : vector<32x64xf32>
    %83 = arith.addf %82, %22 : vector<32x64xf32>
    %cst_43 = arith.constant 0.000000e+00 : f32
    %84 = vector.broadcast %cst_43 : f32 to vector<32x64xf32>
    %85 = arith.maximumf %83, %84 : vector<32x64xf32>
    %86 = arith.truncf %38 : vector<32x64xf32> to vector<32x64xbf16>
    %cst_44 = arith.constant dense<0.000000e+00> : vector<32x64xf32>
    %87 = tpu.matmul %86, %9, %cst_44 {dimension_numbers = #tpu.dot_dimension_numbers<[1], [0], [0], [1], [0, 0, 1, 1], [], []>} : vector<32x64xbf16>, vector<64x64xbf16>, vector<32x64xf32> -> vector<32x64xf32>
    %88 = arith.truncf %62 : vector<32x64xf32> to vector<32x64xbf16>
    %cst_45 = arith.constant dense<0.000000e+00> : vector<32x64xf32>
    %89 = tpu.matmul %88, %11, %cst_45 {dimension_numbers = #tpu.dot_dimension_numbers<[1], [0], [0], [1], [0, 0, 1, 1], [], []>} : vector<32x64xbf16>, vector<64x64xbf16>, vector<32x64xf32> -> vector<32x64xf32>
    %90 = arith.addf %87, %89 : vector<32x64xf32>
    %91 = arith.truncf %85 : vector<32x64xf32> to vector<32x64xbf16>
    %cst_46 = arith.constant dense<0.000000e+00> : vector<32x64xf32>
    %92 = tpu.matmul %91, %13, %cst_46 {dimension_numbers = #tpu.dot_dimension_numbers<[1], [0], [0], [1], [0, 0, 1, 1], [], []>} : vector<32x64xbf16>, vector<64x64xbf16>, vector<32x64xf32> -> vector<32x64xf32>
    %93 = arith.addf %90, %92 : vector<32x64xf32>
    %c0_47 = arith.constant 0 : index
    %c0_48 = arith.constant 0 : index
    %94 = vector.load %arg3[%c0_47, %c0_48] : memref<8x32xf32, #tpu.memory_space<vmem>>, vector<8x32xf32>
    %95 = arith.truncf %93 : vector<32x64xf32> to vector<32x64xbf16>
    %96 = arith.truncf %94 : vector<8x32xf32> to vector<8x32xbf16>
    %cst_49 = arith.constant dense<0.000000e+00> : vector<8x64xf32>
    %97 = tpu.matmul %96, %95, %cst_49 {dimension_numbers = #tpu.dot_dimension_numbers<[1], [0], [0], [1], [0, 0, 1, 1], [], []>} : vector<8x32xbf16>, vector<32x64xbf16>, vector<8x64xf32> -> vector<8x64xf32>
    %98 = vector.broadcast %23 : vector<1x64xf32> to vector<8x64xf32>
    %99 = arith.addf %97, %98 : vector<8x64xf32>
    %cst_50 = arith.constant dense<0.000000e+00> : vector<64xf32>
    %100 = vector.multi_reduction <add>, %99, %cst_50 [0] : vector<8x64xf32> to vector<64xf32>
    %101 = vector.shape_cast %100 : vector<64xf32> to vector<1x64xf32>
    %cst_51 = arith.constant 8.000000e+00 : f32
    %102 = vector.broadcast %cst_51 : f32 to vector<1x64xf32>
    %103 = arith.divf %101, %102 : vector<1x64xf32>
    %104 = vector.broadcast %103 : vector<1x64xf32> to vector<8x64xf32>
    %105 = arith.subf %99, %104 : vector<8x64xf32>
    %106 = arith.mulf %105, %105 : vector<8x64xf32>
    %cst_52 = arith.constant dense<0.000000e+00> : vector<64xf32>
    %107 = vector.multi_reduction <add>, %106, %cst_52 [0] : vector<8x64xf32> to vector<64xf32>
    %108 = vector.shape_cast %107 : vector<64xf32> to vector<1x64xf32>
    %cst_53 = arith.constant 8.000000e+00 : f32
    %109 = vector.broadcast %cst_53 : f32 to vector<1x64xf32>
    %110 = arith.divf %108, %109 : vector<1x64xf32>
    %111 = vector.broadcast %103 : vector<1x64xf32> to vector<8x64xf32>
    %112 = arith.subf %99, %111 : vector<8x64xf32>
    %cst_54 = arith.constant 9.99999974E-6 : f32
    %113 = vector.broadcast %cst_54 : f32 to vector<1x64xf32>
    %114 = arith.addf %110, %113 : vector<1x64xf32>
    %115 = math.rsqrt %114 : vector<1x64xf32>
    %116 = vector.broadcast %115 : vector<1x64xf32> to vector<8x64xf32>
    %117 = arith.mulf %112, %116 : vector<8x64xf32>
    %118 = vector.broadcast %24 : vector<1x64xf32> to vector<8x64xf32>
    %119 = arith.mulf %117, %118 : vector<8x64xf32>
    %120 = vector.broadcast %25 : vector<1x64xf32> to vector<8x64xf32>
    %121 = arith.addf %119, %120 : vector<8x64xf32>
    %cst_55 = arith.constant 0.000000e+00 : f32
    %122 = vector.broadcast %cst_55 : f32 to vector<8x64xf32>
    %123 = arith.maximumf %121, %122 : vector<8x64xf32>
    %124 = arith.truncf %123 : vector<8x64xf32> to vector<8x64xbf16>
    %cst_56 = arith.constant dense<0.000000e+00> : vector<8x32xf32>
    %125 = tpu.matmul %124, %15, %cst_56 {dimension_numbers = #tpu.dot_dimension_numbers<[1], [0], [0], [1], [0, 0, 1, 1], [], []>} : vector<8x64xbf16>, vector<64x32xbf16>, vector<8x32xf32> -> vector<8x32xf32>
    %126 = vector.broadcast %26 : vector<1x32xf32> to vector<8x32xf32>
    %127 = arith.addf %125, %126 : vector<8x32xf32>
    %cst_57 = arith.constant dense<0.000000e+00> : vector<32xf32>
    %128 = vector.multi_reduction <add>, %127, %cst_57 [0] : vector<8x32xf32> to vector<32xf32>
    %129 = vector.shape_cast %128 : vector<32xf32> to vector<1x32xf32>
    %cst_58 = arith.constant 8.000000e+00 : f32
    %130 = vector.broadcast %cst_58 : f32 to vector<1x32xf32>
    %131 = arith.divf %129, %130 : vector<1x32xf32>
    %132 = vector.broadcast %131 : vector<1x32xf32> to vector<8x32xf32>
    %133 = arith.subf %127, %132 : vector<8x32xf32>
    %134 = arith.mulf %133, %133 : vector<8x32xf32>
    %cst_59 = arith.constant dense<0.000000e+00> : vector<32xf32>
    %135 = vector.multi_reduction <add>, %134, %cst_59 [0] : vector<8x32xf32> to vector<32xf32>
    %136 = vector.shape_cast %135 : vector<32xf32> to vector<1x32xf32>
    %cst_60 = arith.constant 8.000000e+00 : f32
    %137 = vector.broadcast %cst_60 : f32 to vector<1x32xf32>
    %138 = arith.divf %136, %137 : vector<1x32xf32>
    %139 = vector.broadcast %131 : vector<1x32xf32> to vector<8x32xf32>
    %140 = arith.subf %127, %139 : vector<8x32xf32>
    %cst_61 = arith.constant 9.99999974E-6 : f32
    %141 = vector.broadcast %cst_61 : f32 to vector<1x32xf32>
    %142 = arith.addf %138, %141 : vector<1x32xf32>
    %143 = math.rsqrt %142 : vector<1x32xf32>
    %144 = vector.broadcast %143 : vector<1x32xf32> to vector<8x32xf32>
    %145 = arith.mulf %140, %144 : vector<8x32xf32>
    %146 = vector.broadcast %27 : vector<1x32xf32> to vector<8x32xf32>
    %147 = arith.mulf %145, %146 : vector<8x32xf32>
    %148 = vector.broadcast %28 : vector<1x32xf32> to vector<8x32xf32>
    %149 = arith.addf %147, %148 : vector<8x32xf32>
    %cst_62 = arith.constant 0.000000e+00 : f32
    %150 = vector.broadcast %cst_62 : f32 to vector<8x32xf32>
    %151 = arith.maximumf %149, %150 : vector<8x32xf32>
    %152 = arith.truncf %151 : vector<8x32xf32> to vector<8x32xbf16>
    %cst_63 = arith.constant dense<0.000000e+00> : vector<8x64xf32>
    %153 = tpu.matmul %152, %17, %cst_63 {dimension_numbers = #tpu.dot_dimension_numbers<[1], [0], [0], [1], [0, 0, 1, 1], [], []>} : vector<8x32xbf16>, vector<32x64xbf16>, vector<8x64xf32> -> vector<8x64xf32>
    %154 = vector.broadcast %29 : vector<1x64xf32> to vector<8x64xf32>
    %155 = arith.addf %153, %154 : vector<8x64xf32>
    %cst_64 = arith.constant dense<0.000000e+00> : vector<64xf32>
    %156 = vector.multi_reduction <add>, %155, %cst_64 [0] : vector<8x64xf32> to vector<64xf32>
    %157 = vector.shape_cast %156 : vector<64xf32> to vector<1x64xf32>
    %cst_65 = arith.constant 8.000000e+00 : f32
    %158 = vector.broadcast %cst_65 : f32 to vector<1x64xf32>
    %159 = arith.divf %157, %158 : vector<1x64xf32>
    %160 = vector.broadcast %159 : vector<1x64xf32> to vector<8x64xf32>
    %161 = arith.subf %155, %160 : vector<8x64xf32>
    %162 = arith.mulf %161, %161 : vector<8x64xf32>
    %cst_66 = arith.constant dense<0.000000e+00> : vector<64xf32>
    %163 = vector.multi_reduction <add>, %162, %cst_66 [0] : vector<8x64xf32> to vector<64xf32>
    %164 = vector.shape_cast %163 : vector<64xf32> to vector<1x64xf32>
    %cst_67 = arith.constant 8.000000e+00 : f32
    %165 = vector.broadcast %cst_67 : f32 to vector<1x64xf32>
    %166 = arith.divf %164, %165 : vector<1x64xf32>
    %167 = vector.broadcast %159 : vector<1x64xf32> to vector<8x64xf32>
    %168 = arith.subf %155, %167 : vector<8x64xf32>
    %cst_68 = arith.constant 9.99999974E-6 : f32
    %169 = vector.broadcast %cst_68 : f32 to vector<1x64xf32>
    %170 = arith.addf %166, %169 : vector<1x64xf32>
    %171 = math.rsqrt %170 : vector<1x64xf32>
    %172 = vector.broadcast %171 : vector<1x64xf32> to vector<8x64xf32>
    %173 = arith.mulf %168, %172 : vector<8x64xf32>
    %174 = vector.broadcast %30 : vector<1x64xf32> to vector<8x64xf32>
    %175 = arith.mulf %173, %174 : vector<8x64xf32>
    %176 = vector.broadcast %31 : vector<1x64xf32> to vector<8x64xf32>
    %177 = arith.addf %175, %176 : vector<8x64xf32>
    %cst_69 = arith.constant 0.000000e+00 : f32
    %178 = vector.broadcast %cst_69 : f32 to vector<8x64xf32>
    %179 = arith.maximumf %177, %178 : vector<8x64xf32>
    %180 = arith.truncf %179 : vector<8x64xf32> to vector<8x64xbf16>
    %cst_70 = arith.constant dense<0.000000e+00> : vector<8x128xf32>
    %181 = tpu.matmul %180, %19, %cst_70 {dimension_numbers = #tpu.dot_dimension_numbers<[1], [0], [0], [1], [0, 0, 1, 1], [], []>} : vector<8x64xbf16>, vector<64x128xbf16>, vector<8x128xf32> -> vector<8x128xf32>
    %182 = vector.broadcast %32 : vector<1x128xf32> to vector<8x128xf32>
    %183 = arith.addf %181, %182 : vector<8x128xf32>
    %cst_71 = arith.constant 0.000000e+00 : f32
    %184 = vector.broadcast %cst_71 : f32 to vector<8x128xf32>
    %185 = arith.subf %184, %183 : vector<8x128xf32>
    %186 = math.exp %185 : vector<8x128xf32>
    %cst_72 = arith.constant 1.000000e+00 : f32
    %187 = vector.broadcast %cst_72 : f32 to vector<8x128xf32>
    %188 = arith.addf %187, %186 : vector<8x128xf32>
    %189 = tpu.reciprocal %188 : vector<8x128xf32> -> vector<8x128xf32>
    %c0_73 = arith.constant 0 : index
    %c0_74 = arith.constant 0 : index
    %190 = vector.load %arg5[%c0_73, %c0_74] : memref<8x128xf32, #tpu.memory_space<vmem>>, vector<8x128xf32>
    tpu.vector_store %arg5[%c0_73, %c0_74], %189 {strides = array<i32>} : memref<8x128xf32, #tpu.memory_space<vmem>>, vector<8x128xf32>,
    return
  }
  func.func @transform_0(%arg0: i32) -> (i32, i32) {
    %c0_i32 = arith.constant 0 : i32
    %c0_i32_0 = arith.constant 0 : i32
    %c0_i32_1 = arith.constant 0 : i32
    return %c0_i32, %c0_i32_0 : i32, i32
  }
  func.func @transform_1(%arg0: i32) -> (i32, i32) {
    %c0_i32 = arith.constant 0 : i32
    %c0_i32_0 = arith.constant 0 : i32
    %c0_i32_1 = arith.constant 0 : i32
    return %c0_i32, %c0_i32_0 : i32, i32
  }
  func.func @transform_2(%arg0: i32) -> (i32, i32) {
    %c0_i32 = arith.constant 0 : i32
    %c0_i32_0 = arith.constant 0 : i32
    %c0_i32_1 = arith.constant 0 : i32
    return %c0_i32, %c0_i32_0 : i32, i32
  }
  func.func @transform_3(%arg0: i32) -> (i32, i32) {
    %c0_i32 = arith.constant 0 : i32
    %c0_i32_0 = arith.constant 0 : i32
    %c0_i32_1 = arith.constant 0 : i32
    return %c0_i32, %c0_i32_0 : i32, i32
  }
  func.func @transform_4(%arg0: i32) -> (i32, i32) {
    %c0_i32 = arith.constant 0 : i32
    %c0_i32_0 = arith.constant 0 : i32
    %c0_i32_1 = arith.constant 0 : i32
    return %c0_i32, %c0_i32_0 : i32, i32
  }
}

</mosaic_0001>

<bundles_post_ra>
// kernel: my_net_forward.1
= control target key start
LH: loop header
LB: loop body
LE: loop exit
PB: predicated region body
PF: predicated region fallthrough
CT: control target
= control target key end

     0   :  { %9 = vsyncpa [#allocation3], 0  ;;  %s2967_s18 = smov [#allocation2]   ;;  %s2968_s20 = smov 128   ;;  %s4952_s0 = inlined_call_operand.vmem [shape: f32[32,128], index: 0, kind: input, shape index: {}]   ;;  %s4953_s1 = inlined_call_operand.vmem [shape: f32[32,32], index: 1, kind: input, shape index: {}]   ;;  %s4954_s2 = inlined_call_operand.vmem [shape: f32[8,32], index: 2, kind: input, shape index: {}]   ;;  %s4955_s3 = inlined_call_operand.hbm [shape: f32[784,128], index: 3, kind: input, shape index: {}]   ;;  %s4956_s4 = inlined_call_operand.vmem [shape: f32[8,128], index: 4, kind: output, shape index: {}]  }
   0x1   :  { %s20_s17 = sshll.u32 %s4955_s3, 4  ;;  %s22_s19 = sshll.u32 %s2967_s18, 4  ;;  %s21_s17 = int_to_ptr.hbm [resolvable:$true] %s20_s17  ;;  %s23_s19 = int_to_ptr.vmem [resolvable:$true] %s22_s19 }
   0x2   :  { %s2969_s21 = smov 8  }
   0x3   :  { %28 = dma.hbm_to_vmem [thread:$0]  %s21_s17, 12544, %s23_s19, [#allocation3], %s2968_s20, %s2968_s20, %s2969_s21  }
   0x4   :  { %2965 = dma.done.wait [#allocation3], 12544  }
   0x5   :  { %2966 = vsyncadd [#allocation3], 4294954752  ;;  %v248_v0 = vlaneseq  ;;  %v48_v2 = vld [vmem:[#allocation2 + $0x70] sm:$0xff]  ;;  %v49_v3 = vld [vmem:[#allocation2 + $0x78] sm:$0xff]  ;;  %vm217_vm0 = vcmask 523264  }
   0x6   :  { %v3007_v4 = vld [vmem:[%s4953_s1] sm:$0xff]  ;;  %v57_v5 = vpack.c.bf16 %v49_v3, %v48_v2  ;;  %v47_v9 = vld [vmem:[#allocation2 + $0x68] sm:$0xff]  ;;  %v44_v11 = vld [vmem:[#allocation2 + $0x50] sm:$0xff] }
   0x7   :  { %v2999_v1 = vshrl.u32 %v248_v0, 7  ;;  %v3010_v6 = vperm.slane %v3007_v4, 2  ;;  %v3013_v7 = vperm.slane %v3007_v4, 1  ;;  %v46_v8 = vld [vmem:[#allocation2 + $0x60] sm:$0xff]  ;;  %v45_v12 = vld [vmem:[#allocation2 + $0x58] sm:$0xff]  ;;  %v43_v14 = vld [vmem:[#allocation2 + $0x48] sm:$0xff] }
   0x8   :  { %188 = vmatpush.bf16.msra.mxu0 %v57_v5  ;;  %v56_v10 = vpack.c.bf16 %v47_v9, %v46_v8  ;;  %v42_v13 = vld [vmem:[#allocation2 + $0x40] sm:$0xff]  ;;  %v55_v15 = vpack.c.bf16 %v45_v12, %v44_v11  ;;  %v40_v18 = vld [vmem:[#allocation2 + $0x30] sm:$0xff]  ;;  %v41_v19 = vld [vmem:[#allocation2 + $0x38] sm:$0xff]  ;;  %v3025_v26 = vperm.slane %v3007_v4, 0  ;;  %v3029_v30 = vperm.slane %v3007_v4, 3 }
   0x9   :  { %2831 = vset.pattern.permute.xlu2 %v2999_v1  ;;  %2830 = vset.pattern.permute.xlu1 %v2999_v1  ;;  %v3018_v16 = vadd.s32 8, %v2999_v1  ;;  %v54_v17 = vpack.c.bf16 %v43_v14, %v42_v13  ;;  %v53_v20 = vpack.c.bf16 %v41_v19, %v40_v18  ;;  %v38_v21 = vld [vmem:[#allocation2 + $0x20] sm:$0xff]  ;;  %v39_v22 = vld [vmem:[#allocation2 + $0x28] sm:$0xff]  ;;  %v36_v24 = vld [vmem:[#allocation2 + $0x10] sm:$0xff]  ;;  %v3040_v34 = vperm.slane %v3007_v4, 4 }
   0xa   :  { %2829 = vset.pattern.permute.xlu0 %v2999_v1  ;;  %v52_v23 = vpack.c.bf16 %v39_v22, %v38_v21  ;;  %v37_v25 = vld [vmem:[#allocation2 + $0x18] sm:$0xff]  ;;  %v34_v28 = vld [vmem:[#allocation2] sm:$0xff]  ;;  %v35_v29 = vld [vmem:[#allocation2 + $0x8] sm:$0xff]  ;;  %v3055_v38 = vperm.slane %v3007_v4, 5  ;;  %v3070_v43 = vperm.slane %v3007_v4, 6  ;;  %v3090_v47 = vperm.slane %v3007_v4, 7 }
   0xb   :  { %v51_v27 = vpack.c.bf16 %v37_v25, %v36_v24  ;;  %v50_v31 = vpack.c.bf16 %v35_v29, %v34_v28  ;;  %v182_v32 = vld [vmem:[%s4952_s0] sm:$0xff]  ;;  %v183_v33 = vld [vmem:[%s4952_s0 + $0x8] sm:$0xff]  ;;  %v184_v39 = vld [vmem:[%s4952_s0 + $0x10] sm:$0xff]  ;;  %v3160_v11 = vadd.s32 24, %v2999_v1 }
   0xc   :  { %189 = vmatpush.bf16.msra.mxu0 %v56_v10  ;;  %v186_v35 = vpack.c.bf16 %v183_v33, %v182_v32  ;;  %v3046_v36 = vld [vmem:[%s4953_s1 + $0x8] sm:$0xff]  ;;  %v185_v40 = vld [vmem:[%s4952_s0 + $0x18] sm:$0xff]  ;;  %v3075_v44 = vld [vmem:[%s4953_s1 + $0x10] sm:$0xff] }
   0xd   :  { %v3051_v37 = vperm.slane %v3046_v36, 1  ;;  %v3066_v41 = vperm.slane %v3046_v36, 6  ;;  %v187_v42 = vpack.c.bf16 %v185_v40, %v184_v39  ;;  %v3080_v45 = vperm.slane %v3075_v44, 1  ;;  %v3095_v48 = vld [vmem:[%s4953_s1 + $0x18] sm:$0xff]  ;;  %v64_v57 = vld [vmem:[#allocation2 + $0xb0] sm:$0xff]  ;;  %v62_v61 = vld [vmem:[#allocation2 + $0xa0] sm:$0xff] }
   0xe   :  { %v3086_v46 = vperm.slane %v3075_v44, 6  ;;  %v3100_v49 = vperm.slane %v3095_v48, 3  ;;  %v3104_v50 = vperm.slane %v3046_v36, 0  ;;  %v3113_v51 = vperm.slane %v3046_v36, 2  ;;  %v65_v58 = vld [vmem:[#allocation2 + $0xb8] sm:$0xff]  ;;  %v63_v62 = vld [vmem:[#allocation2 + $0xa8] sm:$0xff] }
   0xf   :  { %v3119_v52 = vperm.slane %v3046_v36, 3  ;;  %v3127_v53 = vperm.slane %v3075_v44, 0  ;;  %v3131_v54 = vperm.slane %v3046_v36, 4  ;;  %v3136_v55 = vperm.slane %v3075_v44, 2  ;;  %v60_v0 = vld [vmem:[#allocation2 + $0x90] sm:$0xff]  ;;  %v61_v2 = vld [vmem:[#allocation2 + $0x98] sm:$0xff] }
  0x10   :  { %190 = vmatpush.bf16.msra.mxu0 %v55_v15  ;;  %5235 = vst [vmem:[#allocation5_spill] sm:$0xff] %v3086_v46  ;;  %v3140_v56 = vperm.slane %v3046_v36, 5  ;;  %v3145_v59 = vperm.slane %v3075_v44, 7  ;;  %v69_v60 = vpack.c.bf16 %v65_v58, %v64_v57  ;;  %v68_v63 = vpack.c.bf16 %v63_v62, %v62_v61  ;;  %v58_v5 = vld [vmem:[#allocation2 + $0x80] sm:$0xff]  ;;  %v59_v8 = vld [vmem:[#allocation2 + $0x88] sm:$0xff]  ;;  %v162_v29 = vld [vmem:[#allocation2 + $0x2b0] sm:$0xff] }
  0x11   :  { %302 = vperm.xlu2 %2831, %v3010_v6   ;;  %277 = vperm.xlu1 %2830, %v3013_v7   ;;  %v3151_v3 = vperm.slane %v3095_v48, 4  ;;  %v67_v4 = vpack.c.bf16 %v61_v2, %v60_v0  ;;  %v3155_v9 = vperm.slane %v3046_v36, 7  ;;  %v66_v10 = vpack.c.bf16 %v59_v8, %v58_v5  ;;  %v160_v14 = vld [vmem:[#allocation2 + $0x2a0] sm:$0xff]  ;;  %v161_v18 = vld [vmem:[#allocation2 + $0x2a8] sm:$0xff]  ;;  %v163_v33 = vld [vmem:[#allocation2 + $0x2b8] sm:$0xff] }
  0x12   :  { %252 = vperm.xlu0 %2829, %v3025_v26   ;;  %5236 = vst [vmem:[#allocation6_spill] sm:$0xff] %v3145_v59  ;;  %228 = vmatpush.bf16.msra.mxu1 %v69_v60  ;;  %v3172_v15 = vadd.s32 16, %v2999_v1 }
  0x14   :  { %191 = vmatpush.bf16.msra.mxu0 %v54_v17 }
  0x16   :  { %229 = vmatpush.bf16.msra.mxu1 %v68_v63 }
  0x18   :  { %192 = vmatpush.bf16.msra.mxu0 %v53_v20 }
  0x19   :  { %2834 = vset.pattern.permute.xlu2 %v3018_v16  ;;  %2832 = vset.pattern.permute.xlu1 %v3018_v16 }
  0x1a   :  { %352 = vperm.xlu0 %2829, %v3040_v34   ;;  %230 = vmatpush.bf16.msra.mxu1 %v67_v4 }
  0x1c   :  { %193 = vmatpush.bf16.msra.mxu0 %v52_v23 }
  0x1e   :  { %231 = vmatpush.bf16.msra.mxu1 %v66_v10 }
  0x20   :  { %194 = vmatpush.bf16.msra.mxu0 %v51_v27  ;;  %v3186_v27 = vperm.slane %v3075_v44, 3 }
  0x21   :  { %308 = vperm.xlu2 %2834, %v3010_v6   ;;  %283 = vperm.xlu1 %2832, %v3013_v7  }
  0x22   :  { %477 = vperm.xlu0 %2829, %v3051_v37   ;;  %1973 = vmatpush.bf16.msrb.mxu1 %v69_v60 }
  0x24   :  { %195 = vmatpush.bf16.msra.mxu0 %v50_v31 }
  0x26   :  { %1974 = vmatpush.bf16.msrb.mxu1 %v68_v63 }
  0x27   :  { %196 = vmatmul.bf16.vlgmr.msra.gmra.mxu0 %v186_v35 }
  0x29   :  { %333 = vperm.xlu2 %2834, %v3029_v30   ;;  %2833 = vset.pattern.permute.xlu1 %v2999_v1 }
  0x2a   :  { %602 = vperm.xlu0 %2829, %v3066_v41   ;;  %1975 = vmatpush.bf16.msrb.mxu1 %v67_v4 }
  0x2e   :  { %1976 = vmatpush.bf16.msrb.mxu1 %v66_v10 }
  0x31   :  { %2836 = vset.pattern.permute.xlu2 %v2999_v1  ;;  %327 = vperm.xlu1 %2833, %v3029_v30  }
  0x32   :  { %677 = vperm.xlu0 %2829, %v3080_v45  }
  0x37   :  { %201 = vmatmul.bf16.gmra.mxu0 %v187_v42 }
  0x39   :  { %377 = vperm.xlu2 %2836, %v3055_v38   ;;  %2835 = vset.pattern.permute.xlu1 %v3018_v16 }
  0x3a   :  { %802 = vperm.xlu0 %2829, %v3086_v46  }
  0x41   :  { %402 = vperm.xlu2 %2836, %v3070_v43   ;;  %358 = vperm.xlu1 %2835, %v3040_v34  }
  0x42   :  { %927 = vperm.xlu0 %2829, %v3100_v49  }
  0x49   :  { %2838 = vset.pattern.permute.xlu2 %v3018_v16  ;;  %383 = vperm.xlu1 %2835, %v3055_v38  }
  0x4a   :  { %2879 = vset.pattern.permute.xlu0 %v3018_v16 }
  0x51   :  { %433 = vperm.xlu2 %2838, %v3090_v47   ;;  %2837 = vset.pattern.permute.xlu1 %v2999_v1 }
  0x52   :  { %258 = vperm.xlu0 %2879, %v3025_v26  }
  0x59   :  { %458 = vperm.xlu2 %2838, %v3104_v50   ;;  %427 = vperm.xlu1 %2837, %v3090_v47  }
  0x5a   :  { %408 = vperm.xlu0 %2879, %v3070_v43  }
  0x61   :  { %2840 = vset.pattern.permute.xlu2 %v2999_v1  ;;  %452 = vperm.xlu1 %2837, %v3104_v50  }
  0x62   :  { %533 = vperm.xlu0 %2879, %v3119_v52  }
  0x69   :  { %502 = vperm.xlu2 %2840, %v3113_v51   ;;  %2839 = vset.pattern.permute.xlu1 %v3018_v16 }
  0x6a   :  { %658 = vperm.xlu0 %2879, %v3127_v53  }
  0x6b   :  { %v3179_v24 = vpop.permute.xlu2 %302 }
  0x6c   :  { %5239 = vst [vmem:[#allocation9_spill] sm:$0xff] %v3179_v24 }
  0x71   :  { %527 = vperm.xlu2 %2840, %v3119_v52   ;;  %483 = vperm.xlu1 %2839, %v3051_v37  }
  0x72   :  { %708 = vperm.xlu0 %2879, %v3136_v55  }
  0x79   :  { %2842 = vset.pattern.permute.xlu2 %v3018_v16  ;;  %508 = vperm.xlu1 %2839, %v3113_v51  }
  0x7a   :  { %833 = vperm.xlu0 %2879, %v3145_v59  }
  0x7b   :  { %v3198_v35 = vpop.permute.xlu2 %308 }
  0x7c   :  { %5242 = vst [vmem:[#allocation12_spill] sm:$0xff] %v3198_v35 }
  0x81   :  { %558 = vperm.xlu2 %2842, %v3131_v54   ;;  %2841 = vset.pattern.permute.xlu1 %v2999_v1 }
  0x82   :  { %958 = vperm.xlu0 %2879, %v3151_v3  }
  0x83   :  { %v3201_v42 = vpop.permute.xlu1 %277  ;;  %v3212_v60 = vpop.permute.xlu2 %333 }
  0x84   :  { %v3169_v13 = vpop.permute.xlu0 %252  ;;  %5243 = vst [vmem:[#allocation13_spill] sm:$0xff] %v3201_v42 }
  0x85   :  { %5237 = vst [vmem:[#allocation7_spill] sm:$0xff] %v3169_v13  ;;  %vm1047_vm15 = vcmp.gt.f32.partialorder %v3169_v13, 0.0 }
  0x86   :  { %5246 = vst [vmem:[#allocation16_spill] sm:$0xff] %v3212_v60 }
  0x89   :  { %583 = vperm.xlu2 %2842, %v3140_v56   ;;  %552 = vperm.xlu1 %2841, %v3131_v54  }
  0x8a   :  { %2884 = vset.pattern.permute.xlu0 %v3160_v11 }
  0x8c   :  { %v3177_v22 = vpop.permute.xlu0 %352 }
  0x8d   :  { %5238 = vst [vmem:[#allocation8_spill] sm:$0xff] %v3177_v22 }
  0x91   :  { %2844 = vset.pattern.permute.xlu2 %v2999_v1  ;;  %577 = vperm.xlu1 %2841, %v3140_v56  }
  0x92   :  { %395 = vperm.xlu0 %2884, %v3055_v38  }
  0x93   :  { %v3214_v61 = vpop.permute.xlu1 %283  ;;  %v3221_v63 = vpop.permute.xlu2 %377 }
  0x94   :  { %v3191_v31 = vpop.permute.xlu0 %477  ;;  %5247 = vst [vmem:[#allocation17_spill] sm:$0xff] %v3214_v61 }
  0x95   :  { %5241 = vst [vmem:[#allocation11_spill] sm:$0xff] %v3191_v31 }
  0x96   :  { %5249 = vst [vmem:[#allocation19_spill] sm:$0xff] %v3221_v63 }
  0x99   :  { %627 = vperm.xlu2 %2844, %v3155_v9   ;;  %2843 = vset.pattern.permute.xlu1 %v3018_v16 }
  0x9a   :  { %520 = vperm.xlu0 %2884, %v3113_v51  }
  0x9b   :  { %v3230_v4 = vpop.permute.xlu2 %402 }
  0x9c   :  { %5252 = vst [vmem:[#allocation22_spill] sm:$0xff] %v3230_v4 }
  0xa1   :  { %652 = vperm.xlu2 %2844, %v3127_v53   ;;  %608 = vperm.xlu1 %2843, %v3066_v41  }
  0xa2   :  { %645 = vperm.xlu0 %2884, %v3155_v9  }
  0xa3   :  { %v3223_v0 = vpop.permute.xlu1 %327 }
  0xa4   :  { %v197_v12 = vpop.f32.mrf.mxu0  ;;  %5250 = vst [vmem:[#allocation20_spill] sm:$0xff] %v3223_v0 }
  0xa5   :  { %v198_v17 = vadd.f32 %v197_v12, %v160_v14 }
  0xa7   :  { %v207_v20 = vmax.f32 %v198_v17, 0.0 }
  0xa9   :  { %2846 = vset.pattern.permute.xlu2 %v3160_v11  ;;  %633 = vperm.xlu1 %2843, %v3155_v9  }
  0xaa   :  { %745 = vperm.xlu0 %2884, %v3186_v27  }
  0xab   :  { %v3237_v8 = vpop.permute.xlu2 %433 }
  0xac   :  { %v199_v19 = vpop.f32.mrf.mxu0  ;;  %5254 = vst [vmem:[#allocation24_spill] sm:$0xff] %v3237_v8 }
  0xad   :  { %v200_v21 = vadd.f32 %v199_v19, %v161_v18 }
  0xaf   :  { %v208_v23 = vmax.f32 %v200_v21, 0.0 }
  0xb1   :  { %2845 = vset.pattern.permute.xlu1 %v3172_v15  ;;  %270 = vperm.xlu2 %2846, %v3025_v26   ;;  %v3181_v25 = vpack.c.bf16 %v208_v23, %v207_v20  ;;  %v3272_v23 = vperm.slane %v3075_v44, 4 }
  0xb3   :  { %5240 = vst [vmem:[#allocation10_spill] sm:$0xff] %v3181_v25  ;;  %2803 = vmatmul.msk.bf16.vlgmr.msra.gmra.mxu1 %vm217_vm0, %v3181_v25  ;;  %v3232_v5 = vpop.permute.xlu1 %358  ;;  %v3246_v14 = vpop.permute.xlu2 %458 }
  0xb4   :  { %v202_v28 = vpop.f32.mrf.mxu0  ;;  %5253 = vst [vmem:[#allocation23_spill] sm:$0xff] %v3232_v5 }
  0xb5   :  { %v203_v32 = vadd.f32 %v202_v28, %v162_v29  ;;  %5257 = vst [vmem:[#allocation27_spill] sm:$0xff] %v3246_v14 }
  0xb6   :  { %5265 = vst [vmem:[#allocation35_spill] sm:$0xff] %v3272_v23 }
  0xb7   :  { %v209_v39 = vmax.f32 %v203_v32, 0.0 }
  0xb9   :  { %295 = vperm.xlu2 %2846, %v3013_v7   ;;  %264 = vperm.xlu1 %2845, %v3025_v26   ;;  %v3196_v26 = vperm.slane %v3095_v48, 0 }
  0xbb   :  { %870 = vperm.xlu0 %2884, %v3196_v26   ;;  %v3241_v12 = vpop.permute.xlu1 %383 }
  0xbc   :  { %v204_v36 = vpop.f32.mrf.mxu0  ;;  %5256 = vst [vmem:[#allocation26_spill] sm:$0xff] %v3241_v12 }
  0xbd   :  { %v205_v40 = vadd.f32 %v204_v36, %v163_v33 }
  0xbf   :  { %v210_v57 = vmax.f32 %v205_v40, 0.0 }
  0xc1   :  { %2848 = vset.pattern.permute.xlu2 %v3172_v15  ;;  %289 = vperm.xlu1 %2845, %v3013_v7   ;;  %v3203_v58 = vpack.c.bf16 %v210_v57, %v209_v39  ;;  %v3207_v7 = vpop.permute.xlu0 %602 }
  0xc2   :  { %5245 = vst [vmem:[#allocation15_spill] sm:$0xff] %v3207_v7 }
  0xc3   :  { %5244 = vst [vmem:[#allocation14_spill] sm:$0xff] %v3203_v58  ;;  %2804 = vmatmul.msk.bf16.gmra.mxu1 %vm217_vm0, %v3203_v58  ;;  %2903 = vset.pattern.permute.xlu0 %v3172_v15  ;;  %v3255_v18 = vpop.permute.xlu2 %502 }
  0xc4   :  { %5260 = vst [vmem:[#allocation30_spill] sm:$0xff] %v3255_v18 }
  0xc9   :  { %314 = vperm.xlu2 %2848, %v3010_v6   ;;  %2847 = vset.pattern.permute.xlu1 %v3018_v16  ;;  %v3218_v62 = vpop.permute.xlu0 %677 }
  0xca   :  { %5248 = vst [vmem:[#allocation18_spill] sm:$0xff] %v3218_v62 }
  0xcb   :  { %364 = vperm.xlu0 %2903, %v3040_v34   ;;  %v3248_v17 = vpop.permute.xlu1 %427 }
  0xcc   :  { %5258 = vst [vmem:[#allocation28_spill] sm:$0xff] %v3248_v17 }
  0xd1   :  { %2850 = vset.pattern.permute.xlu2 %v2999_v1  ;;  %683 = vperm.xlu1 %2847, %v3080_v45   ;;  %v3228_v2 = vpop.permute.xlu0 %802 }
  0xd2   :  { %5251 = vst [vmem:[#allocation21_spill] sm:$0xff] %v3228_v2 }
  0xd3   :  { %489 = vperm.xlu0 %2903, %v3051_v37   ;;  %v3259_v19 = vpop.permute.xlu1 %452 }
  0xd4   :  { %5261 = vst [vmem:[#allocation31_spill] sm:$0xff] %v3259_v19 }
  0xd9   :  { %702 = vperm.xlu2 %2850, %v3136_v55   ;;  %2849 = vset.pattern.permute.xlu1 %v3160_v11  ;;  %v3239_v10 = vpop.permute.xlu0 %927 }
  0xda   :  { %5255 = vst [vmem:[#allocation25_spill] sm:$0xff] %v3239_v10 }
  0xdb   :  { %614 = vperm.xlu0 %2903, %v3066_v41  }
  0xe1   :  { %2852 = vset.pattern.permute.xlu2 %v3160_v11  ;;  %320 = vperm.xlu1 %2849, %v3010_v6   ;;  %v3252_v6 = vpop.permute.xlu0 %258 }
  0xe2   :  { %5259 = vst [vmem:[#allocation29_spill] sm:$0xff] %v3252_v6  ;;  %vm1048_vm14 = vcmp.gt.f32.partialorder %v3252_v6, 0.0 }
  0xe3   :  { %689 = vperm.xlu0 %2903, %v3080_v45   ;;  %v3268_v21 = vpop.permute.xlu1 %483 }
  0xe4   :  { %5264 = vst [vmem:[#allocation34_spill] sm:$0xff] %v3268_v21 }
  0xe9   :  { %345 = vperm.xlu2 %2852, %v3029_v30   ;;  %2851 = vset.pattern.permute.xlu1 %v3172_v15  ;;  %v3261_v20 = vpop.permute.xlu0 %408 }
  0xea   :  { %5262 = vst [vmem:[#allocation32_spill] sm:$0xff] %v3261_v20 }
  0xeb   :  { %814 = vperm.xlu0 %2903, %v3086_v46   ;;  %v3280_v32 = vpop.permute.xlu1 %508 }
  0xec   :  { %5268 = vst [vmem:[#allocation38_spill] sm:$0xff] %v3280_v32 }
  0xf1   :  { %2854 = vset.pattern.permute.xlu2 %v3018_v16  ;;  %339 = vperm.xlu1 %2851, %v3029_v30   ;;  %v3266_v30 = vpop.permute.xlu2 %527  ;;  %v3274_v28 = vpop.permute.xlu0 %533 }
  0xf2   :  { %5263 = vst [vmem:[#allocation33_spill] sm:$0xff] %v3266_v30 }
  0xf3   :  { %939 = vperm.xlu0 %2903, %v3100_v49   ;;  %5266 = vst [vmem:[#allocation36_spill] sm:$0xff] %v3274_v28 }
  0xf9   :  { %733 = vperm.xlu2 %2854, %v3186_v27   ;;  %2853 = vset.pattern.permute.xlu1 %v2999_v1  ;;  %v3278_v29 = vpop.permute.xlu2 %558  ;;  %v3282_v33 = vpop.permute.xlu0 %658 }
  0xfa   :  { %5267 = vst [vmem:[#allocation37_spill] sm:$0xff] %v3278_v29 }
  0xfb   :  { %2908 = vset.pattern.permute.xlu0 %v3160_v11  ;;  %5269 = vst [vmem:[#allocation39_spill] sm:$0xff] %v3282_v33  ;;  %v3288_v39 = vpop.permute.xlu1 %552 }
  0xfc   :  { %5271 = vst [vmem:[#allocation41_spill] sm:$0xff] %v3288_v39 }
 0x101   :  { %2856 = vset.pattern.permute.xlu2 %v2999_v1  ;;  %727 = vperm.xlu1 %2853, %v3186_v27   ;;  %v3286_v36 = vpop.permute.xlu2 %583  ;;  %v3292_v40 = vpop.permute.xlu0 %708 }
 0x102   :  { %5270 = vst [vmem:[#allocation40_spill] sm:$0xff] %v3286_v36 }
 0x103   :  { %5272 = vst [vmem:[#allocation42_spill] sm:$0xff] %v3292_v40  ;;  %v3296_v10 = vpop.permute.xlu1 %577 }
 0x104   :  { %5274 = vst [vmem:[#allocation44_spill] sm:$0xff] %v3296_v10 }
 0x109   :  { %752 = vperm.xlu2 %2856, %v3272_v23   ;;  %2855 = vset.pattern.permute.xlu1 %v3160_v11  ;;  %v3294_v57 = vpop.permute.xlu2 %627  ;;  %v3300_v2 = vpop.permute.xlu0 %833  ;;  %v5337_v13 = vld [vmem:[#allocation40_spill] sm:$0xff] }
 0x10a   :  { %5273 = vst [vmem:[#allocation43_spill] sm:$0xff] %v3294_v57 }
 0x10b   :  { %5275 = vst [vmem:[#allocation45_spill] sm:$0xff] %v3300_v2 }
 0x111   :  { %2858 = vset.pattern.permute.xlu2 %v3172_v15  ;;  %370 = vperm.xlu1 %2855, %v3040_v34   ;;  %v3303_v34 = vperm.slane %v3075_v44, 5  ;;  %v3305_v62 = vpop.permute.xlu2 %652  ;;  %v3311_v40 = vpop.permute.xlu0 %958  ;;  %v164_v44 = vld [vmem:[#allocation2 + $0x2c0] sm:$0xff] }
 0x112   :  { %5277 = vst [vmem:[#allocation47_spill] sm:$0xff] %v3305_v62 }
 0x113   :  { %5276 = vst [vmem:[#allocation46_spill] sm:$0xff] %v3303_v34 }
 0x114   :  { %5279 = vst [vmem:[#allocation49_spill] sm:$0xff] %v3311_v40 }
 0x119   :  { %389 = vperm.xlu2 %2858, %v3055_v38   ;;  %2857 = vset.pattern.permute.xlu1 %v3018_v16  ;;  %v3307_v38 = vpop.permute.xlu1 %608  ;;  %v3313_v33 = vpop.permute.xlu2 %270 }
 0x11a   :  { %5278 = vst [vmem:[#allocation48_spill] sm:$0xff] %v3307_v38  ;;  %v3319_v10 = vpop.permute.xlu0 %395  ;;  %vm1050_vm6 = vcmp.gt.f32.partialorder %v3313_v33, 0.0 }
 0x11b   :  { %5280 = vst [vmem:[#allocation50_spill] sm:$0xff] %v3313_v33  ;;  %vm5015_vm4 = vcmp.gt.f32.partialorder %v3319_v10, 0.0 }
 0x11c   :  { %5282 = vst [vmem:[#allocation52_spill] sm:$0xff] %v3319_v10 }
 0x121   :  { %2860 = vset.pattern.permute.xlu2 %v3018_v16  ;;  %758 = vperm.xlu1 %2857, %v3272_v23   ;;  %v3315_v57 = vpop.permute.xlu1 %633  ;;  %v3321_v62 = vpop.permute.xlu2 %295  ;;  %v165_v23 = vld [vmem:[#allocation2 + $0x2c8] sm:$0xff] }
 0x122   :  { %5281 = vst [vmem:[#allocation51_spill] sm:$0xff] %v3315_v57  ;;  %v3335_v39 = vpop.permute.xlu0 %520  ;;  %vm1054_vm7 = vcmp.gt.f32.partialorder %v3321_v62, 0.0 }
 0x123   :  { %5283 = vst [vmem:[#allocation53_spill] sm:$0xff] %v3321_v62  ;;  %vm5012_vm5 = vcmp.gt.f32.partialorder %v3335_v39, 0.0 }
 0x124   :  { %5286 = vst [vmem:[#allocation56_spill] sm:$0xff] %v3335_v39 }
 0x129   :  { %783 = vperm.xlu2 %2860, %v3303_v34   ;;  %2859 = vset.pattern.permute.xlu1 %v2999_v1 }
 0x12b   :  { %v3323_v38 = vpop.permute.xlu1 %264 }
 0x12c   :  { %5284 = vst [vmem:[#allocation54_spill] sm:$0xff] %v3323_v38  ;;  %vm1049_vm2 = vcmp.gt.f32.partialorder %v3323_v38, 0.0 }
 0x130   :  { %v233_v2 = vpop.f32.mrf.mxu1 }
 0x131   :  { %2862 = vset.pattern.permute.xlu2 %v3160_v11  ;;  %777 = vperm.xlu1 %2859, %v3303_v34   ;;  %v234_v36 = vadd.f32 %v233_v2, %v164_v44  ;;  %v3331_v34 = vpop.permute.xlu2 %314 }
 0x132   :  { %5285 = vst [vmem:[#allocation55_spill] sm:$0xff] %v3331_v34  ;;  %vm5030_vm1 = vcmp.gt.f32.partialorder %v3331_v34, 0.0 }
 0x133   :  { %v3327_v40 = vmax.f32 %v234_v36, 0.0  ;;  %v3337_v29 = vpop.permute.xlu1 %289 }
 0x134   :  { %5287 = vst [vmem:[#allocation57_spill] sm:$0xff] %v3337_v29  ;;  %vm1053_vm3 = vcmp.gt.f32.partialorder %v3337_v29, 0.0  ;;  %v3365_v29 = vpop.permute.xlu0 %645 }
 0x135   :  { %v1179_v57 = vrot.slane %v3327_v40, 1  ;;  %v1180_v7 = vrot.slane %v3327_v40, 2  ;;  %v3340_v2 = vperm.slane %v3327_v40, 0  ;;  %5288 = vst [vmem:[#allocation58_spill] sm:$0xff] %v3365_v29  ;;  %vm5011_vm8 = vcmp.gt.f32.partialorder %v3365_v29, 0.0 }
 0x137   :  { %v3342_v44 = vperm.slane %v1179_v57, 0  ;;  %v3344_v36 = vperm.slane %v1180_v7, 0 }
 0x138   :  { %v235_v30 = vpop.f32.mrf.mxu1 }
 0x139   :  { %420 = vperm.xlu2 %2862, %v3070_v43   ;;  %2861 = vset.pattern.permute.xlu1 %v3172_v15  ;;  %v1533_v28 = vsel %vm1053_vm3, %v3342_v44, 0.0  ;;  %v1537_v7 = vsel %vm5030_vm1, %v3344_v36, 0.0  ;;  %v236_v57 = vadd.f32 %v235_v30, %v165_v23  ;;  %v3369_v34 = vpop.permute.xlu2 %702  ;;  %v1183_v30 = vrot.slane %v3327_v40, 5 }
 0x13a   :  { %v1782_v18 = vsel %vm217_vm0, %v1533_v28, -inf  ;;  %v1784_v21 = vsel %vm217_vm0, %v1537_v7, -inf  ;;  %5289 = vst [vmem:[#allocation59_spill] sm:$0xff] %v3369_v34 }
 0x13b   :  { %v3363_v31 = vmax.f32 %v236_v57, 0.0 }
 0x13c   :  { %v3391_v57 = vpop.permute.xlu0 %745 }
 0x13d   :  { %v1187_v28 = vrot.slane %v3363_v31, 2  ;;  %v1192_v7 = vrot.slane %v3363_v31, 7  ;;  %5292 = vst [vmem:[#allocation62_spill] sm:$0xff] %v3391_v57 }
 0x13f   :  { %v3403_v39 = vperm.slane %v1192_v7, 0 }
 0x141   :  { %2864 = vset.pattern.permute.xlu2 %v3172_v15  ;;  %414 = vperm.xlu1 %2861, %v3070_v43   ;;  %v1529_v43 = vsel %vm1049_vm2, %v3340_v2, 0.0  ;;  %5295 = vst [vmem:[#allocation65_spill] sm:$0xff] %v3403_v39  ;;  %v1590_v7 = vsel %vm5011_vm8, %v3403_v39, 0.0  ;;  %vm1052_vm8 = vcmp.gt.f32.partialorder %v3214_v61, 0.0 }
 0x142   :  { %v1781_v32 = vsel %vm217_vm0, %v1529_v43, -inf }
 0x143   :  { %v1783_v38 = vmax.f32 %v1781_v32, %v1782_v18  ;;  %v3372_v23 = vpop.permute.xlu1 %683  ;;  %v3379_v18 = vperm.slane %v1183_v30, 0  ;;  %v1181_v32 = vrot.slane %v3327_v40, 3  ;;  %v3395_v30 = vpop.permute.xlu2 %345 }
 0x144   :  { %5290 = vst [vmem:[#allocation60_spill] sm:$0xff] %v3372_v23  ;;  %v1873_v23 = vsel %vm217_vm0, %v1590_v7, -inf  ;;  %vm5018_vm10 = vcmp.gt.f32.partialorder %v3395_v30, 0.0  ;;  %v3430_v39 = vpop.permute.xlu0 %870 }
 0x145   :  { %v3367_v19 = vmax.f32 %v1783_v38, %v1784_v21  ;;  %v3381_v21 = vperm.slane %v1187_v28, 0  ;;  %v1550_v38 = vsel %vm5015_vm4, %v3379_v18, 0.0  ;;  %5294 = vst [vmem:[#allocation64_spill] sm:$0xff] %v3395_v30  ;;  %v3401_v10 = vperm.slane %v1181_v32, 0  ;;  %v75_v30 = vld [vmem:[#allocation2 + $0xe8] sm:$0xff] }
 0x146   :  { %v1853_v28 = vsel %vm217_vm0, %v1550_v38, -inf  ;;  %v1530_v38 = vsel %vm1050_vm6, %v3340_v2, 0.0  ;;  %5296 = vst [vmem:[#allocation66_spill] sm:$0xff] %v3430_v39  ;;  %v73_v39 = vld [vmem:[#allocation2 + $0xd8] sm:$0xff]  ;;  %vm5157_vm4 = vcmp.gt.f32.partialorder %v3198_v35, 0.0 }
 0x147   :  { %5291 = vst [vmem:[#allocation61_spill] sm:$0xff] %v3381_v21  ;;  %v1570_v43 = vsel %vm5012_vm5, %v3381_v21, 0.0  ;;  %vm1051_vm5 = vcmp.gt.f32.partialorder %v3201_v42, 0.0 }
 0x148   :  { %v1863_v34 = vsel %vm217_vm0, %v1570_v43, -inf  ;;  %v1534_v43 = vsel %vm1054_vm7, %v3342_v44, 0.0 }
 0x149   :  { %439 = vperm.xlu2 %2864, %v3090_v47   ;;  %2863 = vset.pattern.permute.xlu1 %v3018_v16  ;;  %v1852_v32 = vmax.f32 %v1863_v34, %v1853_v28  ;;  %v1845_v33 = vsel %vm217_vm0, %v1534_v43, -inf  ;;  %v1542_v34 = vsel %vm5018_vm10, %v3401_v10, 0.0  ;;  %vm5023_vm10 = vcmp.gt.f32.partialorder %v3223_v0, 0.0 }
 0x14a   :  { %v1849_v28 = vsel %vm217_vm0, %v1542_v34, -inf }
 0x14b   :  { %v1854_v29 = vmax.f32 %v1852_v32, %v1873_v23 }
 0x14c   :  { %v3445_v23 = vpop.permute.xlu0 %364 }
 0x14d   :  { %5300 = vst [vmem:[#allocation70_spill] sm:$0xff] %v3445_v23  ;;  %vm5017_vm12 = vcmp.gt.f32.partialorder %v3445_v23, 0.0 }
 0x151   :  { %2866 = vset.pattern.permute.xlu2 %v2999_v1  ;;  %808 = vperm.xlu1 %2863, %v3086_v46  }
 0x153   :  { %v3393_v46 = vpop.permute.xlu1 %320 }
 0x154   :  { %5293 = vst [vmem:[#allocation63_spill] sm:$0xff] %v3393_v46  ;;  %vm5020_vm9 = vcmp.gt.f32.partialorder %v3393_v46, 0.0 }
 0x155   :  { %v1538_v57 = vsel %vm5020_vm9, %v3344_v36, 0.0  ;;  %vm5029_vm9 = vcmp.gt.f32.partialorder %v3232_v5, 0.0 }
 0x156   :  { %v1847_v21 = vsel %vm217_vm0, %v1538_v57, -inf }
 0x159   :  { %827 = vperm.xlu2 %2866, %v3145_v59   ;;  %2865 = vset.pattern.permute.xlu1 %v3160_v11  ;;  %v1844_v59 = vsel %vm217_vm0, %v1530_v38, -inf  ;;  %v3432_v38 = vpop.permute.xlu2 %733 }
 0x15a   :  { %v1846_v62 = vmax.f32 %v1844_v59, %v1845_v33  ;;  %5297 = vst [vmem:[#allocation67_spill] sm:$0xff] %v3432_v38  ;;  %v1182_v33 = vrot.slane %v3327_v40, 4 }
 0x15c   :  { %v1848_v46 = vmax.f32 %v1846_v62, %v1847_v21  ;;  %v3454_v21 = vperm.slane %v1182_v33, 0  ;;  %v76_v33 = vld [vmem:[#allocation2 + $0xf0] sm:$0xff] }
 0x15e   :  { %v1850_v7 = vmax.f32 %v1848_v46, %v1849_v28  ;;  %v1545_v43 = vsel %vm5017_vm12, %v3454_v21, 0.0  ;;  %vm5021_vm12 = vcmp.gt.f32.partialorder %v3212_v60, 0.0  ;;  %v5332_v60 = vld [vmem:[#allocation35_spill] sm:$0xff] }
 0x15f   :  { %v1788_v32 = vsel %vm217_vm0, %v1545_v43, -inf }
 0x160   :  { %v3436_v57 = vmax.f32 %v1854_v29, %v1850_v7 }
 0x161   :  { %2868 = vset.pattern.permute.xlu2 %v3160_v11  ;;  %445 = vperm.xlu1 %2865, %v3090_v47  }
 0x162   :  { %5298 = vst [vmem:[#allocation68_spill] sm:$0xff] %v3436_v57 }
 0x163   :  { %v3438_v59 = vpop.permute.xlu1 %339  ;;  %v3449_v46 = vpop.permute.xlu2 %752 }
 0x164   :  { %5299 = vst [vmem:[#allocation69_spill] sm:$0xff] %v3438_v59  ;;  %vm5019_vm11 = vcmp.gt.f32.partialorder %v3438_v59, 0.0  ;;  %v72_v59 = vld [vmem:[#allocation2 + $0xd0] sm:$0xff] }
 0x165   :  { %v1541_v62 = vsel %vm5019_vm11, %v3401_v10, 0.0  ;;  %5301 = vst [vmem:[#allocation71_spill] sm:$0xff] %v3449_v46  ;;  %vm5022_vm11 = vcmp.gt.f32.partialorder %v3177_v22, 0.0  ;;  %v1190_v22 = vrot.slane %v3363_v31, 5 }
 0x166   :  { %v1786_v47 = vsel %vm217_vm0, %v1541_v62, -inf  ;;  %v3491_v62 = vperm.slane %v3095_v48, 2 }
 0x167   :  { %v1787_v29 = vmax.f32 %v3367_v19, %v1786_v47  ;;  %v3740_v0 = vperm.slane %v1190_v22, 0 }
 0x169   :  { %470 = vperm.xlu2 %2868, %v3104_v50   ;;  %2867 = vset.pattern.permute.xlu1 %v3172_v15  ;;  %v3465_v28 = vmax.f32 %v1787_v29, %v1788_v32  ;;  %5335 = vst [vmem:[#allocation35_spill] sm:$0xff] %v3740_v0 }
 0x171   :  { %2870 = vset.pattern.permute.xlu2 %v3018_v16  ;;  %464 = vperm.xlu1 %2867, %v3104_v50   ;;  %v3480_v50 = vperm.slane %v3095_v48, 1 }
 0x173   :  { %v3462_v34 = vpop.permute.xlu2 %389 }
 0x174   :  { %5302 = vst [vmem:[#allocation72_spill] sm:$0xff] %v3462_v34  ;;  %vm5016_vm13 = vcmp.gt.f32.partialorder %v3462_v34, 0.0  ;;  %v77_v34 = vld [vmem:[#allocation2 + $0xf8] sm:$0xff] }
 0x175   :  { %v1549_v19 = vsel %vm5016_vm13, %v3379_v18, 0.0  ;;  %v81_v23 = vpack.c.bf16 %v77_v34, %v76_v33  ;;  %v1527_v34 = vsel %vm1047_vm15, %v3340_v2, 0.0  ;;  %vm1055_vm13 = vcmp.gt.f32.partialorder %v3179_v24, 0.0  ;;  %v5336_v24 = vld [vmem:[#allocation15_spill] sm:$0xff] }
 0x176   :  { %v3471_v7 = vsel %vm217_vm0, %v1549_v19, -inf  ;;  %v3547_v19 = vperm.slane %v3095_v48, 7  ;;  %v1655_v6 = vsel %vm217_vm0, %v1527_v34, -inf }
 0x177   :  { %5303 = vst [vmem:[#allocation73_spill] sm:$0xff] %v3471_v7  ;;  %1938 = vmatpush.bf16.msra.mxu3 %v81_v23  ;;  %v71_v7 = vld [vmem:[#allocation2 + $0xc8] sm:$0xff] }
 0x179   :  { %858 = vperm.xlu2 %2870, %v3196_v26   ;;  %2869 = vset.pattern.permute.xlu1 %v2999_v1 }
 0x181   :  { %2872 = vset.pattern.permute.xlu2 %v2999_v1  ;;  %852 = vperm.xlu1 %2869, %v3196_v26  }
 0x189   :  { %877 = vperm.xlu2 %2872, %v3480_v50   ;;  %2871 = vset.pattern.permute.xlu1 %v3160_v11 }
 0x191   :  { %2874 = vset.pattern.permute.xlu2 %v3172_v15  ;;  %495 = vperm.xlu1 %2871, %v3051_v37   ;;  %v3506_v37 = vperm.slane %v3095_v48, 5 }
 0x193   :  { %995 = vperm.xlu0 %2908, %v3506_v37  }
 0x199   :  { %514 = vperm.xlu2 %2874, %v3113_v51   ;;  %2873 = vset.pattern.permute.xlu1 %v3018_v16  ;;  %v3522_v51 = vperm.slane %v3095_v48, 6  ;;  %v79_v48 = vpack.c.bf16 %v73_v39, %v72_v59  ;;  %v1528_v39 = vsel %vm1048_vm14, %v3340_v2, 0.0  ;;  %v1536_v2 = vsel %vm5157_vm4, %v3344_v36, 0.0 }
 0x19a   :  { %v1721_v34 = vsel %vm217_vm0, %v1536_v2, -inf }
 0x1a1   :  { %2876 = vset.pattern.permute.xlu2 %v3018_v16  ;;  %883 = vperm.xlu1 %2873, %v3480_v50  }
 0x1a9   :  { %908 = vperm.xlu2 %2876, %v3491_v62   ;;  %2875 = vset.pattern.permute.xlu1 %v2999_v1 }
 0x1b1   :  { %2878 = vset.pattern.permute.xlu2 %v3160_v11  ;;  %902 = vperm.xlu1 %2875, %v3491_v62  }
 0x1b9   :  { %545 = vperm.xlu2 %2878, %v3119_v52   ;;  %2877 = vset.pattern.permute.xlu1 %v3172_v15 }
 0x1c1   :  { %2881 = vset.pattern.permute.xlu2 %v3172_v15  ;;  %539 = vperm.xlu1 %2877, %v3119_v52   ;;  %v3524_v52 = vpop.permute.xlu1 %727 }
 0x1c2   :  { %5304 = vst [vmem:[#allocation74_spill] sm:$0xff] %v3524_v52 }
 0x1c9   :  { %564 = vperm.xlu2 %2881, %v3131_v54   ;;  %2880 = vset.pattern.permute.xlu1 %v3018_v16 }
 0x1d1   :  { %2883 = vset.pattern.permute.xlu2 %v2999_v1  ;;  %933 = vperm.xlu1 %2880, %v3100_v49  }
 0x1d9   :  { %952 = vperm.xlu2 %2883, %v3151_v3   ;;  %2882 = vset.pattern.permute.xlu1 %v3160_v11 }
 0x1e1   :  { %2886 = vset.pattern.permute.xlu2 %v3160_v11  ;;  %570 = vperm.xlu1 %2882, %v3131_v54   ;;  %v3528_v54 = vpop.permute.xlu1 %370 }
 0x1e2   :  { %5305 = vst [vmem:[#allocation75_spill] sm:$0xff] %v3528_v54  ;;  %v70_v54 = vld [vmem:[#allocation2 + $0xc0] sm:$0xff] }
 0x1e9   :  { %595 = vperm.xlu2 %2886, %v3140_v56   ;;  %2885 = vset.pattern.permute.xlu1 %v3172_v15  ;;  %v3534_v47 = vpop.permute.xlu1 %758 }
 0x1ea   :  { %5307 = vst [vmem:[#allocation77_spill] sm:$0xff] %v3534_v47 }
 0x1f1   :  { %2888 = vset.pattern.permute.xlu2 %v3018_v16  ;;  %589 = vperm.xlu1 %2885, %v3140_v56   ;;  %v3530_v56 = vpop.permute.xlu2 %783  ;;  %v3540_v43 = vpop.permute.xlu1 %777 }
 0x1f2   :  { %5306 = vst [vmem:[#allocation76_spill] sm:$0xff] %v3530_v56 }
 0x1f3   :  { %5309 = vst [vmem:[#allocation79_spill] sm:$0xff] %v3540_v43 }
 0x1f9   :  { %983 = vperm.xlu2 %2888, %v3506_v37   ;;  %2887 = vset.pattern.permute.xlu1 %v2999_v1  ;;  %v3538_v29 = vpop.permute.xlu2 %420 }
 0x1fa   :  { %5308 = vst [vmem:[#allocation78_spill] sm:$0xff] %v3538_v29 }
 0x201   :  { %2890 = vset.pattern.permute.xlu2 %v2999_v1  ;;  %977 = vperm.xlu1 %2887, %v3506_v37   ;;  %v3544_v32 = vpop.permute.xlu2 %439 }
 0x209   :  { %1002 = vperm.xlu2 %2890, %v3522_v51   ;;  %2889 = vset.pattern.permute.xlu1 %v3160_v11  ;;  %v3553_v57 = vpop.permute.xlu2 %827 }
 0x20a   :  { %5310 = vst [vmem:[#allocation80_spill] sm:$0xff] %v3553_v57 }
 0x211   :  { %2892 = vset.pattern.permute.xlu2 %v3172_v15  ;;  %620 = vperm.xlu1 %2889, %v3066_v41   ;;  %v3549_v41 = vpop.permute.xlu1 %414  ;;  %v3569_v59 = vpop.permute.xlu2 %470 }
 0x212   :  { %5312 = vst [vmem:[#allocation82_spill] sm:$0xff] %v3569_v59 }
 0x219   :  { %639 = vperm.xlu2 %2892, %v3155_v9   ;;  %2891 = vset.pattern.permute.xlu1 %v3018_v16  ;;  %v74_v9 = vld [vmem:[#allocation2 + $0xe0] sm:$0xff]  ;;  %v3555_v29 = vpop.permute.xlu1 %808 }
 0x21a   :  { %5311 = vst [vmem:[#allocation81_spill] sm:$0xff] %v3555_v29 }
 0x221   :  { %2894 = vset.pattern.permute.xlu2 %v3018_v16  ;;  %1008 = vperm.xlu1 %2891, %v3522_v51   ;;  %v80_v16 = vpack.c.bf16 %v75_v30, %v74_v9  ;;  %v1532_v30 = vsel %vm1052_vm8, %v3342_v44, 0.0  ;;  %v3577_v33 = vpop.permute.xlu1 %445 }
 0x222   :  { %5313 = vst [vmem:[#allocation83_spill] sm:$0xff] %v3577_v33  ;;  %v1719_v9 = vsel %vm217_vm0, %v1532_v30, -inf  ;;  %v3595_v30 = vpop.permute.xlu2 %858 }
 0x223   :  { %1939 = vmatpush.bf16.msra.mxu3 %v80_v16  ;;  %5314 = vst [vmem:[#allocation84_spill] sm:$0xff] %v3595_v30 }
 0x227   :  { %1940 = vmatpush.bf16.msra.mxu3 %v79_v48 }
 0x229   :  { %1033 = vperm.xlu2 %2894, %v3547_v19   ;;  %2893 = vset.pattern.permute.xlu1 %v2999_v1  ;;  %v78_v1 = vpack.c.bf16 %v71_v7, %v70_v54  ;;  %v1531_v7 = vsel %vm1051_vm5, %v3342_v44, 0.0  ;;  %v1718_v54 = vsel %vm217_vm0, %v1528_v39, -inf }
 0x22a   :  { %v1656_v61 = vsel %vm217_vm0, %v1531_v7, -inf  ;;  %v1720_v44 = vmax.f32 %v1718_v54, %v1719_v9  ;;  %v1540_v7 = vsel %vm5021_vm12, %v3401_v10, 0.0  ;;  %v3605_v9 = vpop.permute.xlu1 %464  ;;  %vm5027_vm12 = vcmp.gt.f32.partialorder %v3221_v63, 0.0  ;;  %v5328_v63 = vld [vmem:[#allocation33_spill] sm:$0xff] }
 0x22b   :  { %1941 = vmatpush.bf16.msra.mxu3 %v78_v1  ;;  %v1657_v39 = vmax.f32 %v1655_v6, %v1656_v61  ;;  %v1539_v61 = vsel %vm5023_vm10, %v3401_v10, 0.0  ;;  %v1723_v2 = vsel %vm217_vm0, %v1540_v7, -inf  ;;  %vm5026_vm10 = vcmp.gt.f32.partialorder %v3261_v20, 0.0 }
 0x22c   :  { %v1722_v54 = vmax.f32 %v1720_v44, %v1721_v34  ;;  %v1184_v44 = vrot.slane %v3327_v40, 6  ;;  %v1660_v10 = vsel %vm217_vm0, %v1539_v61, -inf  ;;  %v3623_v34 = vpop.permute.xlu2 %877 }
 0x22d   :  { %5315 = vst [vmem:[#allocation85_spill] sm:$0xff] %v3623_v34 }
 0x22e   :  { %2807 = vmatmul.msk.bf16.vlgmr.msra.gmra.mxu3 %vm217_vm0, %v3181_v25  ;;  %v3630_v5 = vperm.slane %v1184_v44, 0  ;;  %v5348_v25 = vld [vmem:[#allocation65_spill] sm:$0xff] }
 0x22f   :  { %2499 = vmatpush.bf16.msrb.mxu3 %v81_v23  ;;  %v1535_v23 = vsel %vm1055_vm13, %v3344_v36, 0.0  ;;  %v1543_v36 = vsel %vm5022_vm11, %v3454_v21, 0.0  ;;  %vm5025_vm11 = vcmp.gt.f32.partialorder %v3241_v12, 0.0 }
 0x231   :  { %2896 = vset.pattern.permute.xlu2 %v3160_v11  ;;  %1027 = vperm.xlu1 %2893, %v3547_v19  }
 0x232   :  { %v3635_v61 = vpop.permute.xlu1 %852 }
 0x233   :  { %2500 = vmatpush.bf16.msrb.mxu3 %v80_v16  ;;  %v1658_v16 = vsel %vm217_vm0, %v1535_v23, -inf  ;;  %v1724_v23 = vmax.f32 %v1722_v54, %v1723_v2  ;;  %5316 = vst [vmem:[#allocation86_spill] sm:$0xff] %v3635_v61  ;;  %v1552_v2 = vsel %vm5026_vm10, %v3630_v5, 0.0  ;;  %vm5033_vm10 = vcmp.gt.f32.partialorder %v3237_v8, 0.0 }
 0x234   :  { %v1659_v6 = vmax.f32 %v1657_v39, %v1658_v16  ;;  %v1185_v16 = vrot.slane %v3327_v40, 7 }
 0x236   :  { %v1661_v39 = vmax.f32 %v1659_v6, %v1660_v10  ;;  %v1547_v6 = vsel %vm5027_vm12, %v3379_v18, 0.0  ;;  %v3649_v44 = vperm.slane %v1185_v16, 0  ;;  %vm5060_vm12 = vcmp.gt.f32.partialorder %v3248_v17, 0.0  ;;  %v5321_v17 = vld [vmem:[#allocation34_spill] sm:$0xff] }
 0x237   :  { %2501 = vmatpush.bf16.msrb.mxu3 %v79_v48  ;;  %v1544_v48 = vsel %vm5029_vm9, %v3454_v21, 0.0  ;;  %v1186_v16 = vrot.slane %v3363_v31, 1 }
 0x238   :  { %v1725_v7 = vsel %vm217_vm0, %v1544_v48, -inf }
 0x239   :  { %670 = vperm.xlu2 %2896, %v3127_v53   ;;  %2895 = vset.pattern.permute.xlu1 %v3172_v15  ;;  %v1726_v54 = vmax.f32 %v1724_v23, %v1725_v7  ;;  %v1729_v23 = vsel %vm217_vm0, %v1552_v2, -inf  ;;  %v1555_v2 = vsel %vm5060_vm12, %v3649_v44, 0.0 }
 0x23a   :  { %v1668_v8 = vsel %vm217_vm0, %v1555_v2, -inf  ;;  %v1188_v2 = vrot.slane %v3363_v31, 3 }
 0x23b   :  { %2502 = vmatpush.bf16.msrb.mxu3 %v78_v1  ;;  %v1548_v1 = vsel %vm5025_vm11, %v3379_v18, 0.0  ;;  %vm5028_vm11 = vcmp.gt.f32.partialorder %v3230_v4, 0.0  ;;  %v1664_v18 = vsel %vm217_vm0, %v1547_v6, -inf  ;;  %v3666_v6 = vpop.permute.xlu2 %514 }
 0x23c   :  { %v1727_v40 = vsel %vm217_vm0, %v1548_v1, -inf  ;;  %5317 = vst [vmem:[#allocation87_spill] sm:$0xff] %v3666_v6 }
 0x23d   :  { %v1728_v48 = vmax.f32 %v1726_v54, %v1727_v40  ;;  %v1556_v54 = vsel %vm5033_vm10, %v3649_v44, 0.0  ;;  %vm5045_vm10 = vcmp.gt.f32.partialorder %v5321_v17, 0.0 }
 0x23e   :  { %2808 = vmatmul.msk.bf16.gmra.mxu3 %vm217_vm0, %v3203_v58 }
 0x23f   :  { %v1730_v7 = vmax.f32 %v1728_v48, %v1729_v23  ;;  %v5320_v48 = vld [vmem:[#allocation11_spill] sm:$0xff]  ;;  %v1731_v23 = vsel %vm217_vm0, %v1556_v54, -inf }
 0x240   :  { %vm5037_vm1 = vcmp.gt.f32.partialorder %v5320_v48, 0.0  ;;  %v5325_v48 = vld [vmem:[#allocation38_spill] sm:$0xff] }
 0x241   :  { %2898 = vset.pattern.permute.xlu2 %v3172_v15  ;;  %664 = vperm.xlu1 %2895, %v3127_v53   ;;  %v1662_v53 = vsel %vm217_vm0, %v1543_v36, -inf }
 0x242   :  { %v1663_v36 = vmax.f32 %v1661_v39, %v1662_v53  ;;  %v1551_v39 = vsel %vm5028_vm11, %v3630_v5, 0.0  ;;  %v3659_v53 = vperm.slane %v3363_v31, 0  ;;  %vm5039_vm11 = vcmp.gt.f32.partialorder %v3246_v14, 0.0 }
 0x243   :  { %v1666_v1 = vsel %vm217_vm0, %v1551_v39, -inf  ;;  %v3679_v39 = vperm.slane %v1186_v16, 0  ;;  %v3698_v14 = vpop.permute.xlu2 %908 }
 0x244   :  { %v1665_v10 = vmax.f32 %v1663_v36, %v1664_v18  ;;  %v3668_v36 = vpop.permute.xlu1 %495  ;;  %v5319_v18 = vld [vmem:[#allocation31_spill] sm:$0xff]  ;;  %5322 = vst [vmem:[#allocation89_spill] sm:$0xff] %v3698_v14 }
 0x245   :  { %5318 = vst [vmem:[#allocation88_spill] sm:$0xff] %v3668_v36  ;;  %vm5040_vm9 = vcmp.gt.f32.partialorder %v5319_v18, 0.0  ;;  %v1563_v54 = vsel %vm5037_vm1, %v3679_v39, 0.0  ;;  %v5355_v36 = vld [vmem:[#allocation60_spill] sm:$0xff] }
 0x246   :  { %v1667_v40 = vmax.f32 %v1665_v10, %v1666_v1  ;;  %v1560_v10 = vsel %vm5039_vm11, %v3659_v53, 0.0  ;;  %v1732_v1 = vmax.f32 %v1730_v7, %v1731_v23  ;;  %v1564_v7 = vsel %vm5045_vm10, %v3679_v39, 0.0 }
 0x247   :  { %v1733_v16 = vsel %vm217_vm0, %v1560_v10, -inf  ;;  %v1672_v18 = vsel %vm217_vm0, %v1563_v54, -inf  ;;  %v5324_v10 = vld [vmem:[#allocation30_spill] sm:$0xff]  ;;  %vm5052_vm11 = vcmp.gt.f32.partialorder %v5325_v48, 0.0  ;;  %v1735_v17 = vsel %vm217_vm0, %v1564_v7, -inf }
 0x248   :  { %v1734_v23 = vmax.f32 %v1732_v1, %v1733_v16  ;;  %vm5059_vm1 = vcmp.gt.f32.partialorder %v5324_v10, 0.0  ;;  %v5327_v1 = vld [vmem:[#allocation61_spill] sm:$0xff]  ;;  %vm5057_vm10 = vcmp.gt.f32.partialorder %v5328_v63, 0.0 }
 0x249   :  { %714 = vperm.xlu2 %2898, %v3136_v55   ;;  %2897 = vset.pattern.permute.xlu1 %v3160_v11  ;;  %v1568_v16 = vsel %vm5052_vm11, %v5327_v1, 0.0 }
 0x24a   :  { %v1736_v54 = vmax.f32 %v1734_v23, %v1735_v17  ;;  %v1737_v7 = vsel %vm217_vm0, %v1568_v16, -inf  ;;  %v5333_v16 = vld [vmem:[#allocation37_spill] sm:$0xff] }
 0x24b   :  { %v3733_v10 = vpop.permute.xlu2 %545 }
 0x24c   :  { %v1738_v17 = vmax.f32 %v1736_v54, %v1737_v7  ;;  %5331 = vst [vmem:[#allocation92_spill] sm:$0xff] %v3733_v10  ;;  %v1191_v54 = vrot.slane %v3363_v31, 6  ;;  %v238_v7 = vpop.f32.mrf.mxu1 }
 0x251   :  { %739 = vperm.xlu2 %2898, %v3186_v27   ;;  %695 = vperm.xlu1 %2897, %v3080_v45   ;;  %v1559_v45 = vsel %vm5040_vm9, %v3659_v53, 0.0  ;;  %v1669_v27 = vmax.f32 %v1667_v40, %v1668_v8  ;;  %v3700_v8 = vpop.permute.xlu1 %883 }
 0x252   :  { %v1670_v20 = vsel %vm217_vm0, %v1559_v45, -inf  ;;  %5323 = vst [vmem:[#allocation90_spill] sm:$0xff] %v3700_v8  ;;  %v5326_v45 = vld [vmem:[#allocation36_spill] sm:$0xff] }
 0x253   :  { %v1671_v40 = vmax.f32 %v1669_v27, %v1670_v20  ;;  %vm5051_vm9 = vcmp.gt.f32.partialorder %v5326_v45, 0.0  ;;  %v1189_v20 = vrot.slane %v3363_v31, 4  ;;  %v3713_v27 = vperm.slane %v1188_v2, 0  ;;  %v5338_v31 = vld [vmem:[#allocation44_spill] sm:$0xff]  ;;  %v3764_v58 = vpop.permute.xlu2 %564 }
 0x254   :  { %vm5069_vm12 = vcmp.gt.f32.partialorder %v5338_v31, 0.0  ;;  %5341 = vst [vmem:[#allocation95_spill] sm:$0xff] %v3764_v58  ;;  %v5345_v31 = vld [vmem:[#allocation51_spill] sm:$0xff] }
 0x255   :  { %v1673_v4 = vmax.f32 %v1671_v40, %v1672_v18  ;;  %v1572_v12 = vsel %vm5051_vm9, %v3713_v27, 0.0  ;;  %v3725_v2 = vperm.slane %v1189_v20, 0  ;;  %v1571_v18 = vsel %vm5057_vm10, %v3713_v27, 0.0  ;;  %v5334_v20 = vld [vmem:[#allocation41_spill] sm:$0xff] }
 0x256   :  { %v1739_v45 = vsel %vm217_vm0, %v1572_v12, -inf  ;;  %vm5065_vm9 = vcmp.gt.f32.partialorder %v5333_v16, 0.0  ;;  %vm5086_vm11 = vcmp.gt.f32.partialorder %v5334_v20, 0.0  ;;  %vm5071_vm10 = vcmp.gt.f32.partialorder %v5336_v24, 0.0  ;;  %v5346_v24 = vld [vmem:[#allocation39_spill] sm:$0xff] }
 0x257   :  { %5329 = vst [vmem:[#allocation61_spill] sm:$0xff] %v3725_v2  ;;  %v1576_v12 = vsel %vm5065_vm9, %v3725_v2, 0.0  ;;  %v1575_v63 = vsel %vm5086_vm11, %v3725_v2, 0.0 }
 0x258   :  { %v1741_v42 = vsel %vm217_vm0, %v1576_v12, -inf  ;;  %v1678_v16 = vsel %vm217_vm0, %v1575_v63, -inf }
 0x259   :  { %2900 = vset.pattern.permute.xlu2 %v3160_v11  ;;  %720 = vperm.xlu1 %2897, %v3136_v55   ;;  %v1567_v55 = vsel %vm5059_vm1, %v5327_v1, 0.0  ;;  %v3727_v23 = vpop.permute.xlu1 %902  ;;  %vm5067_vm1 = vcmp.gt.f32.partialorder %v5337_v13, 0.0  ;;  %v5344_v13 = vld [vmem:[#allocation43_spill] sm:$0xff] }
 0x25a   :  { %v1674_v48 = vsel %vm217_vm0, %v1567_v55, -inf  ;;  %5330 = vst [vmem:[#allocation91_spill] sm:$0xff] %v3727_v23  ;;  %v166_v55 = vld [vmem:[#allocation2 + $0x2d0] sm:$0xff] }
 0x25b   :  { %v1675_v40 = vmax.f32 %v1673_v4, %v1674_v48  ;;  %v1676_v4 = vsel %vm217_vm0, %v1571_v18, -inf  ;;  %v1740_v48 = vmax.f32 %v1738_v17, %v1739_v45  ;;  %v239_v22 = vadd.f32 %v238_v7, %v166_v55  ;;  %v5342_v55 = vld [vmem:[#allocation46_spill] sm:$0xff] }
 0x25c   :  { %v3753_v18 = vperm.slane %v1191_v54, 0  ;;  %v1580_v45 = vsel %vm5067_vm1, %v3740_v0, 0.0  ;;  %v5343_v54 = vld [vmem:[#allocation48_spill] sm:$0xff]  ;;  %vm5085_vm1 = vcmp.gt.f32.partialorder %v5344_v13, 0.0  ;;  %v3808_v13 = vpop.permute.xlu2 %952 }
 0x25d   :  { %v1677_v35 = vmax.f32 %v1675_v40, %v1676_v4  ;;  %v1742_v17 = vmax.f32 %v1740_v48, %v1741_v42  ;;  %v1579_v40 = vsel %vm5069_vm12, %v3740_v0, 0.0  ;;  %vm5074_vm9 = vcmp.gt.f32.partialorder %v5343_v54, 0.0  ;;  %v5350_v54 = vld [vmem:[#allocation18_spill] sm:$0xff]  ;;  %5353 = vst [vmem:[#allocation98_spill] sm:$0xff] %v3808_v13 }
 0x25e   :  { %5339 = vst [vmem:[#allocation93_spill] sm:$0xff] %v3753_v18  ;;  %v1583_v63 = vsel %vm5071_vm10, %v3753_v18, 0.0  ;;  %v1743_v42 = vsel %vm217_vm0, %v1580_v45, -inf  ;;  %v3773_v7 = vmax.f32 %v239_v22, 0.0  ;;  %v1680_v12 = vsel %vm217_vm0, %v1579_v40, -inf }
 0x25f   :  { %v1679_v4 = vmax.f32 %v1677_v35, %v1678_v16  ;;  %v1584_v35 = vsel %vm5074_vm9, %v3753_v18, 0.0  ;;  %v1744_v16 = vmax.f32 %v1742_v17, %v1743_v42  ;;  %vm5076_vm12 = vcmp.gt.f32.partialorder %v5345_v31, 0.0  ;;  %v5354_v18 = vld [vmem:[#allocation42_spill] sm:$0xff] }
 0x260   :  { %vm5083_vm10 = vcmp.gt.f32.partialorder %v5346_v24, 0.0  ;;  %v1745_v45 = vsel %vm217_vm0, %v1584_v35, -inf  ;;  %v1193_v22 = vrot.slane %v3773_v7, 1  ;;  %v3786_v40 = vperm.slane %v3773_v7, 0 }
 0x261   :  { %770 = vperm.xlu2 %2900, %v5332_v60   ;;  %2899 = vset.pattern.permute.xlu1 %v3172_v15  ;;  %v3759_v20 = vpop.permute.xlu1 %539  ;;  %v1681_v48 = vmax.f32 %v1679_v4, %v1680_v12  ;;  %v1588_v17 = vsel %vm5076_vm12, %v5348_v25, 0.0  ;;  %v1746_v4 = vmax.f32 %v1744_v16, %v1745_v45  ;;  %vm5089_vm9 = vcmp.gt.f32.partialorder %v5350_v54, 0.0  ;;  %v5351_v45 = vld [vmem:[#allocation47_spill] sm:$0xff] }
 0x262   :  { %5340 = vst [vmem:[#allocation94_spill] sm:$0xff] %v3759_v20  ;;  %v1592_v35 = vsel %vm5083_vm10, %v3786_v40, 0.0  ;;  %v1194_v31 = vrot.slane %v3773_v7, 2  ;;  %v1747_v16 = vsel %vm217_vm0, %v1588_v17, -inf  ;;  %vm5092_vm12 = vcmp.gt.f32.partialorder %v5351_v45, 0.0 }
 0x263   :  { %5347 = vst [vmem:[#allocation46_spill] sm:$0xff] %v3786_v40  ;;  %v3805_v10 = vperm.slane %v1193_v22, 0  ;;  %v1591_v24 = vsel %vm5092_vm12, %v3786_v40, 0.0  ;;  %vm5105_vm10 = vcmp.gt.f32.partialorder %v5354_v18, 0.0  ;;  %v1195_v22 = vrot.slane %v3773_v7, 3 }
 0x264   :  { %vm5108_vm12 = vcmp.gt.f32.partialorder %v3524_v52, 0.0  ;;  %v1197_v0 = vrot.slane %v3773_v7, 5  ;;  %v3851_v59 = vpop.permute.xlu2 %595 }
 0x265   :  { %5352 = vst [vmem:[#allocation97_spill] sm:$0xff] %v3805_v10  ;;  %v1595_v17 = vsel %vm5089_vm9, %v3805_v10, 0.0  ;;  %vm5106_vm9 = vcmp.gt.f32.partialorder %v3432_v38, 0.0  ;;  %v3834_v40 = vperm.slane %v1195_v22, 0  ;;  %v87_v22 = vld [vmem:[#allocation2 + $0x128] sm:$0xff] }
 0x266   :  { %v1688_v54 = vsel %vm217_vm0, %v1595_v17, -inf  ;;  %v3866_v38 = vperm.slane %v1197_v0, 0  ;;  %v5361_v0 = vld [vmem:[#allocation5_spill] sm:$0xff] }
 0x269   :  { %795 = vperm.xlu2 %2900, %v5342_v55   ;;  %764 = vperm.xlu1 %2899, %v5332_v60   ;;  %v1682_v60 = vsel %vm217_vm0, %v1583_v63, -inf  ;;  %v3791_v42 = vpop.permute.xlu1 %933  ;;  %v1587_v63 = vsel %vm5085_vm1, %v5348_v25, 0.0  ;;  %v1749_v25 = vsel %vm217_vm0, %v1592_v35, -inf  ;;  %vm5121_vm1 = vcmp.gt.f32.partialorder %v5355_v36, 0.0  ;;  %v5358_v36 = vld [vmem:[#allocation6_spill] sm:$0xff] }
 0x26a   :  { %5349 = vst [vmem:[#allocation96_spill] sm:$0xff] %v3791_v42  ;;  %v1683_v12 = vmax.f32 %v1681_v48, %v1682_v60  ;;  %v1684_v48 = vsel %vm217_vm0, %v1587_v63, -inf  ;;  %v1748_v60 = vmax.f32 %v1746_v4, %v1747_v16  ;;  %v3820_v4 = vperm.slane %v1194_v31, 0  ;;  %v5356_v63 = vld [vmem:[#allocation59_spill] sm:$0xff] }
 0x26b   :  { %vm5110_vm11 = vcmp.gt.f32.partialorder %v5356_v63, 0.0  ;;  %v1686_v16 = vsel %vm217_vm0, %v1591_v24, -inf  ;;  %v1196_v24 = vrot.slane %v3773_v7, 4  ;;  %5359 = vst [vmem:[#allocation6_spill] sm:$0xff] %v3851_v59  ;;  %v1603_v63 = vsel %vm5108_vm12, %v3834_v40, 0.0 }
 0x26c   :  { %v1750_v35 = vmax.f32 %v1748_v60, %v1749_v25  ;;  %v1600_v31 = vsel %vm5105_vm10, %v3820_v4, 0.0  ;;  %v88_v25 = vld [vmem:[#allocation2 + $0x130] sm:$0xff]  ;;  %v89_v60 = vld [vmem:[#allocation2 + $0x138] sm:$0xff]  ;;  %v1599_v17 = vsel %vm5110_vm11, %v3820_v4, 0.0  ;;  %vm5111_vm10 = vcmp.gt.f32.partialorder %v3534_v47, 0.0 }
 0x26d   :  { %v3844_v18 = vpack.c.bf16 %v89_v60, %v88_v25  ;;  %v1753_v33 = vsel %vm217_vm0, %v1600_v31, -inf  ;;  %v3860_v25 = vperm.slane %v1196_v24, 0  ;;  %v240_v60 = vpop.f32.mrf.mxu1  ;;  %v1690_v31 = vsel %vm217_vm0, %v1599_v17, -inf  ;;  %v85_v47 = vld [vmem:[#allocation2 + $0x118] sm:$0xff] }
 0x26e   :  { %vm5113_vm12 = vcmp.gt.f32.partialorder %v3530_v56, 0.0  ;;  %v1198_v17 = vrot.slane %v3773_v7, 6  ;;  %vm5117_vm11 = vcmp.gt.f32.partialorder %v3540_v43, 0.0 }
 0x26f   :  { %1919 = vmatpush.bf16.msra.mxu2 %v3844_v18 }
 0x271   :  { %2902 = vset.pattern.permute.xlu2 %v3172_v15  ;;  %789 = vperm.xlu1 %2899, %v5342_v55   ;;  %v1685_v55 = vmax.f32 %v1683_v12, %v1684_v48  ;;  %v1596_v12 = vsel %vm5121_vm1, %v3805_v10, 0.0  ;;  %v3827_v48 = vpop.permute.xlu1 %570  ;;  %v1604_v10 = vsel %vm5106_vm9, %v3834_v40, 0.0  ;;  %vm5112_vm9 = vcmp.gt.f32.partialorder %v3449_v46, 0.0  ;;  %v83_v46 = vld [vmem:[#allocation2 + $0x108] sm:$0xff] }
 0x272   :  { %5357 = vst [vmem:[#allocation99_spill] sm:$0xff] %v3827_v48  ;;  %vm5129_vm1 = vcmp.gt.f32.partialorder %v3635_v61, 0.0 }
 0x273   :  { %v1687_v45 = vmax.f32 %v1685_v55, %v1686_v16  ;;  %v86_v55 = vld [vmem:[#allocation2 + $0x120] sm:$0xff]  ;;  %v1751_v16 = vsel %vm217_vm0, %v1596_v12, -inf }
 0x274   :  { %v1752_v48 = vmax.f32 %v1750_v35, %v1751_v16  ;;  %v3858_v12 = vpack.c.bf16 %v87_v22, %v86_v55  ;;  %v167_v35 = vld [vmem:[#allocation2 + $0x2d8] sm:$0xff]  ;;  %v1755_v16 = vsel %vm217_vm0, %v1604_v10, -inf  ;;  %v1608_v55 = vsel %vm5111_vm10, %v3860_v25, 0.0 }
 0x275   :  { %v1689_v2 = vmax.f32 %v1687_v45, %v1688_v54  ;;  %v1692_v45 = vsel %vm217_vm0, %v1603_v63, -inf  ;;  %v241_v52 = vadd.f32 %v240_v60, %v167_v35  ;;  %v1199_v35 = vrot.slane %v3773_v7, 7  ;;  %v3888_v60 = vpop.permute.xlu2 %983 }
 0x276   :  { %v1754_v54 = vmax.f32 %v1752_v48, %v1753_v33  ;;  %1920 = vmatpush.bf16.msra.mxu2 %v3858_v12  ;;  %v1607_v33 = vsel %vm5112_vm9, %v3860_v25, 0.0  ;;  %v1612_v48 = vsel %vm5113_vm12, %v3866_v38, 0.0  ;;  %vm5120_vm10 = vcmp.gt.f32.partialorder %v3555_v29, 0.0  ;;  %5362 = vst [vmem:[#allocation5_spill] sm:$0xff] %v3888_v60 }
 0x277   :  { %v1691_v24 = vmax.f32 %v1689_v2, %v1690_v31  ;;  %v1757_v2 = vsel %vm217_vm0, %v1608_v55, -inf  ;;  %v1694_v31 = vsel %vm217_vm0, %v1607_v33, -inf  ;;  %v3896_v55 = vmax.f32 %v241_v52, 0.0  ;;  %v84_v52 = vld [vmem:[#allocation2 + $0x110] sm:$0xff] }
 0x278   :  { %v1756_v63 = vmax.f32 %v1754_v54, %v1755_v16  ;;  %v5364_v54 = vld [vmem:[#allocation21_spill] sm:$0xff]  ;;  %v3905_v43 = vperm.slane %v1199_v35, 0  ;;  %v3914_v29 = vpack.c.bf16 %v85_v47, %v84_v52 }
 0x279   :  { %839 = vperm.xlu2 %2902, %v5358_v36   ;;  %2901 = vset.pattern.permute.xlu1 %v3160_v11  ;;  %v3871_v22 = vpop.permute.xlu1 %589  ;;  %v1693_v10 = vmax.f32 %v1691_v24, %v1692_v45  ;;  %v3894_v45 = vperm.slane %v1198_v17, 0  ;;  %vm5122_vm9 = vcmp.gt.f32.partialorder %v5364_v54, 0.0  ;;  %v1759_v24 = vsel %vm217_vm0, %v1612_v48, -inf }
 0x27a   :  { %5360 = vst [vmem:[#allocation100_spill] sm:$0xff] %v3871_v22  ;;  %v1758_v16 = vmax.f32 %v1756_v63, %v1757_v2  ;;  %v82_v2 = vld [vmem:[#allocation2 + $0x100] sm:$0xff]  ;;  %v3911_v63 = vperm.slane %v3896_v55, 0  ;;  %v1200_v48 = vrot.slane %v3896_v55, 1  ;;  %v1201_v47 = vrot.slane %v3896_v55, 2  ;;  %1921 = vmatpush.bf16.msra.mxu2 %v3914_v29 }
 0x27b   :  { %5363 = vst [vmem:[#allocation101_spill] sm:$0xff] %v3894_v45  ;;  %v1616_v7 = vsel %vm5120_vm10, %v3894_v45, 0.0  ;;  %v1695_v33 = vmax.f32 %v1693_v10, %v1694_v31  ;;  %v1615_v10 = vsel %vm5122_vm9, %v3894_v45, 0.0  ;;  %vm5128_vm10 = vcmp.gt.f32.partialorder %v3595_v30, 0.0 }
 0x27c   :  { %v1760_v35 = vmax.f32 %v1758_v16, %v1759_v24  ;;  %v1761_v31 = vsel %vm217_vm0, %v1616_v7, -inf  ;;  %v3929_v52 = vpack.c.bf16 %v83_v46, %v82_v2  ;;  %vm5132_vm9 = vcmp.gt.f32.partialorder %v3700_v8, 0.0 }
 0x27d   :  { %v1698_v7 = vsel %vm217_vm0, %v1615_v10, -inf  ;;  %v1624_v54 = vsel %vm5128_vm10, %v3911_v63, 0.0  ;;  %v3941_v45 = vperm.slane %v1200_v48, 0  ;;  %v3949_v2 = vperm.slane %v1201_v47, 0 }
 0x27e   :  { %1922 = vmatpush.bf16.msra.mxu2 %v3929_v52  ;;  %vm5135_vm10 = vcmp.gt.f32.partialorder %v3698_v14, 0.0  ;;  %vm5170_vm4 = vcmp.gt.f32.partialorder %v3871_v22, 0.0  ;;  %v5388_v22 = vld [vmem:[#allocation93_spill] sm:$0xff] }
 0x27f   :  { %v1628_v10 = vsel %vm5132_vm9, %v3941_v45, 0.0  ;;  %vm5139_vm9 = vcmp.gt.f32.partialorder %v3791_v42, 0.0 }
 0x281   :  { %864 = vperm.xlu2 %2902, %v3196_v26   ;;  %820 = vperm.xlu1 %2901, %v5361_v0   ;;  %v1611_v26 = vsel %vm5117_vm11, %v3866_v38, 0.0  ;;  %v5365_v0 = vld [vmem:[#allocation45_spill] sm:$0xff]  ;;  %v3907_v17 = vpop.permute.xlu1 %977  ;;  %vm5140_vm11 = vcmp.gt.f32.partialorder %v3553_v57, 0.0 }
 0x282   :  { %vm5127_vm12 = vcmp.gt.f32.partialorder %v5365_v0, 0.0  ;;  %v1696_v56 = vsel %vm217_vm0, %v1611_v26, -inf  ;;  %5366 = vst [vmem:[#allocation102_spill] sm:$0xff] %v3907_v17  ;;  %v1619_v24 = vsel %vm5140_vm11, %v3905_v43, 0.0  ;;  %v1762_v0 = vmax.f32 %v1760_v35, %v1761_v31  ;;  %2480 = vmatpush.bf16.msrb.mxu2 %v3844_v18 }
 0x283   :  { %v1620_v26 = vsel %vm5127_vm12, %v3905_v43, 0.0  ;;  %v1697_v16 = vmax.f32 %v1695_v33, %v1696_v56  ;;  %v1623_v56 = vsel %vm5129_vm1, %v3911_v63, 0.0  ;;  %v1700_v33 = vsel %vm217_vm0, %v1619_v24, -inf }
 0x284   :  { %v1763_v46 = vsel %vm217_vm0, %v1620_v26, -inf  ;;  %vm5133_vm12 = vcmp.gt.f32.partialorder %v3623_v34, 0.0  ;;  %v1765_v35 = vsel %vm217_vm0, %v1624_v54, -inf  ;;  %v1202_v31 = vrot.slane %v3896_v55, 3 }
 0x285   :  { %v1699_v48 = vmax.f32 %v1697_v16, %v1698_v7  ;;  %v1764_v24 = vmax.f32 %v1762_v0, %v1763_v46  ;;  %v1702_v47 = vsel %vm217_vm0, %v1623_v56, -inf  ;;  %vm5137_vm1 = vcmp.gt.f32.partialorder %v3727_v23, 0.0 }
 0x286   :  { %v1627_v16 = vsel %vm5133_vm12, %v3941_v45, 0.0  ;;  %v1767_v54 = vsel %vm217_vm0, %v1628_v10, -inf  ;;  %v1203_v7 = vrot.slane %v3896_v55, 4  ;;  %v1632_v18 = vsel %vm5135_vm10, %v3949_v2, 0.0  ;;  %2481 = vmatpush.bf16.msrb.mxu2 %v3858_v12  ;;  %v5368_v10 = vld [vmem:[#allocation25_spill] sm:$0xff] }
 0x287   :  { %v1701_v8 = vmax.f32 %v1699_v48, %v1700_v33  ;;  %v1766_v30 = vmax.f32 %v1764_v24, %v1765_v35  ;;  %v1631_v46 = vsel %vm5137_vm1, %v3949_v2, 0.0  ;;  %v3977_v56 = vperm.slane %v1202_v31, 0  ;;  %v5370_v31 = vld [vmem:[#allocation49_spill] sm:$0xff] }
 0x288   :  { %v1204_v33 = vrot.slane %v3896_v55, 5  ;;  %vm5141_vm12 = vcmp.gt.f32.partialorder %v5368_v10, 0.0  ;;  %v1704_v48 = vsel %vm217_vm0, %v1627_v16, -inf  ;;  %v1769_v24 = vsel %vm217_vm0, %v1632_v18, -inf }
 0x289   :  { %2905 = vset.pattern.permute.xlu2 %v3160_v11  ;;  %845 = vperm.xlu1 %2901, %v5358_v36   ;;  %v3935_v36 = vpop.permute.xlu2 %1002  ;;  %v3958_v26 = vpop.permute.xlu1 %620  ;;  %v1703_v0 = vmax.f32 %v1701_v8, %v1702_v47  ;;  %v1768_v35 = vmax.f32 %v1766_v30, %v1767_v54  ;;  %v3984_v14 = vperm.slane %v1203_v7, 0  ;;  %v1636_v8 = vsel %vm5139_vm9, %v3977_v56, 0.0 }
 0x28a   :  { %5367 = vst [vmem:[#allocation103_spill] sm:$0xff] %v3935_v36  ;;  %vm5142_vm10 = vcmp.gt.f32.partialorder %v5370_v31, 0.0  ;;  %v1706_v23 = vsel %vm217_vm0, %v1631_v46, -inf  ;;  %vm5151_vm1 = vcmp.gt.f32.partialorder %v3808_v13, 0.0  ;;  %v1635_v30 = vsel %vm5141_vm12, %v3977_v56, 0.0  ;;  %2482 = vmatpush.bf16.msrb.mxu2 %v3914_v29  ;;  %v5383_v31 = vld [vmem:[#allocation35_spill] sm:$0xff] }
 0x28b   :  { %v1705_v12 = vmax.f32 %v1703_v0, %v1704_v48  ;;  %v3997_v16 = vperm.slane %v1204_v33, 0  ;;  %v1205_v54 = vrot.slane %v3896_v55, 6  ;;  %v1770_v18 = vmax.f32 %v1768_v35, %v1769_v24  ;;  %v5385_v13 = vld [vmem:[#allocation83_spill] sm:$0xff] }
 0x28c   :  { %v1771_v42 = vsel %vm217_vm0, %v1636_v8, -inf  ;;  %vm5144_vm9 = vcmp.gt.f32.partialorder %v3888_v60, 0.0  ;;  %vm5150_vm11 = vcmp.gt.f32.partialorder %v3907_v17, 0.0  ;;  %v1639_v46 = vsel %vm5151_vm1, %v3984_v14, 0.0 }
 0x28d   :  { %v1707_v0 = vmax.f32 %v1705_v12, %v1706_v23  ;;  %v1640_v33 = vsel %vm5142_vm10, %v3984_v14, 0.0  ;;  %v1206_v48 = vrot.slane %v3896_v55, 7  ;;  %v1708_v29 = vsel %vm217_vm0, %v1635_v30, -inf }
 0x28e   :  { %v1772_v35 = vmax.f32 %v1770_v18, %v1771_v42  ;;  %v1644_v23 = vsel %vm5144_vm9, %v3997_v16, 0.0  ;;  %v4020_v24 = vperm.slane %v1205_v54, 0  ;;  %v1643_v8 = vsel %vm5150_vm11, %v3997_v16, 0.0  ;;  %2483 = vmatpush.bf16.msrb.mxu2 %v3929_v52 }
 0x28f   :  { %v1710_v55 = vsel %vm217_vm0, %v1639_v46, -inf  ;;  %vm5149_vm10 = vcmp.gt.f32.partialorder %v3935_v36, 0.0  ;;  %v1709_v12 = vmax.f32 %v1707_v0, %v1708_v29  ;;  %v4031_v30 = vperm.slane %v1206_v48, 0 }
 0x290   :  { %v1775_v18 = vsel %vm217_vm0, %v1644_v23, -inf  ;;  %v1712_v60 = vsel %vm217_vm0, %v1643_v8, -inf  ;;  %v1647_v0 = vsel %vm5149_vm10, %v4020_v24, 0.0  ;;  %vm5153_vm10 = vcmp.gt.f32.partialorder %v3605_v9, 0.0 }
 0x291   :  { %895 = vperm.xlu2 %2905, %v3480_v50   ;;  %2904 = vset.pattern.permute.xlu1 %v3172_v15  ;;  %v3989_v47 = vpop.permute.xlu2 %639  ;;  %v1711_v52 = vmax.f32 %v1709_v12, %v1710_v55  ;;  %v1714_v23 = vsel %vm217_vm0, %v1647_v0, -inf  ;;  %vm5156_vm1 = vcmp.gt.f32.partialorder %v3666_v6, 0.0  ;;  %v111_v6 = vld [vmem:[#allocation2 + $0x1a8] sm:$0xff] }
 0x292   :  { %5369 = vst [vmem:[#allocation104_spill] sm:$0xff] %v3989_v47 }
 0x293   :  { %v4000_v7 = vpop.permute.xlu1 %1008  ;;  %v1713_v29 = vmax.f32 %v1711_v52, %v1712_v60 }
 0x294   :  { %5371 = vst [vmem:[#allocation105_spill] sm:$0xff] %v4000_v7  ;;  %vm5146_vm12 = vcmp.gt.f32.partialorder %v4000_v7, 0.0 }
 0x295   :  { %v1648_v54 = vsel %vm5146_vm12, %v4020_v24, 0.0 }
 0x299   :  { %920 = vperm.xlu2 %2905, %v3491_v62   ;;  %889 = vperm.xlu1 %2904, %v3480_v50   ;;  %v1773_v50 = vsel %vm217_vm0, %v1640_v33, -inf  ;;  %v4029_v42 = vpop.permute.xlu2 %1033  ;;  %v1777_v33 = vsel %vm217_vm0, %v1648_v54, -inf }
 0x29a   :  { %5372 = vst [vmem:[#allocation106_spill] sm:$0xff] %v4029_v42  ;;  %vm5147_vm9 = vcmp.gt.f32.partialorder %v4029_v42, 0.0  ;;  %v1774_v46 = vmax.f32 %v1772_v35, %v1773_v50  ;;  %v1715_v50 = vmax.f32 %v1713_v29, %v1714_v23  ;;  %v4099_v29 = vpop.permute.xlu0 %489  ;;  %v5375_v23 = vld [vmem:[#allocation73_spill] sm:$0xff] }
 0x29b   :  { %v1652_v7 = vsel %vm5147_vm9, %v4031_v30, 0.0  ;;  %vm5154_vm9 = vcmp.gt.f32.partialorder %v3549_v41, 0.0  ;;  %vm5155_vm11 = vcmp.gt.f32.partialorder %v4099_v29, 0.0 }
 0x29c   :  { %v1776_v48 = vmax.f32 %v1774_v46, %v1775_v18  ;;  %v1779_v55 = vsel %vm217_vm0, %v1652_v7, -inf }
 0x29e   :  { %v1778_v8 = vmax.f32 %v1776_v48, %v1777_v33 }
 0x2a0   :  { %v1780_v54 = vmax.f32 %v1778_v8, %v1779_v55  ;;  %v5376_v8 = vmax.f32 %v3465_v28, %v5375_v23  ;;  %v1565_v28 = vsel %vm5155_vm11, %v3679_v39, 0.0  ;;  %vm5166_vm11 = vcmp.gt.f32.partialorder %v3764_v58, 0.0  ;;  %v113_v58 = vld [vmem:[#allocation2 + $0x1b8] sm:$0xff] }
 0x2a1   :  { %2907 = vset.pattern.permute.xlu2 %v3172_v15  ;;  %914 = vperm.xlu1 %2904, %v3491_v62   ;;  %v4066_v7 = vpop.permute.xlu2 %670  ;;  %v1798_v23 = vsel %vm217_vm0, %v1565_v28, -inf }
 0x2a3   :  { %v4049_v35 = vpop.permute.xlu1 %1027 }
 0x2a4   :  { %5373 = vst [vmem:[#allocation107_spill] sm:$0xff] %v4049_v35  ;;  %vm5148_vm12 = vcmp.gt.f32.partialorder %v4049_v35, 0.0  ;;  %v5380_v35 = vld [vmem:[#allocation61_spill] sm:$0xff] }
 0x2a5   :  { %v1651_v60 = vsel %vm5148_vm12, %v4031_v30, 0.0  ;;  %vm5152_vm12 = vcmp.gt.f32.partialorder %v3544_v32, 0.0  ;;  %v1577_v36 = vsel %vm5166_vm11, %v5380_v35, 0.0  ;;  %vm1078_vm11 = vcmp.gt.f32.partialorder %v5385_v13, 0.0 }
 0x2a6   :  { %v1716_v12 = vsel %vm217_vm0, %v1651_v60, -inf  ;;  %v1557_v48 = vsel %vm5152_vm12, %v3649_v44, 0.0  ;;  %v1561_v60 = vsel %vm5153_vm10, %v3659_v53, 0.0  ;;  %vm5168_vm12 = vcmp.gt.f32.partialorder %v3759_v20, 0.0 }
 0x2a7   :  { %v1717_v18 = vmax.f32 %v1715_v50, %v1716_v12  ;;  %v1794_v50 = vsel %vm217_vm0, %v1557_v48, -inf  ;;  %v5377_v48 = vld [vmem:[#allocation62_spill] sm:$0xff]  ;;  %v1804_v10 = vsel %vm217_vm0, %v1577_v36, -inf  ;;  %v1558_v36 = vsel %vm1078_vm11, %v3649_v44, 0.0 }
 0x2a8   :  { %vm5162_vm10 = vcmp.gt.f32.partialorder %v5377_v48, 0.0  ;;  %v4144_v48 = vpop.permute.xlu0 %614 }
 0x2a9   :  { %964 = vperm.xlu2 %2907, %v3151_v3   ;;  %2906 = vset.pattern.permute.xlu1 %v3160_v11  ;;  %v1907_v62 = vpack.c.bf16 %v1780_v54, %v1717_v18  ;;  %v4070_v52 = vpop.permute.xlu2 %714  ;;  %v1796_v54 = vsel %vm217_vm0, %v1561_v60, -inf  ;;  %5381 = vst [vmem:[#allocation73_spill] sm:$0xff] %v4144_v48 }
 0x2ab   :  { %2805 = vmatmul.msk.bf16.vlgmr.msra.gmra.mxu2 %vm217_vm0, %v1907_v62 }
 0x2b1   :  { %989 = vperm.xlu2 %2907, %v3506_v37   ;;  %945 = vperm.xlu1 %2906, %v3100_v49   ;;  %v4075_v49 = vpop.permute.xlu2 %739 }
 0x2b3   :  { %v4073_v37 = vpop.permute.xlu1 %664 }
 0x2b4   :  { %5374 = vst [vmem:[#allocation108_spill] sm:$0xff] %v4073_v37 }
 0x2b9   :  { %2910 = vset.pattern.permute.xlu2 %v3160_v11  ;;  %970 = vperm.xlu1 %2906, %v3151_v3  }
 0x2bb   :  { %v4079_v3 = vpop.permute.xlu2 %770 }
 0x2c1   :  { %1020 = vperm.xlu2 %2910, %v3522_v51   ;;  %2909 = vset.pattern.permute.xlu1 %v3172_v15 }
 0x2c3   :  { %v4077_v11 = vpop.permute.xlu1 %695  ;;  %v4083_v15 = vpop.permute.xlu2 %795 }
 0x2c9   :  { %1045 = vperm.xlu2 %2910, %v3547_v19   ;;  %1014 = vperm.xlu1 %2909, %v3522_v51   ;;  %v1553_v51 = vsel %vm5154_vm9, %v3630_v5, 0.0 }
 0x2ca   :  { %v1792_v33 = vsel %vm217_vm0, %v1553_v51, -inf }
 0x2cb   :  { %v4081_v46 = vpop.permute.xlu1 %720  ;;  %v1793_v55 = vmax.f32 %v5376_v8, %v1792_v33  ;;  %v1569_v33 = vsel %vm5156_vm1, %v5327_v1, 0.0  ;;  %v1573_v8 = vsel %vm5168_vm12, %v3713_v27, 0.0  ;;  %vm5177_vm12 = vcmp.gt.f32.partialorder %v4144_v48, 0.0 }
 0x2cc   :  { %v1800_v60 = vsel %vm217_vm0, %v1569_v33, -inf  ;;  %v1802_v28 = vsel %vm217_vm0, %v1573_v8, -inf }
 0x2cd   :  { %v1795_v18 = vmax.f32 %v1793_v55, %v1794_v50  ;;  %v5378_v55 = vld [vmem:[#allocation75_spill] sm:$0xff]  ;;  %v1606_v50 = vsel %vm5162_vm10, %v3834_v40, 0.0 }
 0x2ce   :  { %vm5176_vm9 = vcmp.gt.f32.partialorder %v5378_v55, 0.0 }
 0x2cf   :  { %v1797_v51 = vmax.f32 %v1795_v18, %v1796_v54  ;;  %v5379_v18 = vld [vmem:[#allocation78_spill] sm:$0xff]  ;;  %v1546_v42 = vsel %vm5176_vm9, %v3454_v21, 0.0  ;;  %v1581_v21 = vsel %vm5170_vm4, %v5383_v31, 0.0  ;;  %vm5185_vm9 = vcmp.gt.f32.partialorder %v4073_v37, 0.0  ;;  %v110_v37 = vld [vmem:[#allocation2 + $0x1a0] sm:$0xff] }
 0x2d0   :  { %vm5172_vm1 = vcmp.gt.f32.partialorder %v5379_v18, 0.0  ;;  %v1806_v61 = vsel %vm217_vm0, %v1581_v21, -inf }
 0x2d1   :  { %1039 = vperm.xlu1 %2909, %v3547_v19   ;;  %v1799_v54 = vmax.f32 %v1797_v51, %v1798_v23  ;;  %v1881_v51 = vsel %vm217_vm0, %v1606_v50, -inf  ;;  %v5382_v23 = vld [vmem:[#allocation82_spill] sm:$0xff]  ;;  %v1554_v8 = vsel %vm5172_vm1, %v3630_v5, 0.0  ;;  %v5386_v50 = vld [vmem:[#allocation68_spill] sm:$0xff]  ;;  %vm5180_vm1 = vcmp.gt.f32.partialorder %v3989_v47, 0.0  ;;  %v5393_v47 = vld [vmem:[#allocation99_spill] sm:$0xff] }
 0x2d2   :  { %vm5175_vm10 = vcmp.gt.f32.partialorder %v5382_v23, 0.0  ;;  %v1858_v34 = vmax.f32 %v5386_v50, %v1881_v51  ;;  %v1585_v51 = vsel %vm5177_vm12, %v5388_v22, 0.0  ;;  %v5389_v50 = vld [vmem:[#allocation92_spill] sm:$0xff]  ;;  %vm5189_vm12 = vcmp.gt.f32.partialorder %v3851_v59, 0.0  ;;  %v5394_v59 = vld [vmem:[#allocation97_spill] sm:$0xff] }
 0x2d3   :  { %v4091_v19 = vpop.permute.xlu2 %839  ;;  %v1801_v33 = vmax.f32 %v1799_v54, %v1800_v60  ;;  %v1851_v54 = vsel %vm217_vm0, %v1546_v42, -inf  ;;  %v1562_v5 = vsel %vm5175_vm10, %v3659_v53, 0.0  ;;  %vm5190_vm10 = vcmp.gt.f32.partialorder %v5389_v50, 0.0 }
 0x2d4   :  { %v1860_v42 = vmax.f32 %v1858_v34, %v1851_v54  ;;  %v1859_v53 = vsel %vm217_vm0, %v1562_v5, -inf  ;;  %v5390_v54 = vld [vmem:[#allocation65_spill] sm:$0xff]  ;;  %v1857_v5 = vsel %vm217_vm0, %v1558_v36, -inf  ;;  %v1808_v48 = vsel %vm217_vm0, %v1585_v51, -inf }
 0x2d5   :  { %v1803_v17 = vmax.f32 %v1801_v33, %v1802_v28  ;;  %v1855_v28 = vsel %vm217_vm0, %v1554_v8, -inf  ;;  %v5387_v33 = vld [vmem:[#allocation88_spill] sm:$0xff]  ;;  %v1589_v44 = vsel %vm5180_vm1, %v5390_v54, 0.0  ;;  %vm5195_vm1 = vcmp.gt.f32.partialorder %v5393_v47, 0.0 }
 0x2d6   :  { %vm5181_vm4 = vcmp.gt.f32.partialorder %v5387_v33, 0.0  ;;  %v1862_v8 = vmax.f32 %v1860_v42, %v1855_v28  ;;  %v1810_v36 = vsel %vm217_vm0, %v1589_v44, -inf }
 0x2d7   :  { %v1805_v57 = vmax.f32 %v1803_v17, %v1804_v10  ;;  %v1566_v34 = vsel %vm5181_vm4, %v3679_v39, 0.0  ;;  %v4183_v17 = vpop.permute.xlu0 %689  ;;  %v1574_v39 = vsel %vm5190_vm10, %v3713_v27, 0.0  ;;  %vm5194_vm10 = vcmp.gt.f32.partialorder %v4070_v52, 0.0 }
 0x2d8   :  { %v1864_v28 = vmax.f32 %v1862_v8, %v1859_v53  ;;  %v1861_v54 = vsel %vm217_vm0, %v1566_v34, -inf  ;;  %vm5191_vm4 = vcmp.gt.f32.partialorder %v4183_v17, 0.0  ;;  %v1582_v53 = vsel %vm5189_vm12, %v5383_v31, 0.0  ;;  %v112_v8 = vld [vmem:[#allocation2 + $0x1b0] sm:$0xff] }
 0x2d9   :  { %v1807_v21 = vmax.f32 %v1805_v57, %v1806_v61  ;;  %v5391_v57 = vld [vmem:[#allocation46_spill] sm:$0xff]  ;;  %v1865_v50 = vsel %vm217_vm0, %v1574_v39, -inf  ;;  %v117_v20 = vpack.c.bf16 %v113_v58, %v112_v8  ;;  %v1597_v31 = vsel %vm5191_vm4, %v5394_v59, 0.0 }
 0x2da   :  { %v1593_v61 = vsel %vm5185_vm9, %v5391_v57, 0.0  ;;  %v1866_v51 = vmax.f32 %v1864_v28, %v1857_v5  ;;  %vm5192_vm9 = vcmp.gt.f32.partialorder %v3958_v26, 0.0  ;;  %v1578_v5 = vsel %vm5195_vm1, %v5380_v35, 0.0 }
 0x2db   :  { %v4086_v0 = vpop.permute.xlu1 %764  ;;  %v4116_v62 = vpop.permute.xlu2 %864  ;;  %v1809_v27 = vmax.f32 %v1807_v21, %v1808_v48  ;;  %v1812_v34 = vsel %vm217_vm0, %v1593_v61, -inf  ;;  %v1869_v48 = vsel %vm217_vm0, %v1582_v53, -inf  ;;  %vm5193_vm12 = vcmp.gt.f32.partialorder %v4066_v7, 0.0  ;;  %2526 = vmatpush.bf16.msrb.mxu0 %v117_v20 }
 0x2dc   :  { %v1868_v44 = vmax.f32 %v1866_v51, %v1861_v54  ;;  %v116_v21 = vpack.c.bf16 %v111_v6, %v110_v37  ;;  %v1586_v39 = vsel %vm5192_vm9, %v5388_v22, 0.0  ;;  %v1867_v54 = vsel %vm217_vm0, %v1578_v5, -inf  ;;  %v108_v5 = vld [vmem:[#allocation2 + $0x190] sm:$0xff] }
 0x2dd   :  { %v1811_v28 = vmax.f32 %v1809_v27, %v1810_v36  ;;  %v1814_v36 = vsel %vm217_vm0, %v1597_v31, -inf  ;;  %vm5196_vm4 = vcmp.gt.f32.partialorder %v4077_v11, 0.0  ;;  %v1594_v20 = vsel %vm5193_vm12, %v5391_v57, 0.0 }
 0x2de   :  { %v1870_v58 = vmax.f32 %v1868_v44, %v1865_v50  ;;  %v1601_v6 = vsel %vm5194_vm10, %v3820_v4, 0.0  ;;  %v1871_v22 = vsel %vm217_vm0, %v1586_v39, -inf  ;;  %vm5201_vm9 = vcmp.gt.f32.partialorder %v4075_v49, 0.0 }
 0x2df   :  { %v1813_v61 = vmax.f32 %v1811_v28, %v1812_v34  ;;  %2527 = vmatpush.bf16.msrb.mxu0 %v116_v21  ;;  %v1598_v27 = vsel %vm5196_vm4, %v5394_v59, 0.0  ;;  %v1875_v8 = vsel %vm217_vm0, %v1594_v20, -inf  ;;  %v1816_v57 = vsel %vm217_vm0, %v1601_v6, -inf  ;;  %v109_v28 = vld [vmem:[#allocation2 + $0x198] sm:$0xff]  ;;  %v4248_v59 = vpop.permute.xlu0 %814 }
 0x2e0   :  { %v1872_v51 = vmax.f32 %v1870_v58, %v1869_v48  ;;  %vm5197_vm12 = vcmp.gt.f32.partialorder %v4079_v3, 0.0  ;;  %vm5198_vm10 = vcmp.gt.f32.partialorder %v4086_v0, 0.0  ;;  %v1605_v44 = vsel %vm5201_vm9, %v3834_v40, 0.0 }
 0x2e1   :  { %v1815_v53 = vmax.f32 %v1813_v61, %v1814_v36  ;;  %v1877_v31 = vsel %vm217_vm0, %v1598_v27, -inf  ;;  %vm5199_vm1 = vcmp.gt.f32.partialorder %v4081_v46, 0.0  ;;  %v115_v48 = vpack.c.bf16 %v109_v28, %v108_v5  ;;  %v106_v61 = vld [vmem:[#allocation2 + $0x180] sm:$0xff]  ;;  %v5397_v28 = vld [vmem:[#allocation101_spill] sm:$0xff] }
 0x2e2   :  { %v1874_v50 = vmax.f32 %v1872_v51, %v1867_v54  ;;  %v1610_v39 = vsel %vm5197_vm12, %v3860_v25, 0.0  ;;  %v1609_v40 = vsel %vm5198_vm10, %v3860_v25, 0.0  ;;  %v107_v54 = vld [vmem:[#allocation2 + $0x188] sm:$0xff]  ;;  %v1818_v36 = vsel %vm217_vm0, %v1605_v44, -inf }
 0x2e3   :  { %v4109_v12 = vpop.permute.xlu1 %789  ;;  %v1817_v58 = vmax.f32 %v1815_v53, %v1816_v57  ;;  %2528 = vmatpush.bf16.msrb.mxu0 %v115_v48  ;;  %v114_v51 = vpack.c.bf16 %v107_v54, %v106_v61  ;;  %v1602_v6 = vsel %vm5199_vm1, %v3820_v4, 0.0  ;;  %v1883_v53 = vsel %vm217_vm0, %v1610_v39, -inf }
 0x2e4   :  { %v1876_v34 = vmax.f32 %v1874_v50, %v1871_v22  ;;  %vm5200_vm4 = vcmp.gt.f32.partialorder %v4109_v12, 0.0  ;;  %vm5202_vm12 = vcmp.gt.f32.partialorder %v4083_v15, 0.0  ;;  %v1820_v25 = vsel %vm217_vm0, %v1609_v40, -inf }
 0x2e5   :  { %v1613_v22 = vsel %vm5200_vm4, %v3866_v38, 0.0  ;;  %vm5206_vm10 = vcmp.gt.f32.partialorder %v4248_v59, 0.0  ;;  %v1819_v27 = vmax.f32 %v1817_v58, %v1818_v36  ;;  %v1879_v57 = vsel %vm217_vm0, %v1602_v6, -inf }
 0x2e6   :  { %v1878_v21 = vmax.f32 %v1876_v34, %v1875_v8  ;;  %v1822_v4 = vsel %vm217_vm0, %v1613_v22, -inf  ;;  %v1614_v44 = vsel %vm5202_vm12, %v3866_v38, 0.0  ;;  %vm5204_vm4 = vcmp.gt.f32.partialorder %v4091_v19, 0.0 }
 0x2e7   :  { %2529 = vmatpush.bf16.msrb.mxu0 %v114_v51  ;;  %v1821_v5 = vmax.f32 %v1819_v27, %v1820_v25  ;;  %v4282_v48 = vpop.permute.xlu0 %939  ;;  %v1885_v40 = vsel %vm217_vm0, %v1614_v44, -inf  ;;  %v1621_v61 = vsel %vm5204_vm4, %v3905_v43, 0.0  ;;  %vm5208_vm12 = vcmp.gt.f32.partialorder %v4116_v62, 0.0 }
 0x2e8   :  { %v1880_v20 = vmax.f32 %v1878_v21, %v1877_v31  ;;  %v1617_v31 = vsel %vm5206_vm10, %v5397_v28, 0.0  ;;  %5398 = vst [vmem:[#allocation35_spill] sm:$0xff] %v4282_v48  ;;  %v1826_v25 = vsel %vm217_vm0, %v1621_v61, -inf  ;;  %v5402_v61 = vld [vmem:[#allocation66_spill] sm:$0xff] }
 0x2e9   :  { %v1823_v58 = vmax.f32 %v1821_v5, %v1822_v4  ;;  %v1824_v38 = vsel %vm217_vm0, %v1617_v31, -inf }
 0x2ea   :  { %v1882_v34 = vmax.f32 %v1880_v20, %v1883_v53  ;;  %v1943_v53 = vpop.f32.mrf.mxu3 }
 0x2eb   :  { %v4154_v60 = vpop.permute.xlu2 %895  ;;  %v1825_v6 = vmax.f32 %v1823_v58, %v1824_v38 }
 0x2ec   :  { %5384 = vst [vmem:[#allocation75_spill] sm:$0xff] %v4154_v60  ;;  %vm5203_vm1 = vcmp.gt.f32.partialorder %v4154_v60, 0.0  ;;  %v1884_v21 = vmax.f32 %v1882_v34, %v1879_v57  ;;  %v1625_v57 = vsel %vm5208_vm12, %v3911_v63, 0.0  ;;  %vm1157_vm12 = vcmp.gt.f32.partialorder %v4282_v48, 0.0 }
 0x2ed   :  { %v1630_v39 = vsel %vm5203_vm1, %v3941_v45, 0.0  ;;  %v1827_v5 = vmax.f32 %v1825_v6, %v1826_v25  ;;  %v1828_v58 = vsel %vm217_vm0, %v1625_v57, -inf }
 0x2ee   :  { %v1893_v51 = vsel %vm217_vm0, %v1630_v39, -inf  ;;  %v1886_v20 = vmax.f32 %v1884_v21, %v1885_v40 }
 0x2ef   :  { %v4321_v40 = vpop.permute.xlu0 %995 }
 0x2f0   :  { %v1888_v4 = vmax.f32 %v1886_v20, %v1893_v51  ;;  %5401 = vst [vmem:[#allocation88_spill] sm:$0xff] %v4321_v40  ;;  %v1829_v51 = vmax.f32 %v1827_v5, %v1828_v58  ;;  %v1637_v5 = vsel %vm1157_vm12, %v3977_v56, 0.0 }
 0x2f3   :  { %v4133_v1 = vpop.permute.xlu1 %820  ;;  %v4196_v42 = vpop.permute.xlu2 %920 }
 0x2f4   :  { %5392 = vst [vmem:[#allocation78_spill] sm:$0xff] %v4196_v42  ;;  %vm5205_vm9 = vcmp.gt.f32.partialorder %v4133_v1, 0.0  ;;  %vm5207_vm1 = vcmp.gt.f32.partialorder %v4196_v42, 0.0 }
 0x2f5   :  { %v1618_v54 = vsel %vm5205_vm9, %v5397_v28, 0.0  ;;  %v1634_v34 = vsel %vm5207_vm1, %v3949_v2, 0.0  ;;  %vm5212_vm1 = vcmp.gt.f32.partialorder %v5402_v61, 0.0 }
 0x2f6   :  { %v1887_v27 = vsel %vm217_vm0, %v1618_v54, -inf  ;;  %v1895_v39 = vsel %vm217_vm0, %v1634_v34, -inf }
 0x2f7   :  { %v1890_v28 = vmax.f32 %v1888_v4, %v1887_v27  ;;  %v168_v27 = vld [vmem:[#allocation2 + $0x2e0] sm:$0xff] }
 0x2fb   :  { %v4185_v10 = vpop.permute.xlu1 %845 }
 0x2fc   :  { %vm5209_vm4 = vcmp.gt.f32.partialorder %v4185_v10, 0.0 }
 0x2fd   :  { %v1622_v31 = vsel %vm5209_vm4, %v3905_v43, 0.0  ;;  %vm5214_vm4 = vcmp.gt.f32.partialorder %v4321_v40, 0.0  ;;  %v5428_v40 = vld [vmem:[#allocation69_spill] sm:$0xff] }
 0x2fe   :  { %v1889_v43 = vsel %vm217_vm0, %v1622_v31, -inf  ;;  %v1945_v31 = vpop.f32.mrf.mxu3 }
 0x303   :  { %v4231_v37 = vpop.permute.xlu2 %964 }
 0x304   :  { %5395 = vst [vmem:[#allocation61_spill] sm:$0xff] %v4231_v37 }
 0x30b   :  { %v4220_v35 = vpop.permute.xlu1 %889  ;;  %v4269_v8 = vpop.permute.xlu2 %989 }
 0x30c   :  { %5396 = vst [vmem:[#allocation82_spill] sm:$0xff] %v4269_v8  ;;  %vm5211_vm9 = vcmp.gt.f32.partialorder %v4220_v35, 0.0 }
 0x30d   :  { %v1629_v21 = vsel %vm5211_vm9, %v3941_v45, 0.0  ;;  %v1892_v45 = vmax.f32 %v1890_v28, %v1895_v39  ;;  %vm5215_vm9 = vcmp.gt.f32.partialorder %v4231_v37, 0.0 }
 0x30e   :  { %v1830_v54 = vsel %vm217_vm0, %v1629_v21, -inf }
 0x30f   :  { %v1894_v57 = vmax.f32 %v1892_v45, %v1889_v43  ;;  %v1831_v4 = vmax.f32 %v1829_v51, %v1830_v54  ;;  %v1834_v51 = vsel %vm217_vm0, %v1637_v5, -inf }
 0x313   :  { %v4263_v50 = vpop.permute.xlu1 %914 }
 0x314   :  { %vm5210_vm10 = vcmp.gt.f32.partialorder %v4263_v50, 0.0 }
 0x315   :  { %v1633_v38 = vsel %vm5210_vm10, %v3949_v2, 0.0  ;;  %v1626_v2 = vsel %vm5212_vm1, %v3911_v63, 0.0 }
 0x316   :  { %v1832_v25 = vsel %vm217_vm0, %v1633_v38, -inf  ;;  %v1891_v39 = vsel %vm217_vm0, %v1626_v2, -inf }
 0x317   :  { %v1833_v63 = vmax.f32 %v1831_v4, %v1832_v25  ;;  %v1896_v38 = vmax.f32 %v1894_v57, %v1891_v39  ;;  %v1641_v25 = vsel %vm5215_vm9, %v3984_v14, 0.0 }
 0x31b   :  { %v4300_v22 = vpop.permute.xlu2 %1020 }
 0x31c   :  { %5400 = vst [vmem:[#allocation68_spill] sm:$0xff] %v4300_v22  ;;  %vm5213_vm10 = vcmp.gt.f32.partialorder %v4300_v22, 0.0  ;;  %v5422_v22 = vld [vmem:[#allocation63_spill] sm:$0xff] }
 0x31d   :  { %v1650_v43 = vsel %vm5213_vm10, %v4020_v24, 0.0  ;;  %vm1165_vm10 = vcmp.gt.f32.partialorder %v4269_v8, 0.0 }
 0x323   :  { %v4295_v36 = vpop.permute.xlu1 %945  ;;  %v4337_v34 = vpop.permute.xlu2 %1045 }
 0x324   :  { %5399 = vst [vmem:[#allocation83_spill] sm:$0xff] %v4295_v36  ;;  %vm5216_vm1 = vcmp.gt.f32.partialorder %v4337_v34, 0.0  ;;  %vm1158_vm9 = vcmp.gt.f32.partialorder %v4295_v36, 0.0 }
 0x325   :  { %5404 = vst [vmem:[#allocation65_spill] sm:$0xff] %v4337_v34 }
 0x32b   :  { %v4331_v20 = vpop.permute.xlu1 %970 }
 0x32c   :  { %5403 = vst [vmem:[#allocation93_spill] sm:$0xff] %v4331_v20 }
 0x32e   :  { %v1924_v44 = vpop.f32.mrf.mxu2 }
 0x32f   :  { %v1944_v6 = vadd.f32 %v1943_v53, %v1924_v44  ;;  %v1646_v53 = vsel %vm5214_vm4, %v3997_v16, 0.0  ;;  %v169_v44 = vld [vmem:[#allocation2 + $0x2e8] sm:$0xff] }
 0x330   :  { %v1901_v45 = vsel %vm217_vm0, %v1646_v53, -inf }
 0x331   :  { %v1953_v21 = vadd.f32 %v1944_v6, %v168_v27  ;;  %v1835_v6 = vmax.f32 %v1833_v63, %v1834_v51  ;;  %v1654_v27 = vsel %vm5216_vm1, %v4031_v30, 0.0  ;;  %v1898_v5 = vmax.f32 %v1896_v38, %v1901_v45 }
 0x332   :  { %vm1162_vm1 = vcmp.gt.f32.partialorder %v4331_v20, 0.0  ;;  %v1645_v63 = vsel %vm1165_vm10, %v3997_v16, 0.0 }
 0x333   :  { %v1957_v2 = vmax.f32 %v1953_v21, 0.0  ;;  %v1642_v16 = vsel %vm1162_vm1, %v3984_v14, 0.0 }
 0x336   :  { %v1926_v28 = vpop.f32.mrf.mxu2 }
 0x337   :  { %v1946_v58 = vadd.f32 %v1945_v31, %v1926_v28  ;;  %v1903_v31 = vsel %vm217_vm0, %v1650_v43, -inf  ;;  %v1905_v28 = vsel %vm217_vm0, %v1654_v27, -inf  ;;  %v1638_v43 = vsel %vm1158_vm9, %v3977_v56, 0.0 }
 0x338   :  { %v1900_v21 = vmax.f32 %v1898_v5, %v1903_v31 }
 0x339   :  { %v1954_v54 = vadd.f32 %v1946_v58, %v169_v44  ;;  %v1836_v44 = vsel %vm217_vm0, %v1641_v25, -inf  ;;  %v1897_v25 = vsel %vm217_vm0, %v1638_v43, -inf  ;;  %v170_v43 = vld [vmem:[#allocation2 + $0x2f0] sm:$0xff] }
 0x33a   :  { %v1837_v39 = vmax.f32 %v1835_v6, %v1836_v44  ;;  %v1902_v38 = vmax.f32 %v1900_v21, %v1905_v28  ;;  %v1899_v6 = vsel %vm217_vm0, %v1642_v16, -inf  ;;  %v101_v44 = vld [vmem:[#allocation2 + $0x178] sm:$0xff]  ;;  %v1948_v21 = vpop.f32.mrf.mxu3 }
 0x33b   :  { %v1958_v57 = vmax.f32 %v1954_v54, 0.0  ;;  %v4360_v4 = vpop.permute.xlu1 %1014  ;;  %v1838_v54 = vsel %vm217_vm0, %v1645_v63, -inf }
 0x33c   :  { %5405 = vst [vmem:[#allocation46_spill] sm:$0xff] %v4360_v4  ;;  %vm5217_vm4 = vcmp.gt.f32.partialorder %v4360_v4, 0.0  ;;  %v1839_v51 = vmax.f32 %v1837_v39, %v1838_v54  ;;  %v1904_v27 = vmax.f32 %v1902_v38, %v1897_v25  ;;  %v171_v54 = vld [vmem:[#allocation2 + $0x2f8] sm:$0xff] }
 0x33d   :  { %v1961_v53 = vpack.c.bf16 %v1958_v57, %v1957_v2  ;;  %v1649_v58 = vsel %vm5217_vm4, %v4020_v24, 0.0 }
 0x33e   :  { %v1840_v24 = vsel %vm217_vm0, %v1649_v58, -inf  ;;  %v1906_v57 = vmax.f32 %v1904_v27, %v1899_v6  ;;  %v96_v27 = vld [vmem:[#allocation2 + $0x150] sm:$0xff] }
 0x33f   :  { %2809 = vmatmul.msk.bf16.vlgmr.msrb.gmra.mxu1 %vm217_vm0, %v1961_v53  ;;  %2813 = vmatmul.msk.bf16.vlgmr.msrb.gmra.mxu3 %vm217_vm0, %v1961_v53  ;;  %v1841_v2 = vmax.f32 %v1839_v51, %v1840_v24  ;;  %v99_v24 = vld [vmem:[#allocation2 + $0x168] sm:$0xff] }
 0x340   :  { %2815 = vmatmul.msk.bf16.vlgmr.msrb.gmra.mxu0 %vm217_vm0, %v1961_v53  ;;  %v100_v53 = vld [vmem:[#allocation2 + $0x170] sm:$0xff] }
 0x341   :  { %v105_v28 = vpack.c.bf16 %v101_v44, %v100_v53  ;;  %v95_v53 = vld [vmem:[#allocation2 + $0x148] sm:$0xff] }
 0x342   :  { %v1950_v38 = vpop.f32.mrf.mxu3 }
 0x343   :  { %v4386_v45 = vpop.permute.xlu1 %1039  ;;  %2545 = vmatpush.bf16.msra.mxu1 %v105_v28  ;;  %v5407_v28 = vld [vmem:[#allocation10_spill] sm:$0xff] }
 0x344   :  { %5406 = vst [vmem:[#allocation99_spill] sm:$0xff] %v4386_v45  ;;  %vm1173_vm4 = vcmp.gt.f32.partialorder %v4386_v45, 0.0 }
 0x345   :  { %v1653_v56 = vsel %vm1173_vm4, %v4031_v30, 0.0  ;;  %v98_v30 = vld [vmem:[#allocation2 + $0x160] sm:$0xff] }
 0x346   :  { %v1842_v14 = vsel %vm217_vm0, %v1653_v56, -inf  ;;  %v104_v6 = vpack.c.bf16 %v99_v24, %v98_v30  ;;  %v5420_v24 = vld [vmem:[#allocation55_spill] sm:$0xff] }
 0x347   :  { %v1843_v31 = vmax.f32 %v1841_v2, %v1842_v14  ;;  %v97_v2 = vld [vmem:[#allocation2 + $0x158] sm:$0xff] }
 0x348   :  { %2546 = vmatpush.bf16.msra.mxu1 %v104_v6 }
 0x349   :  { %v1908_v5 = vpack.c.bf16 %v1906_v57, %v1843_v31  ;;  %v103_v57 = vpack.c.bf16 %v97_v2, %v96_v27 }
 0x34b   :  { %2806 = vmatmul.msk.bf16.gmra.mxu2 %vm217_vm0, %v1908_v5  ;;  %v94_v5 = vld [vmem:[#allocation2 + $0x140] sm:$0xff] }
 0x34c   :  { %2547 = vmatpush.bf16.msra.mxu1 %v103_v57  ;;  %v102_v44 = vpack.c.bf16 %v95_v53, %v94_v5 }
 0x350   :  { %2548 = vmatpush.bf16.msra.mxu1 %v102_v44 }
 0x3ce   :  { %v1929_v63 = vpop.f32.mrf.mxu2 }
 0x3cf   :  { %v1949_v39 = vadd.f32 %v1948_v21, %v1929_v63  ;;  %v5408_v63 = vld [vmem:[#allocation14_spill] sm:$0xff]  ;;  %v1978_v21 = vpop.f32.mrf.mxu1 }
 0x3d1   :  { %v1955_v51 = vadd.f32 %v1949_v39, %v170_v43 }
 0x3d3   :  { %v1959_v56 = vmax.f32 %v1955_v51, 0.0 }
 0x3d6   :  { %v1931_v58 = vpop.f32.mrf.mxu2 }
 0x3d7   :  { %v1951_v16 = vadd.f32 %v1950_v38, %v1931_v58  ;;  %v2933_v58 = vld [vmem:[#allocation2 + $0x2c0] sm:$0xff] }
 0x3d8   :  { %v1979_v39 = vadd.f32 %v2933_v58, %v1978_v21  ;;  %v5418_v58 = vld [vmem:[#allocation12_spill] sm:$0xff] }
 0x3d9   :  { %v1956_v25 = vadd.f32 %v1951_v16, %v171_v54 }
 0x3da   :  { %v4403_v38 = vmax.f32 %v1979_v39, 0.0 }
 0x3db   :  { %v1960_v14 = vmax.f32 %v1956_v25, 0.0 }
 0x3dc   :  { %v1996_v43 = vrot.slane %v4403_v38, 1  ;;  %v1997_v54 = vrot.slane %v4403_v38, 2  ;;  %v2024_v30 = vperm.slane %v4403_v38, 0  ;;  %v1998_v25 = vrot.slane %v4403_v38, 3 }
 0x3dd   :  { %v1962_v31 = vpack.c.bf16 %v1960_v14, %v1959_v56  ;;  %v1999_v21 = vrot.slane %v4403_v38, 4  ;;  %v2000_v5 = vrot.slane %v4403_v38, 5 }
 0x3de   :  { %v2025_v16 = vperm.slane %v1996_v43, 0  ;;  %v2026_v2 = vperm.slane %v1997_v54, 0  ;;  %v2088_v14 = vsel %vm1047_vm15, %v2024_v30, 0.0  ;;  %v2089_v53 = vsel %vm1048_vm14, %v2024_v30, 0.0 }
 0x3df   :  { %2810 = vmatmul.msk.bf16.gmra.mxu1 %vm217_vm0, %v1962_v31  ;;  %2814 = vmatmul.msk.bf16.gmra.mxu3 %vm217_vm0, %v1962_v31  ;;  %v2090_v39 = vsel %vm1049_vm2, %v2024_v30, 0.0  ;;  %v2027_v54 = vperm.slane %v1998_v25, 0  ;;  %v2091_v6 = vsel %vm1050_vm6, %v2024_v30, 0.0  ;;  %v2216_v56 = vsel %vm217_vm0, %v2088_v14, -inf }
 0x3e0   :  { %2816 = vmatmul.msk.bf16.gmra.mxu0 %vm217_vm0, %v1962_v31  ;;  %v2092_v51 = vsel %vm1051_vm5, %v2025_v16, 0.0  ;;  %v2093_v27 = vsel %vm1052_vm8, %v2025_v16, 0.0  ;;  %v2094_v31 = vsel %vm1053_vm3, %v2025_v16, 0.0  ;;  %vm5419_vm2 = vcmp.gt.f32.partialorder %v5418_v58, 0.0  ;;  %v5424_v58 = vld [vmem:[#allocation20_spill] sm:$0xff] }
 0x3e1   :  { %v2280_v43 = vsel %vm217_vm0, %v2093_v27, -inf  ;;  %v2343_v57 = vsel %vm217_vm0, %v2094_v31, -inf  ;;  %v2097_v45 = vsel %vm5419_vm2, %v2026_v2, 0.0  ;;  %v2342_v25 = vsel %vm217_vm0, %v2090_v39, -inf }
 0x3e2   :  { %vm5421_vm3 = vcmp.gt.f32.partialorder %v5420_v24, 0.0  ;;  %v2344_v14 = vmax.f32 %v2342_v25, %v2343_v57  ;;  %v2405_v31 = vsel %vm217_vm0, %v2091_v6, -inf  ;;  %vm5423_vm5 = vcmp.gt.f32.partialorder %v5422_v22, 0.0  ;;  %v5426_v24 = vld [vmem:[#allocation16_spill] sm:$0xff] }
 0x3e3   :  { %v2098_v30 = vsel %vm5421_vm3, %v2026_v2, 0.0  ;;  %vm5425_vm6 = vcmp.gt.f32.partialorder %v5424_v58, 0.0  ;;  %v2282_v39 = vsel %vm217_vm0, %v2097_v45, -inf  ;;  %vm5429_vm8 = vcmp.gt.f32.partialorder %v5428_v40, 0.0  ;;  %v5432_v58 = vld [vmem:[#allocation8_spill] sm:$0xff]  ;;  %v5434_v40 = vld [vmem:[#allocation23_spill] sm:$0xff] }
 0x3e4   :  { %v2345_v6 = vsel %vm217_vm0, %v2098_v30, -inf  ;;  %v2102_v22 = vsel %vm5429_vm8, %v2027_v54, 0.0  ;;  %vm5433_vm14 = vcmp.gt.f32.partialorder %v5432_v58, 0.0  ;;  %vm5435_vm15 = vcmp.gt.f32.partialorder %v5434_v40, 0.0  ;;  %v5439_v58 = vld [vmem:[#allocation19_spill] sm:$0xff] }
 0x3e5   :  { %vm5438_vm3 = vcmp.gt.f32.partialorder %v5378_v55, 0.0 }
 0x3ef   :  { %2817 = vmatmul.msk.bf16.vlgmr.msra.gmra.mxu1 %vm217_vm0, %v5407_v28  ;;  %v2095_v28 = vsel %vm1054_vm7, %v2025_v16, 0.0  ;;  %v2096_v16 = vsel %vm1055_vm13, %v2026_v2, 0.0  ;;  %vm5427_vm7 = vcmp.gt.f32.partialorder %v5426_v24, 0.0 }
 0x3f0   :  { %v2406_v34 = vsel %vm217_vm0, %v2095_v28, -inf  ;;  %v2101_v57 = vsel %vm5427_vm7, %v2027_v54, 0.0 }
 0x3f1   :  { %v2407_v28 = vmax.f32 %v2405_v31, %v2406_v34  ;;  %v2001_v34 = vrot.slane %v4403_v38, 6  ;;  %v2284_v30 = vsel %vm217_vm0, %v2101_v57, -inf }
 0x3ff   :  { %2818 = vmatmul.msk.bf16.gmra.mxu1 %vm217_vm0, %v5408_v63  ;;  %v2217_v63 = vsel %vm217_vm0, %v2092_v51, -inf  ;;  %v2279_v51 = vsel %vm217_vm0, %v2089_v53, -inf  ;;  %v2219_v53 = vsel %vm217_vm0, %v2096_v16, -inf }
 0x400   :  { %v2218_v44 = vmax.f32 %v2216_v56, %v2217_v63  ;;  %v2281_v27 = vmax.f32 %v2279_v51, %v2280_v43  ;;  %v2099_v63 = vsel %vm5423_vm5, %v2026_v2, 0.0  ;;  %v2028_v56 = vperm.slane %v1999_v21, 0  ;;  %v5430_v21 = vld [vmem:[#allocation64_spill] sm:$0xff] }
 0x401   :  { %v2100_v43 = vsel %vm5425_vm6, %v2027_v54, 0.0  ;;  %v2346_v2 = vmax.f32 %v2344_v14, %v2345_v6  ;;  %v2408_v16 = vsel %vm217_vm0, %v2099_v63, -inf  ;;  %vm5431_vm13 = vcmp.gt.f32.partialorder %v5430_v21, 0.0  ;;  %v1980_v6 = vpop.f32.mrf.mxu1 }
 0x402   :  { %v2220_v51 = vmax.f32 %v2218_v44, %v2219_v53  ;;  %v2283_v25 = vmax.f32 %v2281_v27, %v2282_v39  ;;  %v2103_v31 = vsel %vm5431_vm13, %v2027_v54, 0.0  ;;  %v2221_v44 = vsel %vm217_vm0, %v2100_v43, -inf  ;;  %v5436_v54 = vld [vmem:[#allocation70_spill] sm:$0xff] }
 0x403   :  { %v2409_v45 = vmax.f32 %v2407_v28, %v2408_v16  ;;  %v2029_v53 = vperm.slane %v2000_v5, 0  ;;  %v2104_v27 = vsel %vm5433_vm14, %v2028_v56, 0.0  ;;  %v2105_v14 = vsel %vm5435_vm15, %v2028_v56, 0.0 }
 0x404   :  { %v2222_v39 = vmax.f32 %v2220_v51, %v2221_v44  ;;  %v2285_v24 = vmax.f32 %v2283_v25, %v2284_v30  ;;  %v2347_v63 = vsel %vm217_vm0, %v2102_v22, -inf  ;;  %v2002_v21 = vrot.slane %v4403_v38, 7  ;;  %v2934_v38 = vld [vmem:[#allocation2 + $0x2c8] sm:$0xff] }
 0x405   :  { %vm5437_vm2 = vcmp.gt.f32.partialorder %v5436_v54, 0.0  ;;  %v2348_v28 = vmax.f32 %v2346_v2, %v2347_v63  ;;  %v2410_v5 = vsel %vm217_vm0, %v2103_v31, -inf  ;;  %v2030_v16 = vperm.slane %v2001_v34, 0  ;;  %v5441_v54 = vld [vmem:[#allocation26_spill] sm:$0xff]  ;;  %v5443_v31 = vld [vmem:[#allocation72_spill] sm:$0xff] }
 0x406   :  { %v2106_v43 = vsel %vm5437_vm2, %v2028_v56, 0.0  ;;  %v2107_v51 = vsel %vm5438_vm3, %v2028_v56, 0.0  ;;  %v2223_v57 = vsel %vm217_vm0, %v2104_v27, -inf  ;;  %v2411_v44 = vmax.f32 %v2409_v45, %v2410_v5  ;;  %v5445_v5 = vld [vmem:[#allocation52_spill] sm:$0xff] }
 0x407   :  { %vm5440_vm5 = vcmp.gt.f32.partialorder %v5439_v58, 0.0  ;;  %v2224_v22 = vmax.f32 %v2222_v39, %v2223_v57  ;;  %v2286_v30 = vsel %vm217_vm0, %v2105_v14, -inf  ;;  %v1981_v40 = vadd.f32 %v2934_v38, %v1980_v6  ;;  %v5447_v6 = vld [vmem:[#allocation22_spill] sm:$0xff] }
 0x408   :  { %v2108_v25 = vsel %vm5440_vm5, %v2029_v53, 0.0  ;;  %vm5442_vm6 = vcmp.gt.f32.partialorder %v5441_v54, 0.0  ;;  %v2287_v63 = vmax.f32 %v2285_v24, %v2286_v30  ;;  %v2349_v34 = vsel %vm217_vm0, %v2106_v43, -inf  ;;  %v5449_v30 = vld [vmem:[#allocation32_spill] sm:$0xff] }
 0x409   :  { %v2109_v2 = vsel %vm5442_vm6, %v2029_v53, 0.0  ;;  %vm5444_vm7 = vcmp.gt.f32.partialorder %v5443_v31, 0.0  ;;  %v2350_v56 = vmax.f32 %v2348_v28, %v2349_v34  ;;  %v2412_v45 = vsel %vm217_vm0, %v2107_v51, -inf }
 0x40a   :  { %v2110_v55 = vsel %vm5444_vm7, %v2029_v53, 0.0  ;;  %v2031_v27 = vperm.slane %v2002_v21, 0  ;;  %vm5446_vm8 = vcmp.gt.f32.partialorder %v5445_v5, 0.0  ;;  %v2225_v14 = vsel %vm217_vm0, %v2108_v25, -inf }
 0x40b   :  { %v2111_v39 = vsel %vm5446_vm8, %v2029_v53, 0.0  ;;  %v2413_v57 = vmax.f32 %v2411_v44, %v2412_v45  ;;  %vm5448_vm13 = vcmp.gt.f32.partialorder %v5447_v6, 0.0  ;;  %v2226_v38 = vmax.f32 %v2224_v22, %v2225_v14  ;;  %v5453_v22 = vld [vmem:[#allocation28_spill] sm:$0xff] }
 0x40c   :  { %v2112_v58 = vsel %vm5448_vm13, %v2030_v16, 0.0  ;;  %v2288_v24 = vsel %vm217_vm0, %v2109_v2, -inf  ;;  %v4485_v43 = vmax.f32 %v1981_v40, 0.0  ;;  %vm5450_vm14 = vcmp.gt.f32.partialorder %v5449_v30, 0.0  ;;  %v5455_v40 = vld [vmem:[#allocation24_spill] sm:$0xff] }
 0x40d   :  { %v2113_v28 = vsel %vm5450_vm14, %v2030_v16, 0.0  ;;  %v2289_v54 = vmax.f32 %v2287_v63, %v2288_v24  ;;  %v2351_v21 = vsel %vm217_vm0, %v2110_v55, -inf  ;;  %vm5451_vm15 = vcmp.gt.f32.partialorder %v3549_v41, 0.0 }
 0x40e   :  { %v2114_v53 = vsel %vm5451_vm15, %v2030_v16, 0.0  ;;  %vm5452_vm2 = vcmp.gt.f32.partialorder %v5379_v18, 0.0  ;;  %v2352_v44 = vmax.f32 %v2350_v56, %v2351_v21  ;;  %v2414_v25 = vsel %vm217_vm0, %v2111_v39, -inf }
 0x40f   :  { %v2115_v51 = vsel %vm5452_vm2, %v2030_v16, 0.0  ;;  %vm5454_vm3 = vcmp.gt.f32.partialorder %v5453_v22, 0.0  ;;  %vm5456_vm5 = vcmp.gt.f32.partialorder %v5455_v40, 0.0  ;;  %v2227_v31 = vsel %vm217_vm0, %v2112_v58, -inf }
 0x410   :  { %v2116_v2 = vsel %vm5454_vm3, %v2031_v27, 0.0  ;;  %v2117_v34 = vsel %vm5456_vm5, %v2031_v27, 0.0  ;;  %v2415_v63 = vmax.f32 %v2413_v57, %v2414_v25  ;;  %v2228_v45 = vmax.f32 %v2226_v38, %v2227_v31 }
 0x411   :  { %v2290_v55 = vsel %vm217_vm0, %v2113_v28, -inf  ;;  %v2003_v41 = vrot.slane %v4485_v43, 1  ;;  %v2032_v18 = vperm.slane %v4485_v43, 0  ;;  %v2353_v56 = vsel %vm217_vm0, %v2114_v53, -inf }
 0x412   :  { %v2291_v16 = vmax.f32 %v2289_v54, %v2290_v55  ;;  %vm5457_vm6 = vcmp.gt.f32.partialorder %v3544_v32, 0.0  ;;  %v2354_v39 = vmax.f32 %v2352_v44, %v2353_v56  ;;  %v2416_v14 = vsel %vm217_vm0, %v2115_v51, -inf  ;;  %v5458_v54 = vld [vmem:[#allocation31_spill] sm:$0xff] }
 0x413   :  { %v2118_v5 = vsel %vm5457_vm6, %v2031_v27, 0.0  ;;  %v2119_v6 = vsel %vm1078_vm11, %v2031_v27, 0.0  ;;  %v2229_v57 = vsel %vm217_vm0, %v2116_v2, -inf  ;;  %v2292_v58 = vsel %vm217_vm0, %v2117_v34, -inf  ;;  %v5460_v44 = vld [vmem:[#allocation27_spill] sm:$0xff] }
 0x414   :  { %v2417_v38 = vmax.f32 %v2415_v63, %v2416_v14  ;;  %v2230_v24 = vmax.f32 %v2228_v45, %v2229_v57  ;;  %v2004_v30 = vrot.slane %v4485_v43, 2  ;;  %v2033_v28 = vperm.slane %v2003_v41, 0  ;;  %v5464_v63 = vld [vmem:[#allocation11_spill] sm:$0xff] }
 0x415   :  { %vm5459_vm7 = vcmp.gt.f32.partialorder %v5458_v54, 0.0  ;;  %v2293_v32 = vmax.f32 %v2291_v16, %v2292_v58  ;;  %v2355_v53 = vsel %vm217_vm0, %v2118_v5, -inf  ;;  %vm5461_vm8 = vcmp.gt.f32.partialorder %v5460_v44, 0.0  ;;  %v5466_v16 = vld [vmem:[#allocation34_spill] sm:$0xff] }
 0x416   :  { %v2120_v21 = vsel %vm5459_vm7, %v2032_v18, 0.0  ;;  %v2121_v51 = vsel %vm5461_vm8, %v2032_v18, 0.0  ;;  %v2356_v13 = vmax.f32 %v2354_v39, %v2355_v53  ;;  %v2418_v27 = vsel %vm217_vm0, %v2119_v6, -inf }
 0x417   :  { %v2005_v25 = vrot.slane %v4485_v43, 3  ;;  %v2419_v22 = vmax.f32 %v2417_v38, %v2418_v27  ;;  %vm5462_vm11 = vcmp.gt.f32.partialorder %v3605_v9, 0.0  ;;  %vm5463_vm13 = vcmp.gt.f32.partialorder %v5382_v23, 0.0  ;;  %v5476_v27 = vld [vmem:[#allocation56_spill] sm:$0xff] }
 0x418   :  { %v2122_v2 = vsel %vm5462_vm11, %v2032_v18, 0.0  ;;  %v2123_v40 = vsel %vm5463_vm13, %v2032_v18, 0.0  ;;  %v2231_v34 = vsel %vm217_vm0, %v2120_v21, -inf  ;;  %v2034_v31 = vperm.slane %v2004_v30, 0 }
 0x419   :  { %vm5465_vm14 = vcmp.gt.f32.partialorder %v5464_v63, 0.0  ;;  %v2232_v55 = vmax.f32 %v2230_v24, %v2231_v34  ;;  %v2294_v41 = vsel %vm217_vm0, %v2121_v51, -inf  ;;  %vm5467_vm15 = vcmp.gt.f32.partialorder %v5466_v16, 0.0  ;;  %v5470_v24 = vld [vmem:[#allocation30_spill] sm:$0xff]  ;;  %v5474_v51 = vld [vmem:[#allocation87_spill] sm:$0xff]  ;;  %v5478_v63 = vld [vmem:[#allocation33_spill] sm:$0xff] }
 0x41a   :  { %v2124_v45 = vsel %vm5465_vm14, %v2033_v28, 0.0  ;;  %v2125_v56 = vsel %vm5467_vm15, %v2033_v28, 0.0  ;;  %v2295_v5 = vmax.f32 %v2293_v32, %v2294_v41  ;;  %v2006_v39 = vrot.slane %v4485_v43, 4  ;;  %v5480_v16 = vld [vmem:[#allocation36_spill] sm:$0xff] }
 0x41b   :  { %vm5468_vm2 = vcmp.gt.f32.partialorder %v4099_v29, 0.0  ;;  %v2357_v23 = vsel %vm217_vm0, %v2122_v2, -inf  ;;  %v2420_v18 = vsel %vm217_vm0, %v2123_v40, -inf  ;;  %vm5469_vm3 = vcmp.gt.f32.partialorder %v5387_v33, 0.0  ;;  %v5472_v29 = vld [vmem:[#allocation38_spill] sm:$0xff] }
 0x41c   :  { %v2126_v9 = vsel %vm5468_vm2, %v2033_v28, 0.0  ;;  %v2127_v14 = vsel %vm5469_vm3, %v2033_v28, 0.0  ;;  %v2233_v6 = vsel %vm217_vm0, %v2124_v45, -inf  ;;  %v2358_v57 = vmax.f32 %v2356_v13, %v2357_v23  ;;  %v5482_v23 = vld [vmem:[#allocation94_spill] sm:$0xff] }
 0x41d   :  { %v2421_v58 = vmax.f32 %v2419_v22, %v2420_v18  ;;  %v2035_v38 = vperm.slane %v2005_v25, 0  ;;  %vm5471_vm5 = vcmp.gt.f32.partialorder %v5470_v24, 0.0  ;;  %v2234_v54 = vmax.f32 %v2232_v55, %v2233_v6 }
 0x41e   :  { %v2128_v30 = vsel %vm5471_vm5, %v2034_v31, 0.0  ;;  %v2296_v21 = vsel %vm217_vm0, %v2125_v56, -inf  ;;  %vm5473_vm6 = vcmp.gt.f32.partialorder %v5472_v29, 0.0  ;;  %v2007_v44 = vrot.slane %v4485_v43, 5 }
 0x41f   :  { %v2129_v32 = vsel %vm5473_vm6, %v2034_v31, 0.0  ;;  %v2297_v53 = vmax.f32 %v2295_v5, %v2296_v21  ;;  %vm5475_vm7 = vcmp.gt.f32.partialorder %v5474_v51, 0.0  ;;  %v2359_v28 = vsel %vm217_vm0, %v2126_v9, -inf }
 0x420   :  { %v2130_v33 = vsel %vm5475_vm7, %v2034_v31, 0.0  ;;  %v2422_v13 = vsel %vm217_vm0, %v2127_v14, -inf  ;;  %vm5477_vm8 = vcmp.gt.f32.partialorder %v5476_v27, 0.0  ;;  %v2235_v22 = vsel %vm217_vm0, %v2128_v30, -inf  ;;  %v5490_v27 = vld [vmem:[#allocation95_spill] sm:$0xff] }
 0x421   :  { %v2131_v25 = vsel %vm5477_vm8, %v2034_v31, 0.0  ;;  %v2360_v2 = vmax.f32 %v2358_v57, %v2359_v28  ;;  %v2423_v40 = vmax.f32 %v2421_v58, %v2422_v13  ;;  %v2036_v34 = vperm.slane %v2006_v39, 0  ;;  %v5484_v39 = vld [vmem:[#allocation92_spill] sm:$0xff] }
 0x422   :  { %vm5479_vm11 = vcmp.gt.f32.partialorder %v5478_v63, 0.0  ;;  %v2236_v55 = vmax.f32 %v2234_v54, %v2235_v22  ;;  %v2298_v41 = vsel %vm217_vm0, %v2129_v32, -inf  ;;  %vm5481_vm13 = vcmp.gt.f32.partialorder %v5480_v16, 0.0  ;;  %v5486_v54 = vld [vmem:[#allocation41_spill] sm:$0xff] }
 0x423   :  { %v2132_v45 = vsel %vm5479_vm11, %v2035_v38, 0.0  ;;  %v2133_v56 = vsel %vm5481_vm13, %v2035_v38, 0.0  ;;  %v2299_v5 = vmax.f32 %v2297_v53, %v2298_v41  ;;  %v2008_v9 = vrot.slane %v4485_v43, 6  ;;  %v2935_v22 = vld [vmem:[#allocation2 + $0x2d0] sm:$0xff]  ;;  %v5493_v41 = vld [vmem:[#allocation44_spill] sm:$0xff] }
 0x424   :  { %vm5483_vm14 = vcmp.gt.f32.partialorder %v5482_v23, 0.0  ;;  %v2361_v18 = vsel %vm217_vm0, %v2130_v33, -inf  ;;  %v2424_v14 = vsel %vm217_vm0, %v2131_v25, -inf  ;;  %vm5485_vm15 = vcmp.gt.f32.partialorder %v5484_v39, 0.0  ;;  %v5488_v33 = vld [vmem:[#allocation37_spill] sm:$0xff]  ;;  %v5497_v39 = vld [vmem:[#allocation100_spill] sm:$0xff] }
 0x425   :  { %v2134_v31 = vsel %vm5483_vm14, %v2035_v38, 0.0  ;;  %v2135_v6 = vsel %vm5485_vm15, %v2035_v38, 0.0  ;;  %v2237_v57 = vsel %vm217_vm0, %v2132_v45, -inf  ;;  %v2362_v58 = vmax.f32 %v2360_v2, %v2361_v18 }
 0x426   :  { %v2425_v24 = vmax.f32 %v2423_v40, %v2424_v14  ;;  %v2037_v30 = vperm.slane %v2007_v44, 0  ;;  %vm5487_vm2 = vcmp.gt.f32.partialorder %v5486_v54, 0.0  ;;  %v2238_v29 = vmax.f32 %v2236_v55, %v2237_v57 }
 0x427   :  { %v2136_v21 = vsel %vm5487_vm2, %v2036_v34, 0.0  ;;  %v2300_v32 = vsel %vm217_vm0, %v2133_v56, -inf  ;;  %v2009_v51 = vrot.slane %v4485_v43, 7  ;;  %vm5489_vm3 = vcmp.gt.f32.partialorder %v5488_v33, 0.0 }
 0x428   :  { %v2137_v28 = vsel %vm5489_vm3, %v2036_v34, 0.0  ;;  %v2301_v13 = vmax.f32 %v2299_v5, %v2300_v32  ;;  %vm5491_vm5 = vcmp.gt.f32.partialorder %v5490_v27, 0.0  ;;  %v2363_v25 = vsel %vm217_vm0, %v2134_v31, -inf  ;;  %v5495_v31 = vld [vmem:[#allocation40_spill] sm:$0xff] }
 0x429   :  { %v2138_v38 = vsel %vm5491_vm5, %v2036_v34, 0.0  ;;  %v2426_v44 = vsel %vm217_vm0, %v2135_v6, -inf  ;;  %vm5492_vm6 = vcmp.gt.f32.partialorder %v5393_v47, 0.0  ;;  %v2239_v63 = vsel %vm217_vm0, %v2136_v21, -inf }
 0x42a   :  { %v2139_v40 = vsel %vm5492_vm6, %v2036_v34, 0.0  ;;  %v2364_v45 = vmax.f32 %v2362_v58, %v2363_v25  ;;  %v2427_v43 = vmax.f32 %v2425_v24, %v2426_v44  ;;  %v2038_v55 = vperm.slane %v2008_v9, 0  ;;  %v5499_v9 = vld [vmem:[#allocation6_spill] sm:$0xff] }
 0x42b   :  { %vm5494_vm7 = vcmp.gt.f32.partialorder %v5493_v41, 0.0  ;;  %v2240_v56 = vmax.f32 %v2238_v29, %v2239_v63  ;;  %v2302_v5 = vsel %vm217_vm0, %v2137_v28, -inf  ;;  %v2039_v23 = vperm.slane %v2009_v51, 0  ;;  %v5501_v29 = vld [vmem:[#allocation15_spill] sm:$0xff] }
 0x42c   :  { %v2140_v16 = vsel %vm5494_vm7, %v2037_v30, 0.0  ;;  %vm5496_vm8 = vcmp.gt.f32.partialorder %v5495_v31, 0.0  ;;  %v2303_v14 = vmax.f32 %v2301_v13, %v2302_v5  ;;  %vm5498_vm11 = vcmp.gt.f32.partialorder %v5497_v39, 0.0  ;;  %v5505_v13 = vld [vmem:[#allocation73_spill] sm:$0xff]  ;;  %v5512_v5 = vld [vmem:[#allocation104_spill] sm:$0xff] }
 0x42d   :  { %v2141_v18 = vsel %vm5496_vm8, %v2037_v30, 0.0  ;;  %v2142_v47 = vsel %vm5498_vm11, %v2037_v30, 0.0  ;;  %v2365_v34 = vsel %vm217_vm0, %v2138_v38, -inf  ;;  %v2428_v6 = vsel %vm217_vm0, %v2139_v40, -inf }
 0x42e   :  { %vm5500_vm13 = vcmp.gt.f32.partialorder %v5499_v9, 0.0  ;;  %v2241_v24 = vsel %vm217_vm0, %v2140_v16, -inf  ;;  %v2366_v54 = vmax.f32 %v2364_v45, %v2365_v34  ;;  %v2429_v21 = vmax.f32 %v2427_v43, %v2428_v6 }
 0x42f   :  { %v2143_v58 = vsel %vm5500_vm13, %v2037_v30, 0.0  ;;  %vm5502_vm14 = vcmp.gt.f32.partialorder %v5501_v29, 0.0  ;;  %v2242_v33 = vmax.f32 %v2240_v56, %v2241_v24  ;;  %v2304_v28 = vsel %vm217_vm0, %v2141_v18, -inf  ;;  %v5508_v30 = vld [vmem:[#allocation43_spill] sm:$0xff]  ;;  %v5514_v18 = vld [vmem:[#allocation58_spill] sm:$0xff] }
 0x430   :  { %v2144_v32 = vsel %vm5502_vm14, %v2038_v55, 0.0  ;;  %vm5506_vm2 = vcmp.gt.f32.partialorder %v5505_v13, 0.0  ;;  %vm5507_vm3 = vcmp.gt.f32.partialorder %v3958_v26, 0.0  ;;  %vm5509_vm5 = vcmp.gt.f32.partialorder %v5508_v30, 0.0 }
 0x431   :  { %v2146_v27 = vsel %vm5506_vm2, %v2038_v55, 0.0  ;;  %v2147_v38 = vsel %vm5507_vm3, %v2038_v55, 0.0  ;;  %v2148_v25 = vsel %vm5509_vm5, %v2039_v23, 0.0  ;;  %v2305_v44 = vmax.f32 %v2303_v14, %v2304_v28 }
 0x432   :  { %v2367_v40 = vsel %vm217_vm0, %v2142_v47, -inf  ;;  %v2430_v63 = vsel %vm217_vm0, %v2143_v58, -inf  ;;  %v2243_v43 = vsel %vm217_vm0, %v2144_v32, -inf  ;;  %vm5513_vm7 = vcmp.gt.f32.partialorder %v5512_v5, 0.0 }
 0x433   :  { %v2368_v16 = vmax.f32 %v2366_v54, %v2367_v40  ;;  %v2431_v56 = vmax.f32 %v2429_v21, %v2430_v63  ;;  %v2244_v26 = vmax.f32 %v2242_v33, %v2243_v43  ;;  %v2150_v31 = vsel %vm5513_vm7, %v2039_v23, 0.0  ;;  %v2936_v33 = vld [vmem:[#allocation2 + $0x2d8] sm:$0xff] }
 0x434   :  { %vm5515_vm8 = vcmp.gt.f32.partialorder %v5514_v18, 0.0  ;;  %v2369_v6 = vsel %vm217_vm0, %v2146_v27, -inf  ;;  %v2432_v9 = vsel %vm217_vm0, %v2147_v38, -inf  ;;  %v5522_v18 = vld [vmem:[#allocation60_spill] sm:$0xff] }
 0x435   :  { %v2151_v14 = vsel %vm5515_vm8, %v2039_v23, 0.0 }
 0x45c   :  { %v1983_v53 = vpop.f32.mrf.mxu1 }
 0x45d   :  { %v1984_v2 = vadd.f32 %v2935_v22, %v1983_v53  ;;  %v5503_v53 = vld [vmem:[#allocation48_spill] sm:$0xff]  ;;  %v5510_v22 = vld [vmem:[#allocation51_spill] sm:$0xff] }
 0x45e   :  { %vm5504_vm15 = vcmp.gt.f32.partialorder %v5503_v53, 0.0  ;;  %vm5511_vm6 = vcmp.gt.f32.partialorder %v5510_v22, 0.0  ;;  %v4616_v53 = vmax.f32 %v2368_v16, %v2369_v6 }
 0x45f   :  { %v1990_v57 = vmax.f32 %v1984_v2, 0.0  ;;  %v2145_v51 = vsel %vm5504_vm15, %v2038_v55, 0.0  ;;  %v2149_v2 = vsel %vm5511_vm6, %v2039_v23, 0.0  ;;  %v2245_v55 = vsel %vm217_vm0, %v2148_v25, -inf }
 0x460   :  { %v2306_v41 = vsel %vm217_vm0, %v2145_v51, -inf  ;;  %v4618_v51 = vmax.f32 %v2431_v56, %v2432_v9  ;;  %v2246_v13 = vmax.f32 %v2244_v26, %v2245_v55  ;;  %v2308_v27 = vsel %vm217_vm0, %v2149_v2, -inf  ;;  %v5520_v55 = vld [vmem:[#allocation39_spill] sm:$0xff] }
 0x461   :  { %v2010_v45 = vrot.slane %v1990_v57, 1  ;;  %v2011_v39 = vrot.slane %v1990_v57, 2  ;;  %v2307_v34 = vmax.f32 %v2305_v44, %v2306_v41  ;;  %v2012_v58 = vrot.slane %v1990_v57, 3 }
 0x462   :  { %v2013_v24 = vrot.slane %v1990_v57, 4  ;;  %v4612_v54 = vperm.slane %v1990_v57, 0  ;;  %v2014_v29 = vrot.slane %v1990_v57, 5  ;;  %v2015_v32 = vrot.slane %v1990_v57, 6 }
 0x463   :  { %v4614_v21 = vperm.slane %v2010_v45, 0  ;;  %v2016_v23 = vrot.slane %v1990_v57, 7  ;;  %v4621_v30 = vperm.slane %v2011_v39, 0  ;;  %v2309_v38 = vmax.f32 %v2307_v34, %v2308_v27  ;;  %v5516_v57 = vld [vmem:[#allocation47_spill] sm:$0xff]  ;;  %v5518_v45 = vld [vmem:[#allocation18_spill] sm:$0xff] }
 0x464   :  { %v1985_v47 = vpop.f32.mrf.mxu1  ;;  %v4624_v25 = vsel %vm217_vm0, %v2150_v31, -inf  ;;  %v4627_v44 = vsel %vm217_vm0, %v2151_v14, -inf  ;;  %v4629_v22 = vperm.slane %v2012_v58, 0  ;;  %v4631_v40 = vperm.slane %v2013_v24, 0  ;;  %v5524_v39 = vld [vmem:[#allocation59_spill] sm:$0xff]  ;;  %v5526_v34 = vld [vmem:[#allocation42_spill] sm:$0xff] }
 0x465   :  { %v1986_v28 = vadd.f32 %v2936_v33, %v1985_v47  ;;  %vm5517_vm11 = vcmp.gt.f32.partialorder %v5516_v57, 0.0  ;;  %vm5519_vm13 = vcmp.gt.f32.partialorder %v5518_v45, 0.0  ;;  %v4639_v43 = vperm.slane %v2014_v29, 0  ;;  %v5528_v24 = vld [vmem:[#allocation74_spill] sm:$0xff]  ;;  %v5532_v33 = vld [vmem:[#allocation71_spill] sm:$0xff]  ;;  %v5534_v57 = vld [vmem:[#allocation77_spill] sm:$0xff] }
 0x466   :  { %v2152_v63 = vsel %vm5517_vm11, %v4612_v54, 0.0  ;;  %v2156_v2 = vsel %vm5519_vm13, %v4614_v21, 0.0  ;;  %v4641_v41 = vperm.slane %v2015_v32, 0  ;;  %v4647_v26 = vperm.slane %v2016_v23, 0  ;;  %v5530_v32 = vld [vmem:[#allocation67_spill] sm:$0xff] }
 0x467   :  { %vm5521_vm14 = vcmp.gt.f32.partialorder %v5520_v55, 0.0  ;;  %v1991_v31 = vmax.f32 %v1986_v28, 0.0  ;;  %vm5523_vm15 = vcmp.gt.f32.partialorder %v5522_v18, 0.0  ;;  %vm5525_vm2 = vcmp.gt.f32.partialorder %v5524_v39, 0.0  ;;  %v5538_v55 = vld [vmem:[#allocation76_spill] sm:$0xff]  ;;  %v5540_v39 = vld [vmem:[#allocation21_spill] sm:$0xff] }
 0x468   :  { %v2153_v5 = vsel %vm5521_vm14, %v4612_v54, 0.0  ;;  %v2157_v14 = vsel %vm5523_vm15, %v4614_v21, 0.0  ;;  %v2160_v47 = vsel %vm5525_vm2, %v4621_v30, 0.0  ;;  %vm5527_vm3 = vcmp.gt.f32.partialorder %v5526_v34, 0.0 }
 0x469   :  { %v2161_v6 = vsel %vm5527_vm3, %v4621_v30, 0.0  ;;  %v2247_v9 = vsel %vm217_vm0, %v2152_v63, -inf  ;;  %v2249_v58 = vsel %vm217_vm0, %v2156_v2, -inf  ;;  %vm5529_vm5 = vcmp.gt.f32.partialorder %v5528_v24, 0.0  ;;  %v5536_v63 = vld [vmem:[#allocation79_spill] sm:$0xff] }
 0x46a   :  { %v2164_v29 = vsel %vm5529_vm5, %v4629_v22, 0.0  ;;  %vm5531_vm6 = vcmp.gt.f32.partialorder %v5530_v32, 0.0  ;;  %vm5533_vm7 = vcmp.gt.f32.partialorder %v5532_v33, 0.0  ;;  %v2248_v27 = vmax.f32 %v2246_v13, %v2247_v9  ;;  %v5542_v13 = vld [vmem:[#allocation81_spill] sm:$0xff] }
 0x46b   :  { %v2165_v23 = vsel %vm5531_vm6, %v4629_v22, 0.0  ;;  %v2168_v28 = vsel %vm5533_vm7, %v4631_v40, 0.0  ;;  %vm5535_vm8 = vcmp.gt.f32.partialorder %v5534_v57, 0.0  ;;  %vm5537_vm11 = vcmp.gt.f32.partialorder %v5536_v63, 0.0  ;;  %v5544_v63 = vld [vmem:[#allocation80_spill] sm:$0xff] }
 0x46c   :  { %v2169_v45 = vsel %vm5535_vm8, %v4631_v40, 0.0  ;;  %v2172_v2 = vsel %vm5537_vm11, %v4639_v43, 0.0  ;;  %vm5539_vm13 = vcmp.gt.f32.partialorder %v5538_v55, 0.0  ;;  %vm5541_vm14 = vcmp.gt.f32.partialorder %v5540_v39, 0.0 }
 0x46d   :  { %v2173_v18 = vsel %vm5539_vm13, %v4639_v43, 0.0  ;;  %v2176_v34 = vsel %vm5541_vm14, %v4641_v41, 0.0  ;;  %v2017_v24 = vrot.slane %v1991_v31, 1  ;;  %v2018_v32 = vrot.slane %v1991_v31, 2 }
 0x46e   :  { %vm5543_vm15 = vcmp.gt.f32.partialorder %v5542_v13, 0.0  ;;  %v2250_v33 = vmax.f32 %v2248_v27, %v2249_v58  ;;  %v2019_v57 = vrot.slane %v1991_v31, 3  ;;  %v2020_v56 = vrot.slane %v1991_v31, 4 }
 0x46f   :  { %v2177_v9 = vsel %vm5543_vm15, %v4641_v41, 0.0  ;;  %vm5545_vm2 = vcmp.gt.f32.partialorder %v5544_v63, 0.0  ;;  %v2251_v55 = vsel %vm217_vm0, %v2160_v47, -inf  ;;  %v2021_v4 = vrot.slane %v1991_v31, 5  ;;  %v5546_v47 = vld [vmem:[#allocation45_spill] sm:$0xff] }
 0x470   :  { %v2180_v16 = vsel %vm5545_vm2, %v4647_v26, 0.0  ;;  %v2252_v20 = vmax.f32 %v2250_v33, %v2251_v55  ;;  %v2310_v39 = vsel %vm217_vm0, %v2153_v5, -inf  ;;  %v2312_v36 = vsel %vm217_vm0, %v2157_v14, -inf }
 0x471   :  { %v2022_v8 = vrot.slane %v1991_v31, 6  ;;  %v2023_v42 = vrot.slane %v1991_v31, 7  ;;  %v2253_v13 = vsel %vm217_vm0, %v2164_v29, -inf  ;;  %v2311_v60 = vmax.f32 %v2309_v38, %v2310_v39  ;;  %v5550_v39 = vld [vmem:[#allocation86_spill] sm:$0xff] }
 0x472   :  { %v4694_v58 = vperm.slane %v1991_v31, 0  ;;  %v4696_v27 = vperm.slane %v2017_v24, 0  ;;  %v4698_v37 = vperm.slane %v2018_v32, 0  ;;  %v2254_v63 = vmax.f32 %v2252_v20, %v2253_v13 }
 0x473   :  { %v4700_v61 = vperm.slane %v2019_v57, 0  ;;  %vm5547_vm3 = vcmp.gt.f32.partialorder %v5546_v47, 0.0  ;;  %v2255_v14 = vsel %vm217_vm0, %v2168_v28, -inf  ;;  %v2313_v33 = vmax.f32 %v2311_v60, %v2312_v36  ;;  %v5552_v60 = vld [vmem:[#allocation84_spill] sm:$0xff]  ;;  %v5558_v47 = vld [vmem:[#allocation91_spill] sm:$0xff] }
 0x474   :  { %v2181_v5 = vsel %vm5547_vm3, %v4647_v26, 0.0  ;;  %v4706_v55 = vperm.slane %v2020_v56, 0  ;;  %v4708_v29 = vperm.slane %v2021_v4, 0  ;;  %v2256_v38 = vmax.f32 %v2254_v63, %v2255_v14 }
 0x475   :  { %v2314_v31 = vsel %vm217_vm0, %v2161_v6, -inf  ;;  %v4711_v24 = vperm.slane %v2022_v8, 0  ;;  %v4713_v32 = vperm.slane %v2023_v42, 0  ;;  %v2257_v20 = vsel %vm217_vm0, %v2172_v2, -inf  ;;  %v5554_v6 = vld [vmem:[#allocation85_spill] sm:$0xff]  ;;  %v5556_v42 = vld [vmem:[#allocation90_spill] sm:$0xff] }
 0x476   :  { %5548 = vst [vmem:[#allocation97_spill] sm:$0xff] %v4706_v55  ;;  %v2315_v57 = vmax.f32 %v2313_v33, %v2314_v31  ;;  %vm5551_vm5 = vcmp.gt.f32.partialorder %v5550_v39, 0.0  ;;  %vm5553_vm6 = vcmp.gt.f32.partialorder %v5552_v60, 0.0  ;;  %v2258_v4 = vmax.f32 %v2256_v38, %v2257_v20  ;;  %v5560_v33 = vld [vmem:[#allocation89_spill] sm:$0xff]  ;;  %v5564_v60 = vld [vmem:[#allocation96_spill] sm:$0xff] }
 0x477   :  { %5549 = vst [vmem:[#allocation101_spill] sm:$0xff] %v4708_v29  ;;  %v2184_v13 = vsel %vm5551_vm5, %v4694_v58, 0.0  ;;  %v2185_v36 = vsel %vm5553_vm6, %v4694_v58, 0.0  ;;  %v2316_v56 = vsel %vm217_vm0, %v2165_v23, -inf  ;;  %vm5555_vm7 = vcmp.gt.f32.partialorder %v5554_v6, 0.0  ;;  %v5562_v20 = vld [vmem:[#allocation25_spill] sm:$0xff] }
 0x478   :  { %v2188_v8 = vsel %vm5555_vm7, %v4696_v27, 0.0  ;;  %vm5557_vm8 = vcmp.gt.f32.partialorder %v5556_v42, 0.0  ;;  %v2259_v2 = vsel %vm217_vm0, %v2176_v34, -inf  ;;  %v2317_v63 = vmax.f32 %v2315_v57, %v2316_v56  ;;  %v5566_v6 = vld [vmem:[#allocation98_spill] sm:$0xff] }
 0x479   :  { %v2189_v28 = vsel %vm5557_vm8, %v4696_v27, 0.0  ;;  %vm5559_vm11 = vcmp.gt.f32.partialorder %v5558_v47, 0.0  ;;  %vm5561_vm13 = vcmp.gt.f32.partialorder %v5560_v33, 0.0  ;;  %v2260_v23 = vmax.f32 %v2258_v4, %v2259_v2  ;;  %v5568_v47 = vld [vmem:[#allocation49_spill] sm:$0xff]  ;;  %v5570_v33 = vld [vmem:[#allocation102_spill] sm:$0xff] }
 0x47a   :  { %v2192_v14 = vsel %vm5559_vm11, %v4698_v37, 0.0  ;;  %v2193_v38 = vsel %vm5561_vm13, %v4698_v37, 0.0  ;;  %v2318_v31 = vsel %vm217_vm0, %v2169_v45, -inf  ;;  %vm5563_vm14 = vcmp.gt.f32.partialorder %v5562_v20, 0.0 }
 0x47b   :  { %v2196_v39 = vsel %vm5563_vm14, %v4700_v61, 0.0  ;;  %vm5565_vm15 = vcmp.gt.f32.partialorder %v5564_v60, 0.0  ;;  %v2261_v57 = vsel %vm217_vm0, %v2180_v16, -inf  ;;  %v2319_v56 = vmax.f32 %v2317_v63, %v2318_v31  ;;  %v5572_v60 = vld [vmem:[#allocation5_spill] sm:$0xff] }
 0x47c   :  { %v2197_v34 = vsel %vm5565_vm15, %v4700_v61, 0.0  ;;  %vm5567_vm2 = vcmp.gt.f32.partialorder %v5566_v6, 0.0  ;;  %vm5569_vm3 = vcmp.gt.f32.partialorder %v5568_v47, 0.0  ;;  %v2262_v45 = vmax.f32 %v2260_v23, %v2261_v57  ;;  %v5574_v6 = vld [vmem:[#allocation103_spill] sm:$0xff]  ;;  %v5576_v47 = vld [vmem:[#allocation105_spill] sm:$0xff] }
 0x47d   :  { %v2200_v42 = vsel %vm5567_vm2, %v4706_v55, 0.0  ;;  %v2201_v4 = vsel %vm5569_vm3, %v4706_v55, 0.0  ;;  %v2320_v2 = vsel %vm217_vm0, %v2173_v18, -inf  ;;  %vm5571_vm5 = vcmp.gt.f32.partialorder %v5570_v33, 0.0  ;;  %v5578_v33 = vld [vmem:[#allocation107_spill] sm:$0xff] }
 0x47e   :  { %v2204_v20 = vsel %vm5571_vm5, %v4708_v29, 0.0  ;;  %vm5573_vm6 = vcmp.gt.f32.partialorder %v5572_v60, 0.0  ;;  %v2263_v63 = vsel %vm217_vm0, %v2184_v13, -inf  ;;  %v2321_v31 = vmax.f32 %v2319_v56, %v2320_v2  ;;  %v5580_v13 = vld [vmem:[#allocation108_spill] sm:$0xff]  ;;  %v5582_v2 = vld [vmem:[#allocation106_spill] sm:$0xff] }
 0x47f   :  { %v2205_v16 = vsel %vm5573_vm6, %v4708_v29, 0.0  ;;  %vm5575_vm7 = vcmp.gt.f32.partialorder %v5574_v6, 0.0  ;;  %vm5577_vm8 = vcmp.gt.f32.partialorder %v5576_v47, 0.0  ;;  %v2264_v18 = vmax.f32 %v2262_v45, %v2263_v63 }
 0x480   :  { %v2208_v48 = vsel %vm5575_vm7, %v4711_v24, 0.0  ;;  %v2209_v23 = vsel %vm5577_vm8, %v4711_v24, 0.0  ;;  %v2322_v57 = vsel %vm217_vm0, %v2177_v9, -inf  ;;  %vm5579_vm11 = vcmp.gt.f32.partialorder %v5578_v33, 0.0 }
 0x481   :  { %v2212_v55 = vsel %vm5579_vm11, %v4713_v32, 0.0  ;;  %v2265_v60 = vsel %vm217_vm0, %v2188_v8, -inf  ;;  %v2323_v29 = vmax.f32 %v2321_v31, %v2322_v57  ;;  %vm5581_vm13 = vcmp.gt.f32.partialorder %v5580_v13, 0.0 }
 0x482   :  { %v2154_v56 = vsel %vm5581_vm13, %v4612_v54, 0.0  ;;  %vm5583_vm14 = vcmp.gt.f32.partialorder %v5582_v2, 0.0  ;;  %v2266_v47 = vmax.f32 %v2264_v18, %v2265_v60  ;;  %v2324_v45 = vsel %vm217_vm0, %v2181_v5, -inf }
 0x483   :  { %v4775_v6 = vsel %vm5583_vm14, %v4713_v32, 0.0  ;;  %vm5584_vm15 = vcmp.gt.f32.partialorder %v4183_v17, 0.0  ;;  %v2267_v63 = vsel %vm217_vm0, %v2192_v14, -inf  ;;  %v2269_v8 = vsel %vm217_vm0, %v2196_v39, -inf }
 0x484   :  { %v2158_v9 = vsel %vm5584_vm15, %v4614_v21, 0.0  ;;  %v2271_v31 = vsel %vm217_vm0, %v2200_v42, -inf  ;;  %v2325_v57 = vmax.f32 %v2323_v29, %v2324_v45  ;;  %v2268_v33 = vmax.f32 %v2266_v47, %v2267_v63 }
 0x485   :  { %v2273_v13 = vsel %vm217_vm0, %v2204_v20, -inf  ;;  %v2326_v2 = vsel %vm217_vm0, %v2185_v36, -inf  ;;  %v2373_v18 = vsel %vm217_vm0, %v2154_v56, -inf  ;;  %vm5585_vm2 = vcmp.gt.f32.partialorder %v4070_v52, 0.0 }
 0x486   :  { %v2327_v60 = vmax.f32 %v2325_v57, %v2326_v2  ;;  %v2162_v17 = vsel %vm5585_vm2, %v4621_v30, 0.0  ;;  %v5586_v5 = vmax.f32 %v4616_v53, %v4624_v25  ;;  %v2375_v39 = vsel %vm217_vm0, %v2158_v9, -inf }
 0x487   :  { %v2270_v42 = vmax.f32 %v2268_v33, %v2269_v8  ;;  %v2275_v29 = vsel %vm217_vm0, %v2208_v48, -inf  ;;  %v2277_v20 = vsel %vm217_vm0, %v2212_v55, -inf  ;;  %v2328_v36 = vsel %vm217_vm0, %v2189_v28, -inf }
 0x488   :  { %v2374_v14 = vmax.f32 %v5586_v5, %v2373_v18  ;;  %v2329_v47 = vmax.f32 %v2327_v60, %v2328_v36  ;;  %v2330_v56 = vsel %vm217_vm0, %v2193_v38, -inf  ;;  %vm5587_vm3 = vcmp.gt.f32.partialorder %v4075_v49, 0.0 }
 0x489   :  { %v2166_v52 = vsel %vm5587_vm3, %v4629_v22, 0.0  ;;  %v2272_v63 = vmax.f32 %v2270_v42, %v2271_v31  ;;  %vm5588_vm5 = vcmp.gt.f32.partialorder %v4066_v7, 0.0  ;;  %vm5589_vm6 = vcmp.gt.f32.partialorder %v4077_v11, 0.0 }
 0x48a   :  { %v2376_v45 = vmax.f32 %v2374_v14, %v2375_v39  ;;  %v2155_v53 = vsel %vm5588_vm5, %v4612_v54, 0.0  ;;  %v2159_v48 = vsel %vm5589_vm6, %v4614_v21, 0.0  ;;  %v2377_v25 = vsel %vm217_vm0, %v2162_v17, -inf }
 0x48b   :  { %v2331_v55 = vmax.f32 %v2329_v47, %v2330_v56  ;;  %v2332_v28 = vsel %vm217_vm0, %v2197_v34, -inf  ;;  %vm5590_vm7 = vcmp.gt.f32.partialorder %v4086_v0, 0.0  ;;  %v2274_v9 = vmax.f32 %v2272_v63, %v2273_v13 }
 0x48c   :  { %v2170_v49 = vsel %vm5590_vm7, %v4631_v40, 0.0  ;;  %v2378_v38 = vmax.f32 %v2376_v45, %v2377_v25  ;;  %v2334_v8 = vsel %vm217_vm0, %v2201_v4, -inf  ;;  %vm5591_vm8 = vcmp.gt.f32.partialorder %v4109_v12, 0.0 }
 0x48d   :  { %v2174_v7 = vsel %vm5591_vm8, %v4639_v43, 0.0  ;;  %v2379_v11 = vsel %vm217_vm0, %v2166_v52, -inf  ;;  %v2333_v54 = vmax.f32 %v2331_v55, %v2332_v28  ;;  %v2436_v31 = vsel %vm217_vm0, %v2155_v53, -inf }
 0x48e   :  { %v2380_v21 = vmax.f32 %v2378_v38, %v2379_v11  ;;  %v2438_v34 = vsel %vm217_vm0, %v2159_v48, -inf  ;;  %v2336_v57 = vsel %vm217_vm0, %v2205_v16, -inf  ;;  %vm5592_vm11 = vcmp.gt.f32.partialorder %v4081_v46, 0.0  ;;  %v5595_v16 = vld [vmem:[#allocation62_spill] sm:$0xff]  ;;  %v5609_v11 = vld [vmem:[#allocation61_spill] sm:$0xff] }
 0x48f   :  { %v2163_v0 = vsel %vm5592_vm11, %v4621_v30, 0.0  ;;  %v2381_v4 = vsel %vm217_vm0, %v2170_v49, -inf  ;;  %v5593_v12 = vmax.f32 %v4618_v51, %v4627_v44  ;;  %v2276_v13 = vmax.f32 %v2274_v9, %v2275_v29  ;;  %v5606_v9 = vld [vmem:[#allocation66_spill] sm:$0xff] }
 0x490   :  { %v2335_v2 = vmax.f32 %v2333_v54, %v2334_v8  ;;  %vm5594_vm13 = vcmp.gt.f32.partialorder %v4248_v59, 0.0  ;;  %v2382_v60 = vmax.f32 %v2380_v21, %v2381_v4  ;;  %v2338_v17 = vsel %vm217_vm0, %v2209_v23, -inf }
 0x491   :  { %v2437_v33 = vmax.f32 %v5593_v12, %v2436_v31  ;;  %v2178_v18 = vsel %vm5594_vm13, %v4641_v41, 0.0  ;;  %vm5596_vm14 = vcmp.gt.f32.partialorder %v5595_v16, 0.0  ;;  %v2383_v30 = vsel %vm217_vm0, %v2174_v7, -inf }
 0x492   :  { %v2167_v46 = vsel %vm5596_vm14, %v4629_v22, 0.0  ;;  %v2337_v14 = vmax.f32 %v2335_v2, %v2336_v57  ;;  %vm5597_vm15 = vcmp.gt.f32.partialorder %v4091_v19, 0.0  ;;  %v2384_v44 = vmax.f32 %v2382_v60, %v2383_v30  ;;  %v5615_v2 = vld [vmem:[#allocation101_spill] sm:$0xff] }
 0x493   :  { %v2439_v5 = vmax.f32 %v2437_v33, %v2438_v34  ;;  %v2182_v51 = vsel %vm5597_vm15, %v4647_v26, 0.0  ;;  %v2440_v39 = vsel %vm217_vm0, %v2163_v0, -inf  ;;  %vm5598_vm2 = vcmp.gt.f32.partialorder %v4079_v3, 0.0  ;;  %v5611_v34 = vld [vmem:[#allocation75_spill] sm:$0xff]  ;;  %v5613_v33 = vld [vmem:[#allocation78_spill] sm:$0xff]  ;;  %v2939_v30 = vld [vmem:[#allocation2 + $0x2f0] sm:$0xff] }
 0x494   :  { %v2171_v59 = vsel %vm5598_vm2, %v4631_v40, 0.0  ;;  %vm5599_vm3 = vcmp.gt.f32.partialorder %v4116_v62, 0.0  ;;  %v2385_v22 = vsel %vm217_vm0, %v2178_v18, -inf  ;;  %v2278_v29 = vmax.f32 %v2276_v13, %v2277_v20 }
 0x495   :  { %v2186_v23 = vsel %vm5599_vm3, %v4694_v58, 0.0  ;;  %v2441_v42 = vmax.f32 %v2439_v5, %v2440_v39  ;;  %v2339_v36 = vmax.f32 %v2337_v14, %v2338_v17  ;;  %v2386_v47 = vmax.f32 %v2384_v44, %v2385_v22 }
 0x496   :  { %v2442_v19 = vsel %vm217_vm0, %v2167_v46, -inf  ;;  %v2340_v56 = vsel %vm217_vm0, %v4775_v6, -inf  ;;  %vm5600_vm5 = vcmp.gt.f32.partialorder %v4083_v15, 0.0  ;;  %v2387_v40 = vsel %vm217_vm0, %v2182_v51, -inf }
 0x497   :  { %v2175_v3 = vsel %vm5600_vm5, %v4639_v43, 0.0  ;;  %v2443_v52 = vmax.f32 %v2441_v42, %v2442_v19  ;;  %v2341_v62 = vmax.f32 %v2339_v36, %v2340_v56  ;;  %vm5601_vm6 = vcmp.gt.f32.partialorder %v4220_v35, 0.0  ;;  %v5621_v36 = vld [vmem:[#allocation88_spill] sm:$0xff] }
 0x498   :  { %v2190_v45 = vsel %vm5601_vm6, %v4696_v27, 0.0  ;;  %v2388_v20 = vmax.f32 %v2386_v47, %v2387_v40  ;;  %v2444_v63 = vsel %vm217_vm0, %v2171_v59, -inf  ;;  %vm5602_vm7 = vcmp.gt.f32.partialorder %v4133_v1, 0.0  ;;  %v5619_v59 = vld [vmem:[#allocation46_spill] sm:$0xff] }
 0x499   :  { %v2179_v53 = vsel %vm5602_vm7, %v4641_v41, 0.0  ;;  %v2389_v6 = vsel %vm217_vm0, %v2186_v23, -inf  ;;  %v2445_v48 = vmax.f32 %v2443_v52, %v2444_v63  ;;  %v2468_v15 = vpack.c.bf16 %v2341_v62, %v2278_v29  ;;  %v125_v1 = vld [vmem:[#allocation2 + $0x1f8] sm:$0xff] }
 0x49a   :  { %vm5603_vm8 = vcmp.gt.f32.partialorder %v4263_v50, 0.0  ;;  %v2390_v25 = vmax.f32 %v2388_v20, %v2389_v6  ;;  %v2446_v55 = vsel %vm217_vm0, %v2175_v3, -inf  ;;  %vm5604_vm11 = vcmp.gt.f32.partialorder %v4185_v10, 0.0  ;;  %v5623_v3 = vld [vmem:[#allocation68_spill] sm:$0xff] }
 0x49b   :  { %v2194_v43 = vsel %vm5603_vm8, %v4698_v37, 0.0  ;;  %v2183_v35 = vsel %vm5604_vm11, %v4647_v26, 0.0  ;;  %v2391_v28 = vsel %vm217_vm0, %v2190_v45, -inf  ;;  %v2447_v49 = vmax.f32 %v2445_v48, %v2446_v55  ;;  %2811 = vmatmul.msk.bf16.vlgmr.msrb.gmra.mxu2 %vm217_vm0, %v2468_v15  ;;  %v5608_v26 = vld [vmem:[#allocation97_spill] sm:$0xff] }
 0x49c   :  { %v2198_v41 = vsel %vm1157_vm12, %v4700_v61, 0.0  ;;  %v2392_v38 = vmax.f32 %v2390_v25, %v2391_v28  ;;  %v2448_v50 = vsel %vm217_vm0, %v2179_v53, -inf  ;;  %vm5607_vm13 = vcmp.gt.f32.partialorder %v5606_v9, 0.0  ;;  %v5626_v53 = vld [vmem:[#allocation65_spill] sm:$0xff] }
 0x49d   :  { %v2187_v8 = vsel %vm5607_vm13, %v4694_v58, 0.0  ;;  %v2393_v7 = vsel %vm217_vm0, %v2194_v43, -inf  ;;  %v2449_v10 = vmax.f32 %v2447_v49, %v2448_v50  ;;  %vm5610_vm14 = vcmp.gt.f32.partialorder %v5609_v11, 0.0  ;;  %v124_v49 = vld [vmem:[#allocation2 + $0x1f0] sm:$0xff]  ;;  %v123_v50 = vld [vmem:[#allocation2 + $0x1e8] sm:$0xff] }
 0x49e   :  { %v2202_v54 = vsel %vm5610_vm14, %v5608_v26, 0.0  ;;  %v2394_v21 = vmax.f32 %v2392_v38, %v2393_v7  ;;  %v2450_v31 = vsel %vm217_vm0, %v2183_v35, -inf  ;;  %vm5612_vm12 = vcmp.gt.f32.partialorder %v5611_v34, 0.0  ;;  %v120_v9 = vld [vmem:[#allocation2 + $0x1d0] sm:$0xff]  ;;  %v118_v7 = vld [vmem:[#allocation2 + $0x1c0] sm:$0xff] }
 0x49f   :  { %v2191_v57 = vsel %vm5612_vm12, %v4696_v27, 0.0  ;;  %v2395_v0 = vsel %vm217_vm0, %v2198_v41, -inf  ;;  %v2451_v4 = vmax.f32 %v2449_v10, %v2450_v31  ;;  %v2452_v58 = vsel %vm217_vm0, %v2187_v8, -inf  ;;  %v122_v41 = vld [vmem:[#allocation2 + $0x1e0] sm:$0xff]  ;;  %v121_v8 = vld [vmem:[#allocation2 + $0x1d8] sm:$0xff] }
 0x4a0   :  { %v2396_v12 = vmax.f32 %v2394_v21, %v2395_v0  ;;  %vm5614_vm15 = vcmp.gt.f32.partialorder %v5613_v33, 0.0  ;;  %v2206_v60 = vsel %vm1165_vm10, %v5615_v2, 0.0  ;;  %v2397_v17 = vsel %vm217_vm0, %v2202_v54, -inf  ;;  %v2504_v54 = vpop.f32.mrf.mxu3  ;;  %v2937_v0 = vld [vmem:[#allocation2 + $0x2e0] sm:$0xff] }
 0x4a1   :  { %v2195_v13 = vsel %vm5614_vm15, %v4698_v37, 0.0  ;;  %v2453_v16 = vmax.f32 %v2451_v4, %v2452_v58  ;;  %v2454_v27 = vsel %vm217_vm0, %v2191_v57, -inf  ;;  %v2199_v5 = vsel %vm1158_vm9, %v4700_v61, 0.0  ;;  %v2938_v58 = vld [vmem:[#allocation2 + $0x2e8] sm:$0xff] }
 0x4a2   :  { %v2398_v46 = vmax.f32 %v2396_v12, %v2397_v17  ;;  %v2399_v51 = vsel %vm217_vm0, %v2206_v60, -inf  ;;  %v2456_v44 = vsel %vm217_vm0, %v2195_v13, -inf  ;;  %v2203_v39 = vsel %vm1162_vm1, %v5608_v26, 0.0  ;;  %v119_v26 = vld [vmem:[#allocation2 + $0x1c8] sm:$0xff] }
 0x4a3   :  { %v2455_v14 = vmax.f32 %v2453_v16, %v2454_v27  ;;  %vm5620_vm10 = vcmp.gt.f32.partialorder %v5619_v59, 0.0  ;;  %v2458_v29 = vsel %vm217_vm0, %v2199_v5, -inf  ;;  %vm5622_vm9 = vcmp.gt.f32.partialorder %v5621_v36, 0.0 }
 0x4a4   :  { %v2210_v23 = vsel %vm5620_vm10, %v4711_v24, 0.0  ;;  %v2400_v22 = vmax.f32 %v2398_v46, %v2399_v51  ;;  %v2207_v61 = vsel %vm5622_vm9, %v5615_v2, 0.0  ;;  %v2460_v56 = vsel %vm217_vm0, %v2203_v39, -inf  ;;  %v2940_v51 = vld [vmem:[#allocation2 + $0x2f8] sm:$0xff] }
 0x4a5   :  { %v2457_v42 = vmax.f32 %v2455_v14, %v2456_v44  ;;  %v2401_v19 = vsel %vm217_vm0, %v2210_v23, -inf  ;;  %vm5624_vm1 = vcmp.gt.f32.partialorder %v5623_v3, 0.0  ;;  %v2214_v62 = vsel %vm1173_vm4, %v4713_v32, 0.0  ;;  %v2550_v23 = vpop.f32.mrf.mxu1 }
 0x4a6   :  { %v2211_v40 = vsel %vm5624_vm1, %v4711_v24, 0.0  ;;  %v2402_v45 = vmax.f32 %v2400_v22, %v2401_v19  ;;  %v2462_v63 = vsel %vm217_vm0, %v2207_v61, -inf  ;;  %vm5627_vm2 = vcmp.gt.f32.partialorder %v5626_v53, 0.0  ;;  %v2531_v22 = vpop.f32.mrf.mxu0 }
 0x4a7   :  { %v2459_v47 = vmax.f32 %v2457_v42, %v2458_v29  ;;  %v2215_v6 = vsel %vm5627_vm2, %v4713_v32, 0.0  ;;  %v2403_v15 = vsel %vm217_vm0, %v2214_v62, -inf  ;;  %v2464_v43 = vsel %vm217_vm0, %v2211_v40, -inf }
 0x4a8   :  { %v2404_v25 = vmax.f32 %v2402_v45, %v2403_v15  ;;  %v2466_v24 = vsel %vm217_vm0, %v2215_v6, -inf  ;;  %v129_v38 = vpack.c.bf16 %v125_v1, %v124_v49  ;;  %v128_v32 = vpack.c.bf16 %v123_v50, %v122_v41  ;;  %v2506_v34 = vpop.f32.mrf.mxu3  ;;  %v2911_v49 = vld [vmem:[#allocation2 + $0x300] ss:$0 sm:$0xff] }
 0x4a9   :  { %v2461_v20 = vmax.f32 %v2459_v47, %v2460_v56  ;;  %v127_v10 = vpack.c.bf16 %v121_v8, %v120_v9  ;;  %v126_v11 = vpack.c.bf16 %v119_v26, %v118_v7  ;;  %v2551_v6 = vadd.f32 %v2550_v23, %v2531_v22  ;;  %v131_v23 = vld [vmem:[#allocation2 + $0x208] sm:$0xff] }
 0x4aa   :  { %2572 = vmatpush.bf16.msra.mxu2 %v129_v38  ;;  %vm2596_vm4 = vcmask 261120  }
 0x4ab   :  { %v2463_v48 = vmax.f32 %v2461_v20, %v2462_v63 }
 0x4ad   :  { %v2465_v55 = vmax.f32 %v2463_v48, %v2464_v43  ;;  %v2552_v29 = vpop.f32.mrf.mxu1 }
 0x4ae   :  { %2573 = vmatpush.bf16.msra.mxu2 %v128_v32  ;;  %v2533_v36 = vpop.f32.mrf.mxu0 }
 0x4af   :  { %v2467_v35 = vmax.f32 %v2465_v55, %v2466_v24  ;;  %v2553_v20 = vadd.f32 %v2552_v29, %v2533_v36 }
 0x4b0   :  { %v2509_v60 = vpop.f32.mrf.mxu3 }
 0x4b1   :  { %v2469_v28 = vpack.c.bf16 %v2467_v35, %v2404_v25  ;;  %v2591_v25 = vld [vmem:[%s4954_s2] sm:$0xff]  ;;  %v2970_v35 = vmov 8.0  }
 0x4b2   :  { %2574 = vmatpush.bf16.msra.mxu2 %v127_v10  ;;  %v2594_v24 = vpack.c.bf16 %v2591_v25, %v2591_v25  ;;  %2921 = vrcp.f32 %v2970_v35 }
 0x4b3   :  { %2812 = vmatmul.msk.bf16.gmra.mxu2 %vm217_vm0, %v2469_v28 }
 0x4b5   :  { %v2555_v47 = vpop.f32.mrf.mxu1 }
 0x4b6   :  { %2575 = vmatpush.bf16.msra.mxu2 %v126_v11  ;;  %v2536_v19 = vpop.f32.mrf.mxu0 }
 0x4b7   :  { %v2556_v52 = vadd.f32 %v2555_v47, %v2536_v19 }
 0x4b8   :  { %v2511_v46 = vpop.f32.mrf.mxu3  ;;  %v2922_v28 = vpop.eup %2921 }
 0x4b9   :  { %v2621_v1 = vmul.f32 8.0, %v2922_v28  ;;  %vm2625_vm3 = vweird.f32 %v2922_v28 }
 0x4bb   :  { %v2622_v50 = vsub.f32 1.0, %v2621_v1 }
 0x4bd   :  { %v2557_v3 = vpop.f32.mrf.mxu1  ;;  %v2623_v8 = vmul.f32 %v2922_v28, %v2622_v50 }
 0x4be   :  { %v2538_v40 = vpop.f32.mrf.mxu0 }
 0x4bf   :  { %v2558_v62 = vadd.f32 %v2557_v3, %v2538_v40  ;;  %v2624_v11 = vadd.f32 %v2922_v28, %v2623_v8 }
 0x51e   :  { %v2485_v21 = vpop.f32.mrf.mxu2 }
 0x51f   :  { %v2505_v31 = vadd.f32 %v2504_v54, %v2485_v21 }
 0x521   :  { %v2514_v4 = vadd.f32 %v2937_v0, %v2505_v31  ;;  %v4933_v31 = vsel %vm2625_vm3, %v2922_v28, %v2624_v11  ;;  %v144_v11 = vld [vmem:[#allocation2 + $0x250] sm:$0xff] }
 0x523   :  { %v2518_v13 = vmax.f32 %v2514_v4, 0.0 }
 0x526   :  { %v2487_v57 = vpop.f32.mrf.mxu2 }
 0x527   :  { %v2507_v12 = vadd.f32 %v2506_v34, %v2487_v57 }
 0x529   :  { %v2515_v33 = vadd.f32 %v2938_v58, %v2507_v12 }
 0x52b   :  { %v2519_v2 = vmax.f32 %v2515_v33, 0.0 }
 0x52d   :  { %v2560_v18 = vpack.c.bf16 %v2519_v2, %v2518_v13 }
 0x52f   :  { %2819 = vmatmul.msk.bf16.vlgmr.msra.gmra.mxu2 %vm217_vm0, %v2560_v18 }
 0x536   :  { %v2490_v17 = vpop.f32.mrf.mxu2 }
 0x537   :  { %v2510_v16 = vadd.f32 %v2509_v60, %v2490_v17  ;;  %v136_v17 = vld [vmem:[#allocation2 + $0x230] sm:$0xff] }
 0x539   :  { %v2516_v5 = vadd.f32 %v2939_v30, %v2510_v16  ;;  %v137_v16 = vld [vmem:[#allocation2 + $0x238] sm:$0xff]  ;;  %v135_v30 = vld [vmem:[#allocation2 + $0x228] sm:$0xff] }
 0x53b   :  { %v2520_v37 = vmax.f32 %v2516_v5, 0.0 }
 0x53e   :  { %v2492_v27 = vpop.f32.mrf.mxu2 }
 0x53f   :  { %v2512_v14 = vadd.f32 %v2511_v46, %v2492_v27  ;;  %v134_v46 = vld [vmem:[#allocation2 + $0x220] sm:$0xff]  ;;  %v141_v27 = vpack.c.bf16 %v137_v16, %v136_v17 }
 0x540   :  { %v2915_v17 = vld [vmem:[#allocation2 + $0x304] ss:$0 sm:$0xff] }
 0x541   :  { %v2517_v44 = vadd.f32 %v2940_v51, %v2512_v14  ;;  %2664 = vmatpush.bf16.msra.mxu0 %v141_v27  ;;  %v140_v14 = vpack.c.bf16 %v135_v30, %v134_v46  ;;  %v2916_v27 = vld [vmem:[#allocation2 + $0x305] ss:$0 sm:$0xff] }
 0x543   :  { %v2521_v39 = vmax.f32 %v2517_v44, 0.0  ;;  %v132_v44 = vld [vmem:[#allocation2 + $0x210] sm:$0xff] }
 0x545   :  { %v2561_v59 = vpack.c.bf16 %v2521_v39, %v2520_v37  ;;  %v133_v37 = vld [vmem:[#allocation2 + $0x218] sm:$0xff]  ;;  %2665 = vmatpush.bf16.msra.mxu0 %v140_v14 }
 0x546   :  { %v139_v39 = vpack.c.bf16 %v133_v37, %v132_v44  ;;  %v2917_v44 = vld [vmem:[#allocation2 + $0x306] ss:$0 sm:$0xff] }
 0x547   :  { %2820 = vmatmul.msk.bf16.gmra.mxu2 %vm217_vm0, %v2561_v59  ;;  %v130_v59 = vld [vmem:[#allocation2 + $0x200] sm:$0xff] }
 0x548   :  { %v138_v22 = vpack.c.bf16 %v131_v23, %v130_v59 }
 0x549   :  { %2666 = vmatpush.bf16.msra.mxu0 %v139_v39 }
 0x54d   :  { %2667 = vmatpush.bf16.msra.mxu0 %v138_v22 }
 0x5b2   :  { %v2577_v42 = vpop.f32.mrf.mxu2 }
 0x5b3   :  { %v2587_v43 = vadd.f32 %v2577_v42, %v2551_v6 }
 0x5ba   :  { %v2579_v61 = vpop.f32.mrf.mxu2 }
 0x5bb   :  { %v2588_v48 = vadd.f32 %v2579_v61, %v2553_v20 }
 0x5bd   :  { %v2592_v55 = vpack.c.bf16 %v2588_v48, %v2587_v43 }
 0x5ca   :  { %v2582_v56 = vpop.f32.mrf.mxu2 }
 0x5cb   :  { %v2589_v63 = vadd.f32 %v2582_v56, %v2556_v52  ;;  %v2912_v56 = vld [vmem:[#allocation2 + $0x301] ss:$0 sm:$0xff]  ;;  %v2913_v52 = vld [vmem:[#allocation2 + $0x302] ss:$0 sm:$0xff] }
 0x5d2   :  { %v2584_v45 = vpop.f32.mrf.mxu2 }
 0x5d3   :  { %v2590_v53 = vadd.f32 %v2584_v45, %v2558_v62 }
 0x5d5   :  { %v2593_v15 = vpack.c.bf16 %v2590_v53, %v2589_v63  ;;  %v2914_v53 = vld [vmem:[#allocation2 + $0x303] ss:$0 sm:$0xff] }
 0x5d7   :  { %2606 = vmatpush.bf16.msra.mxu3 %v2593_v15 }
 0x5db   :  { %2607 = vmatpush.bf16.msra.mxu3 %v2592_v55 }
 0x5de   :  { %2821 = vmatmul.msk.bf16.vlgmr.msra.gmra.mxu3 %vm2596_vm4, %v2594_v24 }
 0x661   :  { %v2609_v41 = vpop.f32.mrf.mxu3 }
 0x662   :  { %v2610_v38 = vadd.f32 %v2911_v49, %v2609_v41 }
 0x664   :  { %v2613_v32 = vsel %vm217_vm0, %v2610_v38, 0.0 }
 0x665   :  { %v2614_v9 = vrot.slane %v2613_v32, 4 }
 0x667   :  { %v2615_v7 = vadd.f32 %v2614_v9, %v2613_v32 }
 0x669   :  { %v2616_v10 = vrot.slane %v2615_v7, 2  ;;  %v2611_v26 = vpop.f32.mrf.mxu3 }
 0x66b   :  { %v2617_v54 = vadd.f32 %v2616_v10, %v2615_v7 }
 0x66d   :  { %v2618_v21 = vrot.slane %v2617_v54, 1 }
 0x66f   :  { %v2619_v34 = vadd.f32 %v2618_v21, %v2617_v54  ;;  %v145_v54 = vld [vmem:[#allocation2 + $0x258] sm:$0xff]  ;;  %v142_v21 = vld [vmem:[#allocation2 + $0x240] sm:$0xff] }
 0x671   :  { %v2627_v57 = vmul.f32 %v4933_v31, %v2619_v34  ;;  %v147_v34 = vpack.c.bf16 %v145_v54, %v144_v11 }
 0x673   :  { %v2628_v0 = vsub.f32 %v2610_v38, %v2627_v57  ;;  %v143_v57 = vld [vmem:[#allocation2 + $0x248] sm:$0xff]  ;;  %2719 = vmatpush.bf16.msrb.mxu3 %v147_v34 }
 0x675   :  { %v2629_v4 = vmul.f32 %v2628_v0, %v2628_v0 }
 0x677   :  { %v2630_v12 = vsel %vm217_vm0, %v2629_v4, 0.0  ;;  %v146_v4 = vpack.c.bf16 %v143_v57, %v142_v21  ;;  %v2919_v21 = vld [vmem:[#allocation2 + $0x308] ss:$0 sm:$0xff] }
 0x678   :  { %v2631_v58 = vrot.slane %v2630_v12, 4 }
 0x679   :  { %2720 = vmatpush.bf16.msrb.mxu3 %v146_v4 }
 0x67a   :  { %v2632_v33 = vadd.f32 %v2631_v58, %v2630_v12 }
 0x67c   :  { %v2633_v13 = vrot.slane %v2632_v33, 2 }
 0x67e   :  { %v2634_v2 = vadd.f32 %v2633_v13, %v2632_v33 }
 0x680   :  { %v2635_v18 = vrot.slane %v2634_v2, 1 }
 0x682   :  { %v2636_v60 = vadd.f32 %v2635_v18, %v2634_v2 }
 0x684   :  { %v2637_v5 = vmul.f32 %v2636_v60, %v4933_v31 }
 0x686   :  { %v2638_v51 = vadd.f32 1e-05, %v2637_v5 }
 0x688   :  { %2923 = vrsqrt.f32 %v2638_v51  ;;  %vm2645_vm6 = vweird.f32 %v2638_v51 }
 0x68e   :  { %v2924_v42 = vpop.eup %2923 }
 0x68f   :  { %v2640_v29 = vmul.f32 %v2924_v42, %v2638_v51  ;;  %vm2646_vm5 = vweird.f32 %v2924_v42 }
 0x690   :  { %vm2647_vm7 = vmor %vm2645_vm6, %vm2646_vm5 }
 0x691   :  { %v2641_v36 = vmul.f32 %v2924_v42, %v2640_v29 }
 0x693   :  { %v2642_v61 = vmul.f32 0.5, %v2641_v36 }
 0x695   :  { %v2643_v47 = vsub.f32 1.5, %v2642_v61 }
 0x697   :  { %v2644_v19 = vmul.f32 %v2924_v42, %v2643_v47 }
 0x699   :  { %v2648_v3 = vsel %vm2647_vm7, %v2924_v42, %v2644_v19 }
 0x69a   :  { %v2649_v40 = vmul.f32 %v2648_v3, %v2628_v0 }
 0x69c   :  { %v2651_v62 = vmul.f32 %v2912_v56, %v2649_v40 }
 0x69e   :  { %v2653_v45 = vadd.f32 %v2913_v52, %v2651_v62 }
 0x6a0   :  { %v2654_v20 = vmax.f32 %v2653_v45, 0.0 }
 0x6a2   :  { %v2655_v63 = vpack.c.bf16 %v2654_v20, %v2654_v20 }
 0x6a4   :  { %2822 = vmatmul.msk.bf16.vlgmr.msra.gmra.mxu0 %vm217_vm0, %v2655_v63 }
 0x721   :  { %v2669_v6 = vpop.f32.mrf.mxu0 }
 0x722   :  { %v2670_v48 = vadd.f32 %v2914_v53, %v2669_v6  ;;  %v154_v6 = vld [vmem:[#allocation2 + $0x290] sm:$0xff] }
 0x724   :  { %v2673_v15 = vsel %vm2596_vm4, %v2670_v48, 0.0 }
 0x725   :  { %v2674_v43 = vrot.slane %v2673_v15, 4 }
 0x727   :  { %v2675_v25 = vadd.f32 %v2674_v43, %v2673_v15  ;;  %v152_v15 = vld [vmem:[#allocation2 + $0x280] sm:$0xff] }
 0x729   :  { %v2676_v55 = vrot.slane %v2675_v25, 2  ;;  %v2671_v24 = vpop.f32.mrf.mxu0 }
 0x72b   :  { %v2677_v35 = vadd.f32 %v2676_v55, %v2675_v25  ;;  %v153_v25 = vld [vmem:[#allocation2 + $0x288] sm:$0xff] }
 0x72c   :  { %v158_v24 = vpack.c.bf16 %v153_v25, %v152_v15 }
 0x72d   :  { %v2678_v28 = vrot.slane %v2677_v35, 1 }
 0x72f   :  { %v2679_v49 = vadd.f32 %v2678_v28, %v2677_v35  ;;  %v150_v28 = vld [vmem:[#allocation2 + $0x270] sm:$0xff] }
 0x731   :  { %v2680_v1 = vmul.f32 %v2679_v49, %v4933_v31  ;;  %v151_v49 = vld [vmem:[#allocation2 + $0x278] sm:$0xff] }
 0x733   :  { %v2681_v41 = vsub.f32 %v2670_v48, %v2680_v1  ;;  %v155_v48 = vld [vmem:[#allocation2 + $0x298] sm:$0xff]  ;;  %v157_v1 = vpack.c.bf16 %v151_v49, %v150_v28 }
 0x734   :  { %v159_v43 = vpack.c.bf16 %v155_v48, %v154_v6 }
 0x735   :  { %v2682_v38 = vmul.f32 %v2681_v41, %v2681_v41 }
 0x736   :  { %2770 = vmatpush.bf16.msrb.mxu0 %v159_v43 }
 0x737   :  { %v2683_v50 = vsel %vm2596_vm4, %v2682_v38, 0.0  ;;  %v149_v38 = vld [vmem:[#allocation2 + $0x268] sm:$0xff] }
 0x738   :  { %v2684_v32 = vrot.slane %v2683_v50, 4 }
 0x73a   :  { %v2685_v9 = vadd.f32 %v2684_v32, %v2683_v50  ;;  %2771 = vmatpush.bf16.msrb.mxu0 %v158_v24 }
 0x73c   :  { %v2686_v8 = vrot.slane %v2685_v9, 2 }
 0x73e   :  { %v2687_v7 = vadd.f32 %v2686_v8, %v2685_v9  ;;  %2772 = vmatpush.bf16.msrb.mxu0 %v157_v1 }
 0x740   :  { %v2688_v10 = vrot.slane %v2687_v7, 1 }
 0x742   :  { %v2689_v26 = vadd.f32 %v2688_v10, %v2687_v7 }
 0x744   :  { %v2690_v0 = vmul.f32 %v2689_v26, %v4933_v31  ;;  %v2918_v26 = vld [vmem:[#allocation2 + $0x307] ss:$0 sm:$0xff] }
 0x746   :  { %v2691_v12 = vadd.f32 1e-05, %v2690_v0 }
 0x748   :  { %2925 = vrsqrt.f32 %v2691_v12  ;;  %vm2698_vm11 = vweird.f32 %v2691_v12 }
 0x74e   :  { %v2926_v58 = vpop.eup %2925 }
 0x74f   :  { %v2693_v33 = vmul.f32 %v2926_v58, %v2691_v12  ;;  %vm2699_vm8 = vweird.f32 %v2926_v58  ;;  %v2920_v12 = vld [vmem:[#allocation2 + $0x309] ss:$0 sm:$0xff] }
 0x750   :  { %vm2700_vm13 = vmor %vm2698_vm11, %vm2699_vm8 }
 0x751   :  { %v2694_v13 = vmul.f32 %v2926_v58, %v2693_v33 }
 0x753   :  { %v2695_v2 = vmul.f32 0.5, %v2694_v13 }
 0x755   :  { %v2696_v18 = vsub.f32 1.5, %v2695_v2 }
 0x757   :  { %v2697_v60 = vmul.f32 %v2926_v58, %v2696_v18 }
 0x759   :  { %v2701_v16 = vsel %vm2700_vm13, %v2926_v58, %v2697_v60 }
 0x75a   :  { %v2702_v46 = vmul.f32 %v2701_v16, %v2681_v41  ;;  %v148_v41 = vld [vmem:[#allocation2 + $0x260] sm:$0xff] }
 0x75b   :  { %v156_v50 = vpack.c.bf16 %v149_v38, %v148_v41 }
 0x75c   :  { %v2704_v30 = vmul.f32 %v2915_v17, %v2702_v46 }
 0x75d   :  { %2773 = vmatpush.bf16.msrb.mxu0 %v156_v50 }
 0x75e   :  { %v2706_v5 = vadd.f32 %v2916_v27, %v2704_v30 }
 0x760   :  { %v2707_v14 = vmax.f32 %v2706_v5, 0.0 }
 0x762   :  { %v2708_v51 = vpack.c.bf16 %v2707_v14, %v2707_v14 }
 0x764   :  { %2823 = vmatmul.msk.bf16.vlgmr.msrb.gmra.mxu3 %vm2596_vm4, %v2708_v51 }
 0x7e7   :  { %v2722_v37 = vpop.f32.mrf.mxu3 }
 0x7e8   :  { %v2723_v39 = vadd.f32 %v2917_v44, %v2722_v37 }
 0x7ea   :  { %v2726_v59 = vsel %vm217_vm0, %v2723_v39, 0.0 }
 0x7eb   :  { %v2727_v23 = vrot.slane %v2726_v59, 4 }
 0x7ed   :  { %v2728_v22 = vadd.f32 %v2727_v23, %v2726_v59 }
 0x7ef   :  { %v2729_v42 = vrot.slane %v2728_v22, 2  ;;  %v2724_v29 = vpop.f32.mrf.mxu3 }
 0x7f1   :  { %v2730_v36 = vadd.f32 %v2729_v42, %v2728_v22 }
 0x7f3   :  { %v2731_v61 = vrot.slane %v2730_v36, 1 }
 0x7f5   :  { %v2732_v47 = vadd.f32 %v2731_v61, %v2730_v36 }
 0x7f7   :  { %v2733_v19 = vmul.f32 %v2732_v47, %v4933_v31 }
 0x7f9   :  { %v2734_v56 = vsub.f32 %v2723_v39, %v2733_v19 }
 0x7fb   :  { %v2735_v3 = vmul.f32 %v2734_v56, %v2734_v56 }
 0x7fd   :  { %v2736_v40 = vsel %vm217_vm0, %v2735_v3, 0.0 }
 0x7fe   :  { %v2737_v52 = vrot.slane %v2736_v40, 4 }
 0x800   :  { %v2738_v62 = vadd.f32 %v2737_v52, %v2736_v40 }
 0x802   :  { %v2739_v45 = vrot.slane %v2738_v62, 2 }
 0x804   :  { %v2740_v20 = vadd.f32 %v2739_v45, %v2738_v62 }
 0x806   :  { %v2741_v63 = vrot.slane %v2740_v20, 1 }
 0x808   :  { %v2742_v53 = vadd.f32 %v2741_v63, %v2740_v20 }
 0x80a   :  { %v2743_v55 = vmul.f32 %v2742_v53, %v4933_v31 }
 0x80c   :  { %v2744_v35 = vadd.f32 1e-05, %v2743_v55 }
 0x80e   :  { %2927 = vrsqrt.f32 %v2744_v35  ;;  %vm2751_vm12 = vweird.f32 %v2744_v35 }
 0x814   :  { %v2928_v32 = vpop.eup %2927 }
 0x815   :  { %v2746_v9 = vmul.f32 %v2928_v32, %v2744_v35  ;;  %vm2752_vm14 = vweird.f32 %v2928_v32 }
 0x816   :  { %vm2753_vm15 = vmor %vm2751_vm12, %vm2752_vm14 }
 0x817   :  { %v2747_v8 = vmul.f32 %v2928_v32, %v2746_v9 }
 0x819   :  { %v2748_v7 = vmul.f32 0.5, %v2747_v8 }
 0x81b   :  { %v2749_v10 = vsub.f32 1.5, %v2748_v7 }
 0x81d   :  { %v2750_v31 = vmul.f32 %v2928_v32, %v2749_v10 }
 0x81f   :  { %v2754_v11 = vsel %vm2753_vm15, %v2928_v32, %v2750_v31 }
 0x820   :  { %v2755_v54 = vmul.f32 %v2754_v11, %v2734_v56 }
 0x822   :  { %v2757_v34 = vmul.f32 %v2918_v26, %v2755_v54 }
 0x824   :  { %v2759_v57 = vadd.f32 %v2919_v21, %v2757_v34 }
 0x826   :  { %v2760_v0 = vmax.f32 %v2759_v57, 0.0 }
 0x828   :  { %v2761_v4 = vpack.c.bf16 %v2760_v0, %v2760_v0 }
 0x82a   :  { %2824 = vmatmul.msk.bf16.vlgmr.msrb.gmra.mxu0 %vm217_vm0, %v2761_v4 }
 0x8a7   :  { %v2775_v58 = vpop.f32.mrf.mxu0 }
 0x8a8   :  { %v2776_v33 = vadd.f32 %v2920_v12, %v2775_v58 }
 0x8aa   :  { %v2779_v13 = vsub.f32 0.0, %v2776_v33 }
 0x8ac   :  { %v2780_v2 = vmul.f32 1.442695, %v2779_v13 }
 0x8ae   :  { %2929 = vpow2.f32 %v2780_v2 }
 0x8af   :  { %v2777_v18 = vpop.f32.mrf.mxu0 }
 0x8b4   :  { %v2930_v60 = vpop.eup %2929 }
 0x8b5   :  { %v2782_v17 = vadd.f32 1.0, %v2930_v60 }
 0x8b7   :  { %2931 = vrcp.f32 %v2782_v17  ;;  %v2794_v30 = vand.u32 2147483648, %v2782_v17  ;;  %v2792_v14 = vand.u32 2147483647, %v2782_v17  ;;  %vm2788_vm9 = vweird.f32 %v2782_v17 }
 0x8b9   :  { %v2795_v44 = vor.u32 1.1754944e-38, %v2794_v30  ;;  %vm2793_vm1 = vcmp.eq.f32.partialorder %v2792_v14, 8.507059e+37 }
 0x8bd   :  { %v2932_v16 = vpop.eup %2931 }
 0x8be   :  { %v2784_v46 = vmul.f32 %v2932_v16, %v2782_v17  ;;  %vm2789_vm10 = vweird.f32 %v2932_v16 }
 0x8bf   :  { %vm2790_vm0 = vmor %vm2788_vm9, %vm2789_vm10 }
 0x8c0   :  { %v2785_v27 = vsub.f32 1.0, %v2784_v46 }
 0x8c2   :  { %v2786_v5 = vmul.f32 %v2932_v16, %v2785_v27 }
 0x8c4   :  { %v2787_v51 = vadd.f32 %v2932_v16, %v2786_v5 }
 0x8c6   :  { %v2791_v37 = vsel %vm2790_vm0, %v2932_v16, %v2787_v51 }
 0x8c7   :  { %v2796_v39 = vsel %vm2793_vm1, %v2795_v44, %v2791_v37 }
 0x8c8   :  { %2797 = vst [vmem:[%s4956_s4] sm:$0xff] %v2796_v39 }
 0x8c9   :  { %2802 = vsyncpa [#allocation3], 1 }

</bundles_post_ra>
